<compile_context>
chip_gen: v6e
topology: v6e:2x2x1
jax: 0.10.0
libtpu: 0.0.40
codegen_flags: <defaults>
</compile_context>

<pallas_src>
import functools
import math

import numpy as np
import jax
import jax.numpy as jnp
from jax import lax
from jax.experimental import pallas as pl
from jax.experimental.pallas import tpu as pltpu


# -----------------------------------------------------------------------------
# Model constants (synthetic small config)
# -----------------------------------------------------------------------------
CPAD = 128            # padded channel width (lane-dense)
C_VALID = 32          # real backbone channels
FC_DIM = 64           # real box-head hidden width
NUM_ANCHORS = 3
NUM_CLASSES = 5
NUM_PROPOSALS = 64
ROI_SIZE = 7
STEM_K = 32           # 3*3*3 = 27 stem im2col taps, padded to 32
BBOX_CLIP = math.log(1000.0 / 16.0)


def _round_up(x, m):
    return ((x + m - 1) // m) * m


def _vmem_bytes():
    try:
        return int(pltpu.get_tpu_info().vmem_capacity_bytes)
    except Exception:
        return 64 * 1024 * 1024


def _vmem_limit():
    # 64 MiB scoped limit on 128 MiB parts (v5e/v6e), 32 MiB on v7x.
    return int(min(_vmem_bytes() // 2, 64 * 1024 * 1024))


def _pick_tm(M, K, N, tm_cap=1024):
    """Generation-aware M tile.  Single grid step when the problem is tiny."""
    m8 = _round_up(M, 8)
    budget = max(8 << 20, min(_vmem_bytes() // 4, 32 << 20))

    def fits(t):
        return 2 * t * (K * 2 + N * 4) <= budget   # double-buffered x / out

    if m8 <= tm_cap and fits(m8):
        return m8
    tm = 8
    while tm * 2 <= tm_cap and tm * 2 <= m8 and fits(tm * 2):
        tm *= 2
    return tm


def _full_spec(a):
    """Grid-invariant (revisited) block covering the whole array."""
    n = a.ndim
    return pl.BlockSpec(a.shape, lambda *args, n=n: (0,) * n)


# -----------------------------------------------------------------------------
# Pallas kernel 1: fully fused backbone + RPN (stem, c1, c2, rpn_conv, rpn head)
# -----------------------------------------------------------------------------
def _backbone_rpn_kernel(xcol_ref, m8_ref, m2_ref, m4_ref,
                         ws_ref, bs_ref, w1_ref, b1_ref, w2_ref, b2_ref,
                         wr_ref, br_ref, wh_ref, bh_ref,
                         f0_ref, r0_ref, r1_ref):
    def conv3x3(feat, m_ref, w_ref, b_ref):
        # feat: [R_in, CPAD] bf16.  m_ref: [9, R_out, R_in] static 0/1
        # shift/select matrices (zero rows encode the spatial zero padding and
        # stride-2 subsampling).  w_ref: [9*CPAD, CPAD] bf16, b_ref: [1, CPAD].
        taps = [jnp.dot(m_ref[t], feat, preferred_element_type=jnp.float32)
                for t in range(9)]                               # 9 x [R_out, CPAD]
        cat = jnp.concatenate(taps, axis=-1).astype(jnp.bfloat16)  # [R_out, 9*CPAD]
        out = jnp.dot(cat, w_ref[...], preferred_element_type=jnp.float32)
        return jnp.maximum(out + b_ref[...], 0.0).astype(jnp.bfloat16)

    # Stem (3x3, stride 2) as an im2col matmul: K = 27 padded to 32.
    s = jnp.dot(xcol_ref[0], ws_ref[...], preferred_element_type=jnp.float32)
    s = jnp.maximum(s + bs_ref[...], 0.0).astype(jnp.bfloat16)   # [R0, CPAD]

    f0 = conv3x3(s, m8_ref, w1_ref, b1_ref)    # level-0 features  [R0, CPAD]
    f1 = conv3x3(f0, m2_ref, w2_ref, b2_ref)   # level-1 features  [R1, CPAD]
    t0 = conv3x3(f0, m8_ref, wr_ref, br_ref)   # rpn conv, level 0
    t1 = conv3x3(f1, m4_ref, wr_ref, br_ref)   # rpn conv, level 1

    f0_ref[0] = f0
    r0_ref[0] = (jnp.dot(t0, wh_ref[...], preferred_element_type=jnp.float32)
                 + bh_ref[...]).astype(r0_ref.dtype)
    r1_ref[0] = (jnp.dot(t1, wh_ref[...], preferred_element_type=jnp.float32)
                 + bh_ref[...]).astype(r1_ref.dtype)


def _shift_matrices(H, W, stride):
    """Static 0/1 matrices M[t] with (M[t] @ feat)[r_out] = padded input tap t."""
    Ho = (H + 2 - 3) // stride + 1
    Wo = (W + 2 - 3) // stride + 1
    m = np.zeros((9, Ho * Wo, H * W), np.float32)
    for i in range(3):
        for j in range(3):
            t = i * 3 + j
            for oy in range(Ho):
                for ox in range(Wo):
                    y = oy * stride + i - 1
                    x = ox * stride + j - 1
                    if 0 <= y < H and 0 <= x < W:
                        m[t, oy * Wo + ox, y * W + x] = 1.0
    return jnp.asarray(m, jnp.bfloat16), Ho, Wo


def _stem_im2col(images):
    """3x3 stride-2 pad-1 patches of [B,H,W,3] -> [B, Ho*Wo, 32] bf16."""
    B, H, W, C = images.shape
    Ho = (H + 2 - 3) // 2 + 1
    Wo = (W + 2 - 3) // 2 + 1
    xp = jnp.pad(images, ((0, 0), (1, 1), (1, 1), (0, 0)))
    cols = []
    for i in range(3):
        for j in range(3):
            cols.append(xp[:, i:i + 2 * Ho:2, j:j + 2 * Wo:2, :])   # [B,Ho,Wo,3]
    x = jnp.concatenate(cols, axis=-1).reshape(B, Ho * Wo, 9 * C)
    x = jnp.pad(x, ((0, 0), (0, 0), (0, STEM_K - 9 * C)))
    return x.astype(jnp.bfloat16), Ho, Wo


def backbone_rpn(params, images_nhwc):
    B, H, W, _ = images_nhwc.shape
    xcol, H0, W0 = _stem_im2col(images_nhwc)          # level-0 spatial = H/2
    m8, _, _ = _shift_matrices(H0, W0, 1)             # 8x8 stride-1 convs
    m2, H1, W1 = _shift_matrices(H0, W0, 2)           # 8x8 -> 4x4 stride-2 conv
    m4, _, _ = _shift_matrices(H1, W1, 1)             # 4x4 stride-1 conv
    R0, R1 = H0 * W0, H1 * W1
    assert R0 % 8 == 0 and R1 % 8 == 0

    ws, bs = params["stem"]
    w1, b1 = params["c1"]
    w2, b2 = params["c2"]
    wr, br = params["rpn_conv"]
    wh, bh = params["rpn_head"]

    out_shapes = (
        jax.ShapeDtypeStruct((B, R0, CPAD), jnp.bfloat16),   # f0 (for ROI pool)
        jax.ShapeDtypeStruct((B, R0, CPAD), jnp.bfloat16),   # rpn head, level 0
        jax.ShapeDtypeStruct((B, R1, CPAD), jnp.bfloat16),   # rpn head, level 1
    )
    f0, r0, r1 = pl.pallas_call(
        _backbone_rpn_kernel,
        out_shape=out_shapes,
        grid_spec=pltpu.PrefetchScalarGridSpec(
            num_scalar_prefetch=0,
            grid=(B,),
            in_specs=[
                pl.BlockSpec((1, R0, STEM_K), lambda i: (i, 0, 0)),
                _full_spec(m8), _full_spec(m2), _full_spec(m4),
                _full_spec(ws), _full_spec(bs),
                _full_spec(w1), _full_spec(b1),
                _full_spec(w2), _full_spec(b2),
                _full_spec(wr), _full_spec(br),
                _full_spec(wh), _full_spec(bh),
            ],
            out_specs=(
                pl.BlockSpec((1, R0, CPAD), lambda i: (i, 0, 0)),
                pl.BlockSpec((1, R0, CPAD), lambda i: (i, 0, 0)),
                pl.BlockSpec((1, R1, CPAD), lambda i: (i, 0, 0)),
            ),
        ),
        compiler_params=pltpu.CompilerParams(
            dimension_semantics=("parallel",),
            vmem_limit_bytes=_vmem_limit()),
    )(xcol, m8, m2, m4, ws, bs, w1, b1, w2, b2, wr, br, wh, bh)
    return f0, r0, r1, (H0, W0), (H1, W1)


# -----------------------------------------------------------------------------
# Pallas kernel 2: fully fused ROI box head (fc1 -> fc2 -> cls/bbox), one call
# -----------------------------------------------------------------------------
def _box_head_kernel(x_ref, w1_ref, b1_ref, w2_ref, b2_ref, w3_ref, b3_ref,
                     o_ref):
    h = jnp.dot(x_ref[...], w1_ref[...], preferred_element_type=jnp.float32)
    h = jnp.maximum(h + b1_ref[...], 0.0).astype(jnp.bfloat16)
    h = jnp.dot(h, w2_ref[...], preferred_element_type=jnp.float32)
    h = jnp.maximum(h + b2_ref[...], 0.0).astype(jnp.bfloat16)
    o = jnp.dot(h, w3_ref[...], preferred_element_type=jnp.float32)
    o_ref[...] = (o + b3_ref[...]).astype(o_ref.dtype)


def pallas_box_head(x, fc1, fc2, pred):
    w1, b1 = fc1
    w2, b2 = fc2
    w3, b3 = pred
    M, K = x.shape
    N = w3.shape[1]
    tm = _pick_tm(M, K, N)
    Mp = _round_up(M, tm)
    x = x.astype(jnp.bfloat16)
    if Mp != M:
        x = jnp.pad(x, ((0, Mp - M), (0, 0)))
    out = pl.pallas_call(
        _box_head_kernel,
        out_shape=jax.ShapeDtypeStruct((Mp, N), jnp.float32),
        grid_spec=pltpu.PrefetchScalarGridSpec(
            num_scalar_prefetch=0,
            grid=(Mp // tm,),
            in_specs=[
                pl.BlockSpec((tm, K), lambda i: (i, 0)),
                _full_spec(w1), _full_spec(b1),
                _full_spec(w2), _full_spec(b2),
                _full_spec(w3), _full_spec(b3),
            ],
            out_specs=pl.BlockSpec((tm, N), lambda i: (i, 0)),
        ),
        compiler_params=pltpu.CompilerParams(
            dimension_semantics=("parallel",),
            vmem_limit_bytes=_vmem_limit()),
    )(x, w1, b1, w2, b2, w3, b3)
    return out[:M]


# -----------------------------------------------------------------------------
# Deterministic synthetic parameters, stored pre-packed (bf16 weights + f32
# bias), zero-padded so padded lanes / channels stay exactly zero.
# -----------------------------------------------------------------------------
def _uniform(key, shape, fan_in):
    s = 1.0 / math.sqrt(fan_in)
    return jax.random.uniform(key, shape, jnp.float32, -s, s)


def _stem_params(key):
    k1, k2 = jax.random.split(key)
    fan = 9 * 3
    w = _uniform(k1, (3, 3, 3, C_VALID), fan)
    wfull = jnp.zeros((STEM_K, CPAD), jnp.float32)
    wfull = wfull.at[:27, :C_VALID].set(w.reshape(27, C_VALID))
    b = _uniform(k2, (C_VALID,), fan)
    bfull = jnp.zeros((CPAD,), jnp.float32).at[:C_VALID].set(b)
    return wfull.astype(jnp.bfloat16), bfull.reshape(1, CPAD)


def _conv_params(key, cin_valid, cout_valid):
    k1, k2 = jax.random.split(key)
    fan = 9 * cin_valid
    w = _uniform(k1, (3, 3, cin_valid, cout_valid), fan)
    wfull = jnp.zeros((3, 3, CPAD, CPAD), jnp.float32)
    wfull = wfull.at[:, :, :cin_valid, :cout_valid].set(w)
    b = _uniform(k2, (cout_valid,), fan)
    bfull = jnp.zeros((CPAD,), jnp.float32).at[:cout_valid].set(b)
    return (wfull.reshape(9 * CPAD, CPAD).astype(jnp.bfloat16),
            bfull.reshape(1, CPAD))


def _rpn_head_params(key):
    k1, k2, k3, k4 = jax.random.split(key, 4)
    nv = NUM_ANCHORS + 4 * NUM_ANCHORS                       # 15 valid cols
    w = jnp.zeros((CPAD, CPAD), jnp.float32)
    w = w.at[:C_VALID, :NUM_ANCHORS].set(
        _uniform(k1, (C_VALID, NUM_ANCHORS), C_VALID))
    w = w.at[:C_VALID, NUM_ANCHORS:nv].set(
        _uniform(k2, (C_VALID, 4 * NUM_ANCHORS), C_VALID))
    b = jnp.zeros((CPAD,), jnp.float32)
    b = b.at[:NUM_ANCHORS].set(_uniform(k3, (NUM_ANCHORS,), C_VALID))
    b = b.at[NUM_ANCHORS:nv].set(_uniform(k4, (4 * NUM_ANCHORS,), C_VALID))
    return w.astype(jnp.bfloat16), b.reshape(1, CPAD)


def _fc1_params(key):
    k1, k2 = jax.random.split(key)
    kin = ROI_SIZE * ROI_SIZE * C_VALID                      # 1568 (valid K only)
    w = _uniform(k1, (kin, FC_DIM), kin)
    wfull = jnp.zeros((kin, CPAD), jnp.float32).at[:, :FC_DIM].set(w)
    b = _uniform(k2, (FC_DIM,), kin)
    bfull = jnp.zeros((CPAD,), jnp.float32).at[:FC_DIM].set(b)
    return wfull.astype(jnp.bfloat16), bfull.reshape(1, CPAD)


def _fc2_params(key):
    k1, k2 = jax.random.split(key)
    w = _uniform(k1, (FC_DIM, FC_DIM), FC_DIM)
    wfull = jnp.zeros((CPAD, CPAD), jnp.float32).at[:FC_DIM, :FC_DIM].set(w)
    b = _uniform(k2, (FC_DIM,), FC_DIM)
    bfull = jnp.zeros((CPAD,), jnp.float32).at[:FC_DIM].set(b)
    return wfull.astype(jnp.bfloat16), bfull.reshape(1, CPAD)


def _box_pred_params(key):
    k1, k2, k3, k4 = jax.random.split(key, 4)
    nv = NUM_CLASSES + 4 * NUM_CLASSES                       # 25 valid cols
    w = jnp.zeros((CPAD, CPAD), jnp.float32)
    w = w.at[:FC_DIM, :NUM_CLASSES].set(
        _uniform(k1, (FC_DIM, NUM_CLASSES), FC_DIM))
    w = w.at[:FC_DIM, NUM_CLASSES:nv].set(
        _uniform(k2, (FC_DIM, 4 * NUM_CLASSES), FC_DIM))
    b = jnp.zeros((CPAD,), jnp.float32)
    b = b.at[:NUM_CLASSES].set(_uniform(k3, (NUM_CLASSES,), FC_DIM))
    b = b.at[NUM_CLASSES:nv].set(_uniform(k4, (4 * NUM_CLASSES,), FC_DIM))
    return w.astype(jnp.bfloat16), b.reshape(1, CPAD)


def build_params(key):
    ks = jax.random.split(key, 8)
    return {
        "stem": _stem_params(ks[0]),
        "c1": _conv_params(ks[1], C_VALID, C_VALID),
        "c2": _conv_params(ks[2], C_VALID, C_VALID),
        "rpn_conv": _conv_params(ks[3], C_VALID, C_VALID),
        "rpn_head": _rpn_head_params(ks[4]),     # fused cls(3) + bbox(12) -> 128
        "fc1": _fc1_params(ks[5]),               # K = 1568 (valid channels only)
        "fc2": _fc2_params(ks[6]),
        "box_pred": _box_pred_params(ks[7]),     # fused cls(5) + bbox(20) -> 128
    }


# -----------------------------------------------------------------------------
# RPN post-processing (anchors / decode / top-k) in XLA
# -----------------------------------------------------------------------------
def _make_anchors(Hf, Wf, stride, sizes):
    ys = (jnp.arange(Hf, dtype=jnp.float32) + 0.5) * stride
    xs = (jnp.arange(Wf, dtype=jnp.float32) + 0.5) * stride
    cy, cx = jnp.meshgrid(ys, xs, indexing="ij")
    per_size = []
    for s in sizes:
        half = s / 2.0
        per_size.append(jnp.stack([cx - half, cy - half, cx + half, cy + half],
                                  axis=-1))
    a = jnp.stack(per_size, axis=2)                       # [Hf, Wf, A, 4]
    return a.reshape(-1, 4)


def _decode_boxes(anchors, deltas, img_h, img_w):
    wa = anchors[..., 2] - anchors[..., 0]
    ha = anchors[..., 3] - anchors[..., 1]
    cxa = anchors[..., 0] + 0.5 * wa
    cya = anchors[..., 1] + 0.5 * ha
    dx, dy, dw, dh = (deltas[..., 0], deltas[..., 1],
                      deltas[..., 2], deltas[..., 3])
    cx = dx * wa + cxa
    cy = dy * ha + cya
    w = jnp.exp(jnp.minimum(dw, BBOX_CLIP)) * wa
    h = jnp.exp(jnp.minimum(dh, BBOX_CLIP)) * ha
    x1 = jnp.clip(cx - 0.5 * w, 0.0, float(img_w))
    y1 = jnp.clip(cy - 0.5 * h, 0.0, float(img_h))
    x2 = jnp.clip(cx + 0.5 * w, 0.0, float(img_w))
    y2 = jnp.clip(cy + 0.5 * h, 0.0, float(img_h))
    return jnp.stack([x1, y1, x2, y2], axis=-1)


def rpn_postprocess(r0, r1, hw0, hw1, img_h, img_w):
    strides = (2, 4)
    sizes_per_level = ((4.0, 8.0, 16.0), (8.0, 16.0, 32.0))
    nd = 4 * NUM_ANCHORS
    levels = [(r0, hw0), (r1, hw1)]

    all_scores, all_boxes = [], []
    for (o, (Hf, Wf)), stride, sizes in zip(levels, strides, sizes_per_level):
        o = o.astype(jnp.float32)
        B = o.shape[0]
        scores = jax.nn.sigmoid(o[..., :NUM_ANCHORS]).reshape(
            B, Hf * Wf * NUM_ANCHORS)
        deltas = o[..., NUM_ANCHORS:NUM_ANCHORS + nd].reshape(
            B, Hf * Wf * NUM_ANCHORS, 4)
        anchors = _make_anchors(Hf, Wf, stride, sizes)
        boxes = _decode_boxes(anchors, deltas, img_h, img_w)
        all_scores.append(scores)
        all_boxes.append(boxes)

    scores = jnp.concatenate(all_scores, axis=1)           # [B, total]
    boxes = jnp.concatenate(all_boxes, axis=1)             # [B, total, 4]
    k = min(NUM_PROPOSALS, scores.shape[1])
    top_scores, idx = lax.top_k(scores, k)
    proposals = jnp.take_along_axis(boxes, idx[..., None], axis=1)
    # TODO(synk): NMS over proposals is data-dependent control flow; only
    # top-k score selection is implemented here.
    return proposals, top_scores


# -----------------------------------------------------------------------------
# ROI heads: one-hot-matmul ROI pooling + one fused Pallas box-head call
# -----------------------------------------------------------------------------
def _roi_pool_onehot(f0, proposals, Hf, Wf, spatial_scale):
    """Nearest-neighbour ROI pooling as a one-hot matmul (MXU-friendly).
    Pools only the C_VALID real channels -> box-head K = 49*32 = 1568."""
    # TODO(synk): exact bilinear ROIAlign / FPN level assignment not implemented.
    B, N = proposals.shape[0], proposals.shape[1]
    x1 = proposals[..., 0] * spatial_scale
    y1 = proposals[..., 1] * spatial_scale
    x2 = proposals[..., 2] * spatial_scale
    y2 = proposals[..., 3] * spatial_scale
    grid = (jnp.arange(ROI_SIZE, dtype=jnp.float32) + 0.5) / ROI_SIZE
    ys = y1[..., None] + grid * (y2 - y1)[..., None]        # [B, N, 7]
    xs = x1[..., None] + grid * (x2 - x1)[..., None]
    yi = jnp.clip(jnp.floor(ys).astype(jnp.int32), 0, Hf - 1)
    xi = jnp.clip(jnp.floor(xs).astype(jnp.int32), 0, Wf - 1)
    flat = (yi[:, :, :, None] * Wf + xi[:, :, None, :]).reshape(
        B, N * ROI_SIZE * ROI_SIZE)                         # [B, N*49]
    onehot = (flat[..., None] ==
              jnp.arange(Hf * Wf)[None, None, :]).astype(jnp.bfloat16)
    pooled = jnp.einsum("bpq,bqc->bpc", onehot,
                        f0[..., :C_VALID])                  # [B, N*49, 32]
    return pooled.astype(jnp.bfloat16).reshape(
        B * N, ROI_SIZE * ROI_SIZE * C_VALID)


def roi_heads(params, f0, proposals, hw0, img_h, img_w):
    Hf, Wf = hw0
    B, N = proposals.shape[0], proposals.shape[1]

    x = _roi_pool_onehot(f0, proposals, Hf, Wf, spatial_scale=0.5)

    # Single fused fc1 -> fc2 -> cls/bbox kernel over all images & proposals.
    out = pallas_box_head(x, params["fc1"], params["fc2"], params["box_pred"])
    cls_logits = out[:, :NUM_CLASSES]
    box_reg = out[:, NUM_CLASSES:NUM_CLASSES + 4 * NUM_CLASSES].reshape(
        B * N, NUM_CLASSES, 4)

    cls_prob = jax.nn.softmax(cls_logits, axis=-1)
    labels = jnp.argmax(cls_prob, axis=-1)
    scores = jnp.max(cls_prob, axis=-1)
    sel_deltas = jnp.take_along_axis(
        box_reg, labels[:, None, None], axis=1)[:, 0, :]
    boxes = _decode_boxes(proposals.reshape(B * N, 4), sel_deltas,
                          img_h=img_h, img_w=img_w)

    boxes = boxes.reshape(B, N, 4)
    scores = scores.reshape(B, N)
    labels = labels.reshape(B, N)
    # TODO(synk): mask head / mask-scoring (MS) head not implemented.
    return [{"boxes": boxes[b], "scores": scores[b], "labels": labels[b]}
            for b in range(B)]


# -----------------------------------------------------------------------------
# GeneralizedRCNN.forward (inference path)
# -----------------------------------------------------------------------------
def generalized_rcnn_forward(params, images_nchw):
    """images_nchw: [B, 3, H, W] (PyTorch NCHW convention)."""
    images = jnp.transpose(images_nchw, (0, 2, 3, 1)).astype(jnp.float32)
    B, H, W, _ = images.shape
    # Backbone + RPN conv chain + RPN head: one fused Pallas kernel.
    f0, r0, r1, hw0, hw1 = backbone_rpn(params, images)
    # features_revise = [features[0], features[1]] in the reference is a no-op
    # for the forward path; parity kept implicitly (both levels are consumed).
    proposals, _proposal_scores = rpn_postprocess(r0, r1, hw0, hw1, H, W)
    result = roi_heads(params, f0, proposals, hw0, H, W)
    # TODO(synk): training branch (proposal/detector losses) not implemented;
    # the inference path (`return result`) is reproduced.
    return result


if __name__ == "__main__":
    key = jax.random.PRNGKey(0)
    pkey, ikey = jax.random.split(key)
    params = build_params(pkey)
    images = jax.random.uniform(ikey, (2, 3, 16, 16), jnp.float32)  # NCHW
    fwd = jax.jit(generalized_rcnn_forward)
    result = fwd(params, images)
    jax.block_until_ready(result)
    print("KERNEL_OK")
</pallas_src>

<mosaic_0001>
module attributes {stable_mosaic.version = 11 : i64} {
  func.func @_backbone_rpn_kernel(%arg0: i32, %arg1: memref<1x64x32xbf16, #tpu.memory_space<vmem>>, %arg2: memref<9x64x64xbf16, #tpu.memory_space<vmem>>, %arg3: memref<9x16x64xbf16, #tpu.memory_space<vmem>>, %arg4: memref<9x16x16xbf16, #tpu.memory_space<vmem>>, %arg5: memref<32x128xbf16, #tpu.memory_space<vmem>>, %arg6: memref<1x128xf32, #tpu.memory_space<vmem>>, %arg7: memref<1152x128xbf16, #tpu.memory_space<vmem>>, %arg8: memref<1x128xf32, #tpu.memory_space<vmem>>, %arg9: memref<1152x128xbf16, #tpu.memory_space<vmem>>, %arg10: memref<1x128xf32, #tpu.memory_space<vmem>>, %arg11: memref<1152x128xbf16, #tpu.memory_space<vmem>>, %arg12: memref<1x128xf32, #tpu.memory_space<vmem>>, %arg13: memref<128x128xbf16, #tpu.memory_space<vmem>>, %arg14: memref<1x128xf32, #tpu.memory_space<vmem>>, %arg15: memref<1x64x128xbf16, #tpu.memory_space<vmem>>, %arg16: memref<1x64x128xbf16, #tpu.memory_space<vmem>>, %arg17: memref<1x16x128xbf16, #tpu.memory_space<vmem>>) attributes {dimension_semantics = [#tpu.dimension_semantics<parallel>], iteration_bounds = array<i64: 2>, scalar_prefetch = 0 : i64, scratch_operands = 0 : i64, tpu.core_type = #tpu.core_type<tc>, window_params = [{transform_indices = @transform_0, window_bounds = array<i64: 1, 64, 32>}, {pipeline_mode = #tpu.pipeline_mode<synchronous>, transform_indices = @transform_1, window_bounds = array<i64: 9, 64, 64>}, {pipeline_mode = #tpu.pipeline_mode<synchronous>, transform_indices = @transform_2, window_bounds = array<i64: 9, 16, 64>}, {pipeline_mode = #tpu.pipeline_mode<synchronous>, transform_indices = @transform_3, window_bounds = array<i64: 9, 16, 16>}, {pipeline_mode = #tpu.pipeline_mode<synchronous>, transform_indices = @transform_4, window_bounds = array<i64: 32, 128>}, {pipeline_mode = #tpu.pipeline_mode<synchronous>, transform_indices = @transform_5, window_bounds = array<i64: 1, 128>}, {pipeline_mode = #tpu.pipeline_mode<synchronous>, transform_indices = @transform_6, window_bounds = array<i64: 1152, 128>}, {pipeline_mode = #tpu.pipeline_mode<synchronous>, transform_indices = @transform_7, window_bounds = array<i64: 1, 128>}, {pipeline_mode = #tpu.pipeline_mode<synchronous>, transform_indices = @transform_8, window_bounds = array<i64: 1152, 128>}, {pipeline_mode = #tpu.pipeline_mode<synchronous>, transform_indices = @transform_9, window_bounds = array<i64: 1, 128>}, {pipeline_mode = #tpu.pipeline_mode<synchronous>, transform_indices = @transform_10, window_bounds = array<i64: 1152, 128>}, {pipeline_mode = #tpu.pipeline_mode<synchronous>, transform_indices = @transform_11, window_bounds = array<i64: 1, 128>}, {pipeline_mode = #tpu.pipeline_mode<synchronous>, transform_indices = @transform_12, window_bounds = array<i64: 128, 128>}, {pipeline_mode = #tpu.pipeline_mode<synchronous>, transform_indices = @transform_13, window_bounds = array<i64: 1, 128>}, {transform_indices = @transform_14, window_bounds = array<i64: 1, 64, 128>}, {transform_indices = @transform_15, window_bounds = array<i64: 1, 64, 128>}, {transform_indices = @transform_16, window_bounds = array<i64: 1, 16, 128>}]} {
    %c0 = arith.constant 0 : index
    %c0_0 = arith.constant 0 : index
    %c0_1 = arith.constant 0 : index
    %0 = vector.load %arg1[%c0, %c0_0, %c0_1] : memref<1x64x32xbf16, #tpu.memory_space<vmem>>, vector<1x64x32xbf16>
    %1 = vector.shape_cast %0 : vector<1x64x32xbf16> to vector<64x32xbf16>
    %c0_2 = arith.constant 0 : index
    %c0_3 = arith.constant 0 : index
    %2 = vector.load %arg5[%c0_2, %c0_3] : memref<32x128xbf16, #tpu.memory_space<vmem>>, vector<32x128xbf16>
    %cst = arith.constant dense<0.000000e+00> : vector<64x128xf32>
    %3 = tpu.matmul %1, %2, %cst {dimension_numbers = #tpu.dot_dimension_numbers<[1], [0], [0], [1], [0, 0, 1, 1], [], []>} : vector<64x32xbf16>, vector<32x128xbf16>, vector<64x128xf32> -> vector<64x128xf32>
    %c0_4 = arith.constant 0 : index
    %c0_5 = arith.constant 0 : index
    %4 = vector.load %arg6[%c0_4, %c0_5] : memref<1x128xf32, #tpu.memory_space<vmem>>, vector<1x128xf32>
    %5 = vector.broadcast %4 : vector<1x128xf32> to vector<64x128xf32>
    %6 = arith.addf %3, %5 : vector<64x128xf32>
    %cst_6 = arith.constant 0.000000e+00 : f32
    %7 = vector.broadcast %cst_6 : f32 to vector<64x128xf32>
    %8 = arith.maximumf %6, %7 : vector<64x128xf32>
    %9 = arith.truncf %8 : vector<64x128xf32> to vector<64x128xbf16>
    %c0_7 = arith.constant 0 : index
    %c0_8 = arith.constant 0 : index
    %c0_9 = arith.constant 0 : index
    %10 = vector.load %arg2[%c0_7, %c0_8, %c0_9] : memref<9x64x64xbf16, #tpu.memory_space<vmem>>, vector<1x64x64xbf16>
    %11 = vector.shape_cast %10 : vector<1x64x64xbf16> to vector<64x64xbf16>
    %cst_10 = arith.constant dense<0.000000e+00> : vector<64x128xf32>
    %12 = tpu.matmul %11, %9, %cst_10 {dimension_numbers = #tpu.dot_dimension_numbers<[1], [0], [0], [1], [0, 0, 1, 1], [], []>} : vector<64x64xbf16>, vector<64x128xbf16>, vector<64x128xf32> -> vector<64x128xf32>
    %c1 = arith.constant 1 : index
    %c0_11 = arith.constant 0 : index
    %c0_12 = arith.constant 0 : index
    %13 = vector.load %arg2[%c1, %c0_11, %c0_12] : memref<9x64x64xbf16, #tpu.memory_space<vmem>>, vector<1x64x64xbf16>
    %14 = vector.shape_cast %13 : vector<1x64x64xbf16> to vector<64x64xbf16>
    %cst_13 = arith.constant dense<0.000000e+00> : vector<64x128xf32>
    %15 = tpu.matmul %14, %9, %cst_13 {dimension_numbers = #tpu.dot_dimension_numbers<[1], [0], [0], [1], [0, 0, 1, 1], [], []>} : vector<64x64xbf16>, vector<64x128xbf16>, vector<64x128xf32> -> vector<64x128xf32>
    %c2 = arith.constant 2 : index
    %c0_14 = arith.constant 0 : index
    %c0_15 = arith.constant 0 : index
    %16 = vector.load %arg2[%c2, %c0_14, %c0_15] : memref<9x64x64xbf16, #tpu.memory_space<vmem>>, vector<1x64x64xbf16>
    %17 = vector.shape_cast %16 : vector<1x64x64xbf16> to vector<64x64xbf16>
    %cst_16 = arith.constant dense<0.000000e+00> : vector<64x128xf32>
    %18 = tpu.matmul %17, %9, %cst_16 {dimension_numbers = #tpu.dot_dimension_numbers<[1], [0], [0], [1], [0, 0, 1, 1], [], []>} : vector<64x64xbf16>, vector<64x128xbf16>, vector<64x128xf32> -> vector<64x128xf32>
    %c3 = arith.constant 3 : index
    %c0_17 = arith.constant 0 : index
    %c0_18 = arith.constant 0 : index
    %19 = vector.load %arg2[%c3, %c0_17, %c0_18] : memref<9x64x64xbf16, #tpu.memory_space<vmem>>, vector<1x64x64xbf16>
    %20 = vector.shape_cast %19 : vector<1x64x64xbf16> to vector<64x64xbf16>
    %cst_19 = arith.constant dense<0.000000e+00> : vector<64x128xf32>
    %21 = tpu.matmul %20, %9, %cst_19 {dimension_numbers = #tpu.dot_dimension_numbers<[1], [0], [0], [1], [0, 0, 1, 1], [], []>} : vector<64x64xbf16>, vector<64x128xbf16>, vector<64x128xf32> -> vector<64x128xf32>
    %c4 = arith.constant 4 : index
    %c0_20 = arith.constant 0 : index
    %c0_21 = arith.constant 0 : index
    %22 = vector.load %arg2[%c4, %c0_20, %c0_21] : memref<9x64x64xbf16, #tpu.memory_space<vmem>>, vector<1x64x64xbf16>
    %23 = vector.shape_cast %22 : vector<1x64x64xbf16> to vector<64x64xbf16>
    %cst_22 = arith.constant dense<0.000000e+00> : vector<64x128xf32>
    %24 = tpu.matmul %23, %9, %cst_22 {dimension_numbers = #tpu.dot_dimension_numbers<[1], [0], [0], [1], [0, 0, 1, 1], [], []>} : vector<64x64xbf16>, vector<64x128xbf16>, vector<64x128xf32> -> vector<64x128xf32>
    %c5 = arith.constant 5 : index
    %c0_23 = arith.constant 0 : index
    %c0_24 = arith.constant 0 : index
    %25 = vector.load %arg2[%c5, %c0_23, %c0_24] : memref<9x64x64xbf16, #tpu.memory_space<vmem>>, vector<1x64x64xbf16>
    %26 = vector.shape_cast %25 : vector<1x64x64xbf16> to vector<64x64xbf16>
    %cst_25 = arith.constant dense<0.000000e+00> : vector<64x128xf32>
    %27 = tpu.matmul %26, %9, %cst_25 {dimension_numbers = #tpu.dot_dimension_numbers<[1], [0], [0], [1], [0, 0, 1, 1], [], []>} : vector<64x64xbf16>, vector<64x128xbf16>, vector<64x128xf32> -> vector<64x128xf32>
    %c6 = arith.constant 6 : index
    %c0_26 = arith.constant 0 : index
    %c0_27 = arith.constant 0 : index
    %28 = vector.load %arg2[%c6, %c0_26, %c0_27] : memref<9x64x64xbf16, #tpu.memory_space<vmem>>, vector<1x64x64xbf16>
    %29 = vector.shape_cast %28 : vector<1x64x64xbf16> to vector<64x64xbf16>
    %cst_28 = arith.constant dense<0.000000e+00> : vector<64x128xf32>
    %30 = tpu.matmul %29, %9, %cst_28 {dimension_numbers = #tpu.dot_dimension_numbers<[1], [0], [0], [1], [0, 0, 1, 1], [], []>} : vector<64x64xbf16>, vector<64x128xbf16>, vector<64x128xf32> -> vector<64x128xf32>
    %c7 = arith.constant 7 : index
    %c0_29 = arith.constant 0 : index
    %c0_30 = arith.constant 0 : index
    %31 = vector.load %arg2[%c7, %c0_29, %c0_30] : memref<9x64x64xbf16, #tpu.memory_space<vmem>>, vector<1x64x64xbf16>
    %32 = vector.shape_cast %31 : vector<1x64x64xbf16> to vector<64x64xbf16>
    %cst_31 = arith.constant dense<0.000000e+00> : vector<64x128xf32>
    %33 = tpu.matmul %32, %9, %cst_31 {dimension_numbers = #tpu.dot_dimension_numbers<[1], [0], [0], [1], [0, 0, 1, 1], [], []>} : vector<64x64xbf16>, vector<64x128xbf16>, vector<64x128xf32> -> vector<64x128xf32>
    %c8 = arith.constant 8 : index
    %c0_32 = arith.constant 0 : index
    %c0_33 = arith.constant 0 : index
    %34 = vector.load %arg2[%c8, %c0_32, %c0_33] : memref<9x64x64xbf16, #tpu.memory_space<vmem>>, vector<1x64x64xbf16>
    %35 = vector.shape_cast %34 : vector<1x64x64xbf16> to vector<64x64xbf16>
    %cst_34 = arith.constant dense<0.000000e+00> : vector<64x128xf32>
    %36 = tpu.matmul %35, %9, %cst_34 {dimension_numbers = #tpu.dot_dimension_numbers<[1], [0], [0], [1], [0, 0, 1, 1], [], []>} : vector<64x64xbf16>, vector<64x128xbf16>, vector<64x128xf32> -> vector<64x128xf32>
    %37 = tpu.concatenate %12, %15, %18, %21, %24, %27, %30, %33, %36 in 1 : vector<64x128xf32>, vector<64x128xf32>, vector<64x128xf32>, vector<64x128xf32>, vector<64x128xf32>, vector<64x128xf32>, vector<64x128xf32>, vector<64x128xf32>, vector<64x128xf32> -> vector<64x1152xf32>
    %38 = arith.truncf %37 : vector<64x1152xf32> to vector<64x1152xbf16>
    %c0_35 = arith.constant 0 : index
    %c0_36 = arith.constant 0 : index
    %39 = vector.load %arg7[%c0_35, %c0_36] : memref<1152x128xbf16, #tpu.memory_space<vmem>>, vector<1152x128xbf16>
    %cst_37 = arith.constant dense<0.000000e+00> : vector<64x128xf32>
    %40 = tpu.matmul %38, %39, %cst_37 {dimension_numbers = #tpu.dot_dimension_numbers<[1], [0], [0], [1], [0, 0, 1, 1], [], []>} : vector<64x1152xbf16>, vector<1152x128xbf16>, vector<64x128xf32> -> vector<64x128xf32>
    %c0_38 = arith.constant 0 : index
    %c0_39 = arith.constant 0 : index
    %41 = vector.load %arg8[%c0_38, %c0_39] : memref<1x128xf32, #tpu.memory_space<vmem>>, vector<1x128xf32>
    %42 = vector.broadcast %41 : vector<1x128xf32> to vector<64x128xf32>
    %43 = arith.addf %40, %42 : vector<64x128xf32>
    %cst_40 = arith.constant 0.000000e+00 : f32
    %44 = vector.broadcast %cst_40 : f32 to vector<64x128xf32>
    %45 = arith.maximumf %43, %44 : vector<64x128xf32>
    %46 = arith.truncf %45 : vector<64x128xf32> to vector<64x128xbf16>
    %c0_41 = arith.constant 0 : index
    %c0_42 = arith.constant 0 : index
    %c0_43 = arith.constant 0 : index
    %47 = vector.load %arg3[%c0_41, %c0_42, %c0_43] : memref<9x16x64xbf16, #tpu.memory_space<vmem>>, vector<1x16x64xbf16>
    %48 = vector.shape_cast %47 : vector<1x16x64xbf16> to vector<16x64xbf16>
    %cst_44 = arith.constant dense<0.000000e+00> : vector<16x128xf32>
    %49 = tpu.matmul %48, %46, %cst_44 {dimension_numbers = #tpu.dot_dimension_numbers<[1], [0], [0], [1], [0, 0, 1, 1], [], []>} : vector<16x64xbf16>, vector<64x128xbf16>, vector<16x128xf32> -> vector<16x128xf32>
    %c1_45 = arith.constant 1 : index
    %c0_46 = arith.constant 0 : index
    %c0_47 = arith.constant 0 : index
    %50 = vector.load %arg3[%c1_45, %c0_46, %c0_47] : memref<9x16x64xbf16, #tpu.memory_space<vmem>>, vector<1x16x64xbf16>
    %51 = vector.shape_cast %50 : vector<1x16x64xbf16> to vector<16x64xbf16>
    %cst_48 = arith.constant dense<0.000000e+00> : vector<16x128xf32>
    %52 = tpu.matmul %51, %46, %cst_48 {dimension_numbers = #tpu.dot_dimension_numbers<[1], [0], [0], [1], [0, 0, 1, 1], [], []>} : vector<16x64xbf16>, vector<64x128xbf16>, vector<16x128xf32> -> vector<16x128xf32>
    %c2_49 = arith.constant 2 : index
    %c0_50 = arith.constant 0 : index
    %c0_51 = arith.constant 0 : index
    %53 = vector.load %arg3[%c2_49, %c0_50, %c0_51] : memref<9x16x64xbf16, #tpu.memory_space<vmem>>, vector<1x16x64xbf16>
    %54 = vector.shape_cast %53 : vector<1x16x64xbf16> to vector<16x64xbf16>
    %cst_52 = arith.constant dense<0.000000e+00> : vector<16x128xf32>
    %55 = tpu.matmul %54, %46, %cst_52 {dimension_numbers = #tpu.dot_dimension_numbers<[1], [0], [0], [1], [0, 0, 1, 1], [], []>} : vector<16x64xbf16>, vector<64x128xbf16>, vector<16x128xf32> -> vector<16x128xf32>
    %c3_53 = arith.constant 3 : index
    %c0_54 = arith.constant 0 : index
    %c0_55 = arith.constant 0 : index
    %56 = vector.load %arg3[%c3_53, %c0_54, %c0_55] : memref<9x16x64xbf16, #tpu.memory_space<vmem>>, vector<1x16x64xbf16>
    %57 = vector.shape_cast %56 : vector<1x16x64xbf16> to vector<16x64xbf16>
    %cst_56 = arith.constant dense<0.000000e+00> : vector<16x128xf32>
    %58 = tpu.matmul %57, %46, %cst_56 {dimension_numbers = #tpu.dot_dimension_numbers<[1], [0], [0], [1], [0, 0, 1, 1], [], []>} : vector<16x64xbf16>, vector<64x128xbf16>, vector<16x128xf32> -> vector<16x128xf32>
    %c4_57 = arith.constant 4 : index
    %c0_58 = arith.constant 0 : index
    %c0_59 = arith.constant 0 : index
    %59 = vector.load %arg3[%c4_57, %c0_58, %c0_59] : memref<9x16x64xbf16, #tpu.memory_space<vmem>>, vector<1x16x64xbf16>
    %60 = vector.shape_cast %59 : vector<1x16x64xbf16> to vector<16x64xbf16>
    %cst_60 = arith.constant dense<0.000000e+00> : vector<16x128xf32>
    %61 = tpu.matmul %60, %46, %cst_60 {dimension_numbers = #tpu.dot_dimension_numbers<[1], [0], [0], [1], [0, 0, 1, 1], [], []>} : vector<16x64xbf16>, vector<64x128xbf16>, vector<16x128xf32> -> vector<16x128xf32>
    %c5_61 = arith.constant 5 : index
    %c0_62 = arith.constant 0 : index
    %c0_63 = arith.constant 0 : index
    %62 = vector.load %arg3[%c5_61, %c0_62, %c0_63] : memref<9x16x64xbf16, #tpu.memory_space<vmem>>, vector<1x16x64xbf16>
    %63 = vector.shape_cast %62 : vector<1x16x64xbf16> to vector<16x64xbf16>
    %cst_64 = arith.constant dense<0.000000e+00> : vector<16x128xf32>
    %64 = tpu.matmul %63, %46, %cst_64 {dimension_numbers = #tpu.dot_dimension_numbers<[1], [0], [0], [1], [0, 0, 1, 1], [], []>} : vector<16x64xbf16>, vector<64x128xbf16>, vector<16x128xf32> -> vector<16x128xf32>
    %c6_65 = arith.constant 6 : index
    %c0_66 = arith.constant 0 : index
    %c0_67 = arith.constant 0 : index
    %65 = vector.load %arg3[%c6_65, %c0_66, %c0_67] : memref<9x16x64xbf16, #tpu.memory_space<vmem>>, vector<1x16x64xbf16>
    %66 = vector.shape_cast %65 : vector<1x16x64xbf16> to vector<16x64xbf16>
    %cst_68 = arith.constant dense<0.000000e+00> : vector<16x128xf32>
    %67 = tpu.matmul %66, %46, %cst_68 {dimension_numbers = #tpu.dot_dimension_numbers<[1], [0], [0], [1], [0, 0, 1, 1], [], []>} : vector<16x64xbf16>, vector<64x128xbf16>, vector<16x128xf32> -> vector<16x128xf32>
    %c7_69 = arith.constant 7 : index
    %c0_70 = arith.constant 0 : index
    %c0_71 = arith.constant 0 : index
    %68 = vector.load %arg3[%c7_69, %c0_70, %c0_71] : memref<9x16x64xbf16, #tpu.memory_space<vmem>>, vector<1x16x64xbf16>
    %69 = vector.shape_cast %68 : vector<1x16x64xbf16> to vector<16x64xbf16>
    %cst_72 = arith.constant dense<0.000000e+00> : vector<16x128xf32>
    %70 = tpu.matmul %69, %46, %cst_72 {dimension_numbers = #tpu.dot_dimension_numbers<[1], [0], [0], [1], [0, 0, 1, 1], [], []>} : vector<16x64xbf16>, vector<64x128xbf16>, vector<16x128xf32> -> vector<16x128xf32>
    %c8_73 = arith.constant 8 : index
    %c0_74 = arith.constant 0 : index
    %c0_75 = arith.constant 0 : index
    %71 = vector.load %arg3[%c8_73, %c0_74, %c0_75] : memref<9x16x64xbf16, #tpu.memory_space<vmem>>, vector<1x16x64xbf16>
    %72 = vector.shape_cast %71 : vector<1x16x64xbf16> to vector<16x64xbf16>
    %cst_76 = arith.constant dense<0.000000e+00> : vector<16x128xf32>
    %73 = tpu.matmul %72, %46, %cst_76 {dimension_numbers = #tpu.dot_dimension_numbers<[1], [0], [0], [1], [0, 0, 1, 1], [], []>} : vector<16x64xbf16>, vector<64x128xbf16>, vector<16x128xf32> -> vector<16x128xf32>
    %74 = tpu.concatenate %49, %52, %55, %58, %61, %64, %67, %70, %73 in 1 : vector<16x128xf32>, vector<16x128xf32>, vector<16x128xf32>, vector<16x128xf32>, vector<16x128xf32>, vector<16x128xf32>, vector<16x128xf32>, vector<16x128xf32>, vector<16x128xf32> -> vector<16x1152xf32>
    %75 = arith.truncf %74 : vector<16x1152xf32> to vector<16x1152xbf16>
    %c0_77 = arith.constant 0 : index
    %c0_78 = arith.constant 0 : index
    %76 = vector.load %arg9[%c0_77, %c0_78] : memref<1152x128xbf16, #tpu.memory_space<vmem>>, vector<1152x128xbf16>
    %cst_79 = arith.constant dense<0.000000e+00> : vector<16x128xf32>
    %77 = tpu.matmul %75, %76, %cst_79 {dimension_numbers = #tpu.dot_dimension_numbers<[1], [0], [0], [1], [0, 0, 1, 1], [], []>} : vector<16x1152xbf16>, vector<1152x128xbf16>, vector<16x128xf32> -> vector<16x128xf32>
    %c0_80 = arith.constant 0 : index
    %c0_81 = arith.constant 0 : index
    %78 = vector.load %arg10[%c0_80, %c0_81] : memref<1x128xf32, #tpu.memory_space<vmem>>, vector<1x128xf32>
    %79 = vector.broadcast %78 : vector<1x128xf32> to vector<16x128xf32>
    %80 = arith.addf %77, %79 : vector<16x128xf32>
    %cst_82 = arith.constant 0.000000e+00 : f32
    %81 = vector.broadcast %cst_82 : f32 to vector<16x128xf32>
    %82 = arith.maximumf %80, %81 : vector<16x128xf32>
    %83 = arith.truncf %82 : vector<16x128xf32> to vector<16x128xbf16>
    %c0_83 = arith.constant 0 : index
    %c0_84 = arith.constant 0 : index
    %c0_85 = arith.constant 0 : index
    %84 = vector.load %arg2[%c0_83, %c0_84, %c0_85] : memref<9x64x64xbf16, #tpu.memory_space<vmem>>, vector<1x64x64xbf16>
    %85 = vector.shape_cast %84 : vector<1x64x64xbf16> to vector<64x64xbf16>
    %cst_86 = arith.constant dense<0.000000e+00> : vector<64x128xf32>
    %86 = tpu.matmul %85, %46, %cst_86 {dimension_numbers = #tpu.dot_dimension_numbers<[1], [0], [0], [1], [0, 0, 1, 1], [], []>} : vector<64x64xbf16>, vector<64x128xbf16>, vector<64x128xf32> -> vector<64x128xf32>
    %c1_87 = arith.constant 1 : index
    %c0_88 = arith.constant 0 : index
    %c0_89 = arith.constant 0 : index
    %87 = vector.load %arg2[%c1_87, %c0_88, %c0_89] : memref<9x64x64xbf16, #tpu.memory_space<vmem>>, vector<1x64x64xbf16>
    %88 = vector.shape_cast %87 : vector<1x64x64xbf16> to vector<64x64xbf16>
    %cst_90 = arith.constant dense<0.000000e+00> : vector<64x128xf32>
    %89 = tpu.matmul %88, %46, %cst_90 {dimension_numbers = #tpu.dot_dimension_numbers<[1], [0], [0], [1], [0, 0, 1, 1], [], []>} : vector<64x64xbf16>, vector<64x128xbf16>, vector<64x128xf32> -> vector<64x128xf32>
    %c2_91 = arith.constant 2 : index
    %c0_92 = arith.constant 0 : index
    %c0_93 = arith.constant 0 : index
    %90 = vector.load %arg2[%c2_91, %c0_92, %c0_93] : memref<9x64x64xbf16, #tpu.memory_space<vmem>>, vector<1x64x64xbf16>
    %91 = vector.shape_cast %90 : vector<1x64x64xbf16> to vector<64x64xbf16>
    %cst_94 = arith.constant dense<0.000000e+00> : vector<64x128xf32>
    %92 = tpu.matmul %91, %46, %cst_94 {dimension_numbers = #tpu.dot_dimension_numbers<[1], [0], [0], [1], [0, 0, 1, 1], [], []>} : vector<64x64xbf16>, vector<64x128xbf16>, vector<64x128xf32> -> vector<64x128xf32>
    %c3_95 = arith.constant 3 : index
    %c0_96 = arith.constant 0 : index
    %c0_97 = arith.constant 0 : index
    %93 = vector.load %arg2[%c3_95, %c0_96, %c0_97] : memref<9x64x64xbf16, #tpu.memory_space<vmem>>, vector<1x64x64xbf16>
    %94 = vector.shape_cast %93 : vector<1x64x64xbf16> to vector<64x64xbf16>
    %cst_98 = arith.constant dense<0.000000e+00> : vector<64x128xf32>
    %95 = tpu.matmul %94, %46, %cst_98 {dimension_numbers = #tpu.dot_dimension_numbers<[1], [0], [0], [1], [0, 0, 1, 1], [], []>} : vector<64x64xbf16>, vector<64x128xbf16>, vector<64x128xf32> -> vector<64x128xf32>
    %c4_99 = arith.constant 4 : index
    %c0_100 = arith.constant 0 : index
    %c0_101 = arith.constant 0 : index
    %96 = vector.load %arg2[%c4_99, %c0_100, %c0_101] : memref<9x64x64xbf16, #tpu.memory_space<vmem>>, vector<1x64x64xbf16>
    %97 = vector.shape_cast %96 : vector<1x64x64xbf16> to vector<64x64xbf16>
    %cst_102 = arith.constant dense<0.000000e+00> : vector<64x128xf32>
    %98 = tpu.matmul %97, %46, %cst_102 {dimension_numbers = #tpu.dot_dimension_numbers<[1], [0], [0], [1], [0, 0, 1, 1], [], []>} : vector<64x64xbf16>, vector<64x128xbf16>, vector<64x128xf32> -> vector<64x128xf32>
    %c5_103 = arith.constant 5 : index
    %c0_104 = arith.constant 0 : index
    %c0_105 = arith.constant 0 : index
    %99 = vector.load %arg2[%c5_103, %c0_104, %c0_105] : memref<9x64x64xbf16, #tpu.memory_space<vmem>>, vector<1x64x64xbf16>
    %100 = vector.shape_cast %99 : vector<1x64x64xbf16> to vector<64x64xbf16>
    %cst_106 = arith.constant dense<0.000000e+00> : vector<64x128xf32>
    %101 = tpu.matmul %100, %46, %cst_106 {dimension_numbers = #tpu.dot_dimension_numbers<[1], [0], [0], [1], [0, 0, 1, 1], [], []>} : vector<64x64xbf16>, vector<64x128xbf16>, vector<64x128xf32> -> vector<64x128xf32>
    %c6_107 = arith.constant 6 : index
    %c0_108 = arith.constant 0 : index
    %c0_109 = arith.constant 0 : index
    %102 = vector.load %arg2[%c6_107, %c0_108, %c0_109] : memref<9x64x64xbf16, #tpu.memory_space<vmem>>, vector<1x64x64xbf16>
    %103 = vector.shape_cast %102 : vector<1x64x64xbf16> to vector<64x64xbf16>
    %cst_110 = arith.constant dense<0.000000e+00> : vector<64x128xf32>
    %104 = tpu.matmul %103, %46, %cst_110 {dimension_numbers = #tpu.dot_dimension_numbers<[1], [0], [0], [1], [0, 0, 1, 1], [], []>} : vector<64x64xbf16>, vector<64x128xbf16>, vector<64x128xf32> -> vector<64x128xf32>
    %c7_111 = arith.constant 7 : index
    %c0_112 = arith.constant 0 : index
    %c0_113 = arith.constant 0 : index
    %105 = vector.load %arg2[%c7_111, %c0_112, %c0_113] : memref<9x64x64xbf16, #tpu.memory_space<vmem>>, vector<1x64x64xbf16>
    %106 = vector.shape_cast %105 : vector<1x64x64xbf16> to vector<64x64xbf16>
    %cst_114 = arith.constant dense<0.000000e+00> : vector<64x128xf32>
    %107 = tpu.matmul %106, %46, %cst_114 {dimension_numbers = #tpu.dot_dimension_numbers<[1], [0], [0], [1], [0, 0, 1, 1], [], []>} : vector<64x64xbf16>, vector<64x128xbf16>, vector<64x128xf32> -> vector<64x128xf32>
    %c8_115 = arith.constant 8 : index
    %c0_116 = arith.constant 0 : index
    %c0_117 = arith.constant 0 : index
    %108 = vector.load %arg2[%c8_115, %c0_116, %c0_117] : memref<9x64x64xbf16, #tpu.memory_space<vmem>>, vector<1x64x64xbf16>
    %109 = vector.shape_cast %108 : vector<1x64x64xbf16> to vector<64x64xbf16>
    %cst_118 = arith.constant dense<0.000000e+00> : vector<64x128xf32>
    %110 = tpu.matmul %109, %46, %cst_118 {dimension_numbers = #tpu.dot_dimension_numbers<[1], [0], [0], [1], [0, 0, 1, 1], [], []>} : vector<64x64xbf16>, vector<64x128xbf16>, vector<64x128xf32> -> vector<64x128xf32>
    %111 = tpu.concatenate %86, %89, %92, %95, %98, %101, %104, %107, %110 in 1 : vector<64x128xf32>, vector<64x128xf32>, vector<64x128xf32>, vector<64x128xf32>, vector<64x128xf32>, vector<64x128xf32>, vector<64x128xf32>, vector<64x128xf32>, vector<64x128xf32> -> vector<64x1152xf32>
    %112 = arith.truncf %111 : vector<64x1152xf32> to vector<64x1152xbf16>
    %c0_119 = arith.constant 0 : index
    %c0_120 = arith.constant 0 : index
    %113 = vector.load %arg11[%c0_119, %c0_120] : memref<1152x128xbf16, #tpu.memory_space<vmem>>, vector<1152x128xbf16>
    %cst_121 = arith.constant dense<0.000000e+00> : vector<64x128xf32>
    %114 = tpu.matmul %112, %113, %cst_121 {dimension_numbers = #tpu.dot_dimension_numbers<[1], [0], [0], [1], [0, 0, 1, 1], [], []>} : vector<64x1152xbf16>, vector<1152x128xbf16>, vector<64x128xf32> -> vector<64x128xf32>
    %c0_122 = arith.constant 0 : index
    %c0_123 = arith.constant 0 : index
    %115 = vector.load %arg12[%c0_122, %c0_123] : memref<1x128xf32, #tpu.memory_space<vmem>>, vector<1x128xf32>
    %116 = vector.broadcast %115 : vector<1x128xf32> to vector<64x128xf32>
    %117 = arith.addf %114, %116 : vector<64x128xf32>
    %cst_124 = arith.constant 0.000000e+00 : f32
    %118 = vector.broadcast %cst_124 : f32 to vector<64x128xf32>
    %119 = arith.maximumf %117, %118 : vector<64x128xf32>
    %120 = arith.truncf %119 : vector<64x128xf32> to vector<64x128xbf16>
    %c0_125 = arith.constant 0 : index
    %c0_126 = arith.constant 0 : index
    %c0_127 = arith.constant 0 : index
    %121 = vector.load %arg4[%c0_125, %c0_126, %c0_127] : memref<9x16x16xbf16, #tpu.memory_space<vmem>>, vector<1x16x16xbf16>
    %122 = vector.shape_cast %121 : vector<1x16x16xbf16> to vector<16x16xbf16>
    %cst_128 = arith.constant dense<0.000000e+00> : vector<16x128xf32>
    %123 = tpu.matmul %122, %83, %cst_128 {dimension_numbers = #tpu.dot_dimension_numbers<[1], [0], [0], [1], [0, 0, 1, 1], [], []>} : vector<16x16xbf16>, vector<16x128xbf16>, vector<16x128xf32> -> vector<16x128xf32>
    %c1_129 = arith.constant 1 : index
    %c0_130 = arith.constant 0 : index
    %c0_131 = arith.constant 0 : index
    %124 = vector.load %arg4[%c1_129, %c0_130, %c0_131] : memref<9x16x16xbf16, #tpu.memory_space<vmem>>, vector<1x16x16xbf16>
    %125 = vector.shape_cast %124 : vector<1x16x16xbf16> to vector<16x16xbf16>
    %cst_132 = arith.constant dense<0.000000e+00> : vector<16x128xf32>
    %126 = tpu.matmul %125, %83, %cst_132 {dimension_numbers = #tpu.dot_dimension_numbers<[1], [0], [0], [1], [0, 0, 1, 1], [], []>} : vector<16x16xbf16>, vector<16x128xbf16>, vector<16x128xf32> -> vector<16x128xf32>
    %c2_133 = arith.constant 2 : index
    %c0_134 = arith.constant 0 : index
    %c0_135 = arith.constant 0 : index
    %127 = vector.load %arg4[%c2_133, %c0_134, %c0_135] : memref<9x16x16xbf16, #tpu.memory_space<vmem>>, vector<1x16x16xbf16>
    %128 = vector.shape_cast %127 : vector<1x16x16xbf16> to vector<16x16xbf16>
    %cst_136 = arith.constant dense<0.000000e+00> : vector<16x128xf32>
    %129 = tpu.matmul %128, %83, %cst_136 {dimension_numbers = #tpu.dot_dimension_numbers<[1], [0], [0], [1], [0, 0, 1, 1], [], []>} : vector<16x16xbf16>, vector<16x128xbf16>, vector<16x128xf32> -> vector<16x128xf32>
    %c3_137 = arith.constant 3 : index
    %c0_138 = arith.constant 0 : index
    %c0_139 = arith.constant 0 : index
    %130 = vector.load %arg4[%c3_137, %c0_138, %c0_139] : memref<9x16x16xbf16, #tpu.memory_space<vmem>>, vector<1x16x16xbf16>
    %131 = vector.shape_cast %130 : vector<1x16x16xbf16> to vector<16x16xbf16>
    %cst_140 = arith.constant dense<0.000000e+00> : vector<16x128xf32>
    %132 = tpu.matmul %131, %83, %cst_140 {dimension_numbers = #tpu.dot_dimension_numbers<[1], [0], [0], [1], [0, 0, 1, 1], [], []>} : vector<16x16xbf16>, vector<16x128xbf16>, vector<16x128xf32> -> vector<16x128xf32>
    %c4_141 = arith.constant 4 : index
    %c0_142 = arith.constant 0 : index
    %c0_143 = arith.constant 0 : index
    %133 = vector.load %arg4[%c4_141, %c0_142, %c0_143] : memref<9x16x16xbf16, #tpu.memory_space<vmem>>, vector<1x16x16xbf16>
    %134 = vector.shape_cast %133 : vector<1x16x16xbf16> to vector<16x16xbf16>
    %cst_144 = arith.constant dense<0.000000e+00> : vector<16x128xf32>
    %135 = tpu.matmul %134, %83, %cst_144 {dimension_numbers = #tpu.dot_dimension_numbers<[1], [0], [0], [1], [0, 0, 1, 1], [], []>} : vector<16x16xbf16>, vector<16x128xbf16>, vector<16x128xf32> -> vector<16x128xf32>
    %c5_145 = arith.constant 5 : index
    %c0_146 = arith.constant 0 : index
    %c0_147 = arith.constant 0 : index
    %136 = vector.load %arg4[%c5_145, %c0_146, %c0_147] : memref<9x16x16xbf16, #tpu.memory_space<vmem>>, vector<1x16x16xbf16>
    %137 = vector.shape_cast %136 : vector<1x16x16xbf16> to vector<16x16xbf16>
    %cst_148 = arith.constant dense<0.000000e+00> : vector<16x128xf32>
    %138 = tpu.matmul %137, %83, %cst_148 {dimension_numbers = #tpu.dot_dimension_numbers<[1], [0], [0], [1], [0, 0, 1, 1], [], []>} : vector<16x16xbf16>, vector<16x128xbf16>, vector<16x128xf32> -> vector<16x128xf32>
    %c6_149 = arith.constant 6 : index
    %c0_150 = arith.constant 0 : index
    %c0_151 = arith.constant 0 : index
    %139 = vector.load %arg4[%c6_149, %c0_150, %c0_151] : memref<9x16x16xbf16, #tpu.memory_space<vmem>>, vector<1x16x16xbf16>
    %140 = vector.shape_cast %139 : vector<1x16x16xbf16> to vector<16x16xbf16>
    %cst_152 = arith.constant dense<0.000000e+00> : vector<16x128xf32>
    %141 = tpu.matmul %140, %83, %cst_152 {dimension_numbers = #tpu.dot_dimension_numbers<[1], [0], [0], [1], [0, 0, 1, 1], [], []>} : vector<16x16xbf16>, vector<16x128xbf16>, vector<16x128xf32> -> vector<16x128xf32>
    %c7_153 = arith.constant 7 : index
    %c0_154 = arith.constant 0 : index
    %c0_155 = arith.constant 0 : index
    %142 = vector.load %arg4[%c7_153, %c0_154, %c0_155] : memref<9x16x16xbf16, #tpu.memory_space<vmem>>, vector<1x16x16xbf16>
    %143 = vector.shape_cast %142 : vector<1x16x16xbf16> to vector<16x16xbf16>
    %cst_156 = arith.constant dense<0.000000e+00> : vector<16x128xf32>
    %144 = tpu.matmul %143, %83, %cst_156 {dimension_numbers = #tpu.dot_dimension_numbers<[1], [0], [0], [1], [0, 0, 1, 1], [], []>} : vector<16x16xbf16>, vector<16x128xbf16>, vector<16x128xf32> -> vector<16x128xf32>
    %c8_157 = arith.constant 8 : index
    %c0_158 = arith.constant 0 : index
    %c0_159 = arith.constant 0 : index
    %145 = vector.load %arg4[%c8_157, %c0_158, %c0_159] : memref<9x16x16xbf16, #tpu.memory_space<vmem>>, vector<1x16x16xbf16>
    %146 = vector.shape_cast %145 : vector<1x16x16xbf16> to vector<16x16xbf16>
    %cst_160 = arith.constant dense<0.000000e+00> : vector<16x128xf32>
    %147 = tpu.matmul %146, %83, %cst_160 {dimension_numbers = #tpu.dot_dimension_numbers<[1], [0], [0], [1], [0, 0, 1, 1], [], []>} : vector<16x16xbf16>, vector<16x128xbf16>, vector<16x128xf32> -> vector<16x128xf32>
    %148 = tpu.concatenate %123, %126, %129, %132, %135, %138, %141, %144, %147 in 1 : vector<16x128xf32>, vector<16x128xf32>, vector<16x128xf32>, vector<16x128xf32>, vector<16x128xf32>, vector<16x128xf32>, vector<16x128xf32>, vector<16x128xf32>, vector<16x128xf32> -> vector<16x1152xf32>
    %149 = arith.truncf %148 : vector<16x1152xf32> to vector<16x1152xbf16>
    %c0_161 = arith.constant 0 : index
    %c0_162 = arith.constant 0 : index
    %150 = vector.load %arg11[%c0_161, %c0_162] : memref<1152x128xbf16, #tpu.memory_space<vmem>>, vector<1152x128xbf16>
    %cst_163 = arith.constant dense<0.000000e+00> : vector<16x128xf32>
    %151 = tpu.matmul %149, %150, %cst_163 {dimension_numbers = #tpu.dot_dimension_numbers<[1], [0], [0], [1], [0, 0, 1, 1], [], []>} : vector<16x1152xbf16>, vector<1152x128xbf16>, vector<16x128xf32> -> vector<16x128xf32>
    %c0_164 = arith.constant 0 : index
    %c0_165 = arith.constant 0 : index
    %152 = vector.load %arg12[%c0_164, %c0_165] : memref<1x128xf32, #tpu.memory_space<vmem>>, vector<1x128xf32>
    %153 = vector.broadcast %152 : vector<1x128xf32> to vector<16x128xf32>
    %154 = arith.addf %151, %153 : vector<16x128xf32>
    %cst_166 = arith.constant 0.000000e+00 : f32
    %155 = vector.broadcast %cst_166 : f32 to vector<16x128xf32>
    %156 = arith.maximumf %154, %155 : vector<16x128xf32>
    %157 = arith.truncf %156 : vector<16x128xf32> to vector<16x128xbf16>
    %c0_167 = arith.constant 0 : index
    %c0_168 = arith.constant 0 : index
    %c0_169 = arith.constant 0 : index
    %158 = vector.load %arg15[%c0_167, %c0_168, %c0_169] : memref<1x64x128xbf16, #tpu.memory_space<vmem>>, vector<1x64x128xbf16>
    %159 = vector.shape_cast %158 : vector<1x64x128xbf16> to vector<64x128xbf16>
    %160 = vector.shape_cast %46 : vector<64x128xbf16> to vector<1x64x128xbf16>
    tpu.vector_store %arg15[%c0_167, %c0_168, %c0_169], %160 {strides = array<i32>} : memref<1x64x128xbf16, #tpu.memory_space<vmem>>, vector<1x64x128xbf16>,
    %c0_170 = arith.constant 0 : index
    %c0_171 = arith.constant 0 : index
    %161 = vector.load %arg13[%c0_170, %c0_171] : memref<128x128xbf16, #tpu.memory_space<vmem>>, vector<128x128xbf16>
    %cst_172 = arith.constant dense<0.000000e+00> : vector<64x128xf32>
    %162 = tpu.matmul %120, %161, %cst_172 {dimension_numbers = #tpu.dot_dimension_numbers<[1], [0], [0], [1], [0, 0, 1, 1], [], []>} : vector<64x128xbf16>, vector<128x128xbf16>, vector<64x128xf32> -> vector<64x128xf32>
    %c0_173 = arith.constant 0 : index
    %c0_174 = arith.constant 0 : index
    %163 = vector.load %arg14[%c0_173, %c0_174] : memref<1x128xf32, #tpu.memory_space<vmem>>, vector<1x128xf32>
    %164 = vector.broadcast %163 : vector<1x128xf32> to vector<64x128xf32>
    %165 = arith.addf %162, %164 : vector<64x128xf32>
    %166 = arith.truncf %165 : vector<64x128xf32> to vector<64x128xbf16>
    %c0_175 = arith.constant 0 : index
    %c0_176 = arith.constant 0 : index
    %c0_177 = arith.constant 0 : index
    %167 = vector.load %arg16[%c0_175, %c0_176, %c0_177] : memref<1x64x128xbf16, #tpu.memory_space<vmem>>, vector<1x64x128xbf16>
    %168 = vector.shape_cast %167 : vector<1x64x128xbf16> to vector<64x128xbf16>
    %169 = vector.shape_cast %166 : vector<64x128xbf16> to vector<1x64x128xbf16>
    tpu.vector_store %arg16[%c0_175, %c0_176, %c0_177], %169 {strides = array<i32>} : memref<1x64x128xbf16, #tpu.memory_space<vmem>>, vector<1x64x128xbf16>,
    %c0_178 = arith.constant 0 : index
    %c0_179 = arith.constant 0 : index
    %170 = vector.load %arg13[%c0_178, %c0_179] : memref<128x128xbf16, #tpu.memory_space<vmem>>, vector<128x128xbf16>
    %cst_180 = arith.constant dense<0.000000e+00> : vector<16x128xf32>
    %171 = tpu.matmul %157, %170, %cst_180 {dimension_numbers = #tpu.dot_dimension_numbers<[1], [0], [0], [1], [0, 0, 1, 1], [], []>} : vector<16x128xbf16>, vector<128x128xbf16>, vector<16x128xf32> -> vector<16x128xf32>
    %c0_181 = arith.constant 0 : index
    %c0_182 = arith.constant 0 : index
    %172 = vector.load %arg14[%c0_181, %c0_182] : memref<1x128xf32, #tpu.memory_space<vmem>>, vector<1x128xf32>
    %173 = vector.broadcast %172 : vector<1x128xf32> to vector<16x128xf32>
    %174 = arith.addf %171, %173 : vector<16x128xf32>
    %175 = arith.truncf %174 : vector<16x128xf32> to vector<16x128xbf16>
    %c0_183 = arith.constant 0 : index
    %c0_184 = arith.constant 0 : index
    %c0_185 = arith.constant 0 : index
    %176 = vector.load %arg17[%c0_183, %c0_184, %c0_185] : memref<1x16x128xbf16, #tpu.memory_space<vmem>>, vector<1x16x128xbf16>
    %177 = vector.shape_cast %176 : vector<1x16x128xbf16> to vector<16x128xbf16>
    %178 = vector.shape_cast %175 : vector<16x128xbf16> to vector<1x16x128xbf16>
    tpu.vector_store %arg17[%c0_183, %c0_184, %c0_185], %178 {strides = array<i32>} : memref<1x16x128xbf16, #tpu.memory_space<vmem>>, vector<1x16x128xbf16>,
    return
  }
  func.func @transform_0(%arg0: i32) -> (i32, i32, i32) {
    %c0_i32 = arith.constant 0 : i32
    %c0_i32_0 = arith.constant 0 : i32
    %c0_i32_1 = arith.constant 0 : i32
    return %arg0, %c0_i32, %c0_i32_0 : i32, i32, i32
  }
  func.func @transform_1(%arg0: i32) -> (i32, i32, i32) {
    %c0_i32 = arith.constant 0 : i32
    %c0_i32_0 = arith.constant 0 : i32
    %c0_i32_1 = arith.constant 0 : i32
    %c0_i32_2 = arith.constant 0 : i32
    return %c0_i32, %c0_i32_0, %c0_i32_1 : i32, i32, i32
  }
  func.func @transform_2(%arg0: i32) -> (i32, i32, i32) {
    %c0_i32 = arith.constant 0 : i32
    %c0_i32_0 = arith.constant 0 : i32
    %c0_i32_1 = arith.constant 0 : i32
    %c0_i32_2 = arith.constant 0 : i32
    return %c0_i32, %c0_i32_0, %c0_i32_1 : i32, i32, i32
  }
  func.func @transform_3(%arg0: i32) -> (i32, i32, i32) {
    %c0_i32 = arith.constant 0 : i32
    %c0_i32_0 = arith.constant 0 : i32
    %c0_i32_1 = arith.constant 0 : i32
    %c0_i32_2 = arith.constant 0 : i32
    return %c0_i32, %c0_i32_0, %c0_i32_1 : i32, i32, i32
  }
  func.func @transform_4(%arg0: i32) -> (i32, i32) {
    %c0_i32 = arith.constant 0 : i32
    %c0_i32_0 = arith.constant 0 : i32
    %c0_i32_1 = arith.constant 0 : i32
    return %c0_i32, %c0_i32_0 : i32, i32
  }
  func.func @transform_5(%arg0: i32) -> (i32, i32) {
    %c0_i32 = arith.constant 0 : i32
    %c0_i32_0 = arith.constant 0 : i32
    %c0_i32_1 = arith.constant 0 : i32
    return %c0_i32, %c0_i32_0 : i32, i32
  }
  func.func @transform_6(%arg0: i32) -> (i32, i32) {
    %c0_i32 = arith.constant 0 : i32
    %c0_i32_0 = arith.constant 0 : i32
    %c0_i32_1 = arith.constant 0 : i32
    return %c0_i32, %c0_i32_0 : i32, i32
  }
  func.func @transform_7(%arg0: i32) -> (i32, i32) {
    %c0_i32 = arith.constant 0 : i32
    %c0_i32_0 = arith.constant 0 : i32
    %c0_i32_1 = arith.constant 0 : i32
    return %c0_i32, %c0_i32_0 : i32, i32
  }
  func.func @transform_8(%arg0: i32) -> (i32, i32) {
    %c0_i32 = arith.constant 0 : i32
    %c0_i32_0 = arith.constant 0 : i32
    %c0_i32_1 = arith.constant 0 : i32
    return %c0_i32, %c0_i32_0 : i32, i32
  }
  func.func @transform_9(%arg0: i32) -> (i32, i32) {
    %c0_i32 = arith.constant 0 : i32
    %c0_i32_0 = arith.constant 0 : i32
    %c0_i32_1 = arith.constant 0 : i32
    return %c0_i32, %c0_i32_0 : i32, i32
  }
  func.func @transform_10(%arg0: i32) -> (i32, i32) {
    %c0_i32 = arith.constant 0 : i32
    %c0_i32_0 = arith.constant 0 : i32
    %c0_i32_1 = arith.constant 0 : i32
    return %c0_i32, %c0_i32_0 : i32, i32
  }
  func.func @transform_11(%arg0: i32) -> (i32, i32) {
    %c0_i32 = arith.constant 0 : i32
    %c0_i32_0 = arith.constant 0 : i32
    %c0_i32_1 = arith.constant 0 : i32
    return %c0_i32, %c0_i32_0 : i32, i32
  }
  func.func @transform_12(%arg0: i32) -> (i32, i32) {
    %c0_i32 = arith.constant 0 : i32
    %c0_i32_0 = arith.constant 0 : i32
    %c0_i32_1 = arith.constant 0 : i32
    return %c0_i32, %c0_i32_0 : i32, i32
  }
  func.func @transform_13(%arg0: i32) -> (i32, i32) {
    %c0_i32 = arith.constant 0 : i32
    %c0_i32_0 = arith.constant 0 : i32
    %c0_i32_1 = arith.constant 0 : i32
    return %c0_i32, %c0_i32_0 : i32, i32
  }
  func.func @transform_14(%arg0: i32) -> (i32, i32, i32) {
    %c0_i32 = arith.constant 0 : i32
    %c0_i32_0 = arith.constant 0 : i32
    %c0_i32_1 = arith.constant 0 : i32
    return %arg0, %c0_i32, %c0_i32_0 : i32, i32, i32
  }
  func.func @transform_15(%arg0: i32) -> (i32, i32, i32) {
    %c0_i32 = arith.constant 0 : i32
    %c0_i32_0 = arith.constant 0 : i32
    %c0_i32_1 = arith.constant 0 : i32
    return %arg0, %c0_i32, %c0_i32_0 : i32, i32, i32
  }
  func.func @transform_16(%arg0: i32) -> (i32, i32, i32) {
    %c0_i32 = arith.constant 0 : i32
    %c0_i32_0 = arith.constant 0 : i32
    %c0_i32_1 = arith.constant 0 : i32
    return %arg0, %c0_i32, %c0_i32_0 : i32, i32, i32
  }
}

module attributes {stable_mosaic.version = 11 : i64} {
  func.func @_box_head_kernel(%arg0: i32, %arg1: memref<128x1568xbf16, #tpu.memory_space<vmem>>, %arg2: memref<1568x128xbf16, #tpu.memory_space<vmem>>, %arg3: memref<1x128xf32, #tpu.memory_space<vmem>>, %arg4: memref<128x128xbf16, #tpu.memory_space<vmem>>, %arg5: memref<1x128xf32, #tpu.memory_space<vmem>>, %arg6: memref<128x128xbf16, #tpu.memory_space<vmem>>, %arg7: memref<1x128xf32, #tpu.memory_space<vmem>>, %arg8: memref<128x128xf32, #tpu.memory_space<vmem>>) attributes {dimension_semantics = [#tpu.dimension_semantics<parallel>], iteration_bounds = array<i64: 1>, scalar_prefetch = 0 : i64, scratch_operands = 0 : i64, tpu.core_type = #tpu.core_type<tc>, window_params = [{transform_indices = @transform_0, window_bounds = array<i64: 128, 1568>}, {pipeline_mode = #tpu.pipeline_mode<synchronous>, transform_indices = @transform_1, window_bounds = array<i64: 1568, 128>}, {pipeline_mode = #tpu.pipeline_mode<synchronous>, transform_indices = @transform_2, window_bounds = array<i64: 1, 128>}, {pipeline_mode = #tpu.pipeline_mode<synchronous>, transform_indices = @transform_3, window_bounds = array<i64: 128, 128>}, {pipeline_mode = #tpu.pipeline_mode<synchronous>, transform_indices = @transform_4, window_bounds = array<i64: 1, 128>}, {pipeline_mode = #tpu.pipeline_mode<synchronous>, transform_indices = @transform_5, window_bounds = array<i64: 128, 128>}, {pipeline_mode = #tpu.pipeline_mode<synchronous>, transform_indices = @transform_6, window_bounds = array<i64: 1, 128>}, {transform_indices = @transform_7, window_bounds = array<i64: 128, 128>}]} {
    %c0 = arith.constant 0 : index
    %c0_0 = arith.constant 0 : index
    %0 = vector.load %arg1[%c0, %c0_0] : memref<128x1568xbf16, #tpu.memory_space<vmem>>, vector<128x1568xbf16>
    %c0_1 = arith.constant 0 : index
    %c0_2 = arith.constant 0 : index
    %1 = vector.load %arg2[%c0_1, %c0_2] : memref<1568x128xbf16, #tpu.memory_space<vmem>>, vector<1568x128xbf16>
    %cst = arith.constant dense<0.000000e+00> : vector<128x128xf32>
    %2 = tpu.matmul %0, %1, %cst {dimension_numbers = #tpu.dot_dimension_numbers<[1], [0], [0], [1], [0, 0, 1, 1], [], []>} : vector<128x1568xbf16>, vector<1568x128xbf16>, vector<128x128xf32> -> vector<128x128xf32>
    %c0_3 = arith.constant 0 : index
    %c0_4 = arith.constant 0 : index
    %3 = vector.load %arg3[%c0_3, %c0_4] : memref<1x128xf32, #tpu.memory_space<vmem>>, vector<1x128xf32>
    %4 = vector.broadcast %3 : vector<1x128xf32> to vector<128x128xf32>
    %5 = arith.addf %2, %4 : vector<128x128xf32>
    %cst_5 = arith.constant 0.000000e+00 : f32
    %6 = vector.broadcast %cst_5 : f32 to vector<128x128xf32>
    %7 = arith.maximumf %5, %6 : vector<128x128xf32>
    %8 = arith.truncf %7 : vector<128x128xf32> to vector<128x128xbf16>
    %c0_6 = arith.constant 0 : index
    %c0_7 = arith.constant 0 : index
    %9 = vector.load %arg4[%c0_6, %c0_7] : memref<128x128xbf16, #tpu.memory_space<vmem>>, vector<128x128xbf16>
    %cst_8 = arith.constant dense<0.000000e+00> : vector<128x128xf32>
    %10 = tpu.matmul %8, %9, %cst_8 {dimension_numbers = #tpu.dot_dimension_numbers<[1], [0], [0], [1], [0, 0, 1, 1], [], []>} : vector<128x128xbf16>, vector<128x128xbf16>, vector<128x128xf32> -> vector<128x128xf32>
    %c0_9 = arith.constant 0 : index
    %c0_10 = arith.constant 0 : index
    %11 = vector.load %arg5[%c0_9, %c0_10] : memref<1x128xf32, #tpu.memory_space<vmem>>, vector<1x128xf32>
    %12 = vector.broadcast %11 : vector<1x128xf32> to vector<128x128xf32>
    %13 = arith.addf %10, %12 : vector<128x128xf32>
    %cst_11 = arith.constant 0.000000e+00 : f32
    %14 = vector.broadcast %cst_11 : f32 to vector<128x128xf32>
    %15 = arith.maximumf %13, %14 : vector<128x128xf32>
    %16 = arith.truncf %15 : vector<128x128xf32> to vector<128x128xbf16>
    %c0_12 = arith.constant 0 : index
    %c0_13 = arith.constant 0 : index
    %17 = vector.load %arg6[%c0_12, %c0_13] : memref<128x128xbf16, #tpu.memory_space<vmem>>, vector<128x128xbf16>
    %cst_14 = arith.constant dense<0.000000e+00> : vector<128x128xf32>
    %18 = tpu.matmul %16, %17, %cst_14 {dimension_numbers = #tpu.dot_dimension_numbers<[1], [0], [0], [1], [0, 0, 1, 1], [], []>} : vector<128x128xbf16>, vector<128x128xbf16>, vector<128x128xf32> -> vector<128x128xf32>
    %c0_15 = arith.constant 0 : index
    %c0_16 = arith.constant 0 : index
    %19 = vector.load %arg7[%c0_15, %c0_16] : memref<1x128xf32, #tpu.memory_space<vmem>>, vector<1x128xf32>
    %20 = vector.broadcast %19 : vector<1x128xf32> to vector<128x128xf32>
    %21 = arith.addf %18, %20 : vector<128x128xf32>
    %c0_17 = arith.constant 0 : index
    %c0_18 = arith.constant 0 : index
    %22 = vector.load %arg8[%c0_17, %c0_18] : memref<128x128xf32, #tpu.memory_space<vmem>>, vector<128x128xf32>
    tpu.vector_store %arg8[%c0_17, %c0_18], %21 {strides = array<i32>} : memref<128x128xf32, #tpu.memory_space<vmem>>, vector<128x128xf32>,
    return
  }
  func.func @transform_0(%arg0: i32) -> (i32, i32) {
    %c0_i32 = arith.constant 0 : i32
    %c0_i32_0 = arith.constant 0 : i32
    return %arg0, %c0_i32 : i32, i32
  }
  func.func @transform_1(%arg0: i32) -> (i32, i32) {
    %c0_i32 = arith.constant 0 : i32
    %c0_i32_0 = arith.constant 0 : i32
    %c0_i32_1 = arith.constant 0 : i32
    return %c0_i32, %c0_i32_0 : i32, i32
  }
  func.func @transform_2(%arg0: i32) -> (i32, i32) {
    %c0_i32 = arith.constant 0 : i32
    %c0_i32_0 = arith.constant 0 : i32
    %c0_i32_1 = arith.constant 0 : i32
    return %c0_i32, %c0_i32_0 : i32, i32
  }
  func.func @transform_3(%arg0: i32) -> (i32, i32) {
    %c0_i32 = arith.constant 0 : i32
    %c0_i32_0 = arith.constant 0 : i32
    %c0_i32_1 = arith.constant 0 : i32
    return %c0_i32, %c0_i32_0 : i32, i32
  }
  func.func @transform_4(%arg0: i32) -> (i32, i32) {
    %c0_i32 = arith.constant 0 : i32
    %c0_i32_0 = arith.constant 0 : i32
    %c0_i32_1 = arith.constant 0 : i32
    return %c0_i32, %c0_i32_0 : i32, i32
  }
  func.func @transform_5(%arg0: i32) -> (i32, i32) {
    %c0_i32 = arith.constant 0 : i32
    %c0_i32_0 = arith.constant 0 : i32
    %c0_i32_1 = arith.constant 0 : i32
    return %c0_i32, %c0_i32_0 : i32, i32
  }
  func.func @transform_6(%arg0: i32) -> (i32, i32) {
    %c0_i32 = arith.constant 0 : i32
    %c0_i32_0 = arith.constant 0 : i32
    %c0_i32_1 = arith.constant 0 : i32
    return %c0_i32, %c0_i32_0 : i32, i32
  }
  func.func @transform_7(%arg0: i32) -> (i32, i32) {
    %c0_i32 = arith.constant 0 : i32
    %c0_i32_0 = arith.constant 0 : i32
    return %arg0, %c0_i32 : i32, i32
  }
}

</mosaic_0001>

<bundles_post_ra>
// kernel: generalized_rcnn_forward.2
= control target key start
LH: loop header
LB: loop body
LE: loop exit
PB: predicated region body
PF: predicated region fallthrough
CT: control target
= control target key end

     0   :  { %s11471_s0 = inlined_call_operand.vmem [shape: bf16[2,64,32], index: 0, kind: input, shape index: {}]   ;;  %s11472_s1 = inlined_call_operand.vmem [shape: bf16[9,64,64], index: 1, kind: input, shape index: {}]   ;;  %s11473_s2 = inlined_call_operand.hbm [shape: bf16[9,16,64], index: 2, kind: input, shape index: {}]   ;;  %s11474_s3 = inlined_call_operand.hbm [shape: bf16[9,16,16], index: 3, kind: input, shape index: {}]   ;;  %s11475_s4 = inlined_call_operand.hbm [shape: bf16[32,128], index: 4, kind: input, shape index: {}]   ;;  %s11476_s5 = inlined_call_operand.hbm [shape: f32[1,128], index: 5, kind: input, shape index: {}]   ;;  %s11477_s6 = inlined_call_operand.vmem [shape: bf16[1152,128], index: 6, kind: input, shape index: {}]   ;;  %s11478_s7 = inlined_call_operand.hbm [shape: f32[1,128], index: 7, kind: input, shape index: {}]   ;;  %s11479_s8 = inlined_call_operand.vmem [shape: bf16[1152,128], index: 8, kind: input, shape index: {}]   ;;  %s11480_s9 = inlined_call_operand.hbm [shape: f32[1,128], index: 9, kind: input, shape index: {}]   ;;  %s11481_s10 = inlined_call_operand.vmem [shape: bf16[1152,128], index: 10, kind: input, shape index: {}]   ;;  %s11482_s11 = inlined_call_operand.hbm [shape: f32[1,128], index: 11, kind: input, shape index: {}]   ;;  %s11483_s12 = inlined_call_operand.hbm [shape: bf16[128,128], index: 12, kind: input, shape index: {}]   ;;  %s11484_s13 = inlined_call_operand.hbm [shape: f32[1,128], index: 13, kind: input, shape index: {}]   ;;  %s11485_s14 = inlined_call_operand.vmem [shape: bf16[2,64,128], index: 14, kind: output, shape index: {0}]   ;;  %s11486_s15 = inlined_call_operand.vmem [shape: bf16[2,64,128], index: 15, kind: output, shape index: {1}]   ;;  %s11487_s16 = inlined_call_operand.vmem [shape: bf16[2,16,128], index: 16, kind: output, shape index: {2}]  }
   0x1   :  { %11526 = sst [smem:[#allocation56_spill]] %s11471_s0 }
   0x2   :  { %11527 = sst [smem:[#allocation57_spill]] %s11487_s16 }
   0x3   :  { %22 = vsyncpa [#allocation3], 0 }
   0x4   :  { %23 = vsyncpa [#allocation5], 0 }
   0x5   :  { %24 = vsyncpa [#allocation8], 0 }
   0x6   :  { %25 = vsyncpa [#allocation11], 0 }
   0x7   :  { %26 = vsyncpa [#allocation14], 0  ;;  %s9493_s21 = smov 0  }
   0x8 LB: > { %11528 = sst [smem:[#allocation21_spill]] %s9393_s21  ;;  %s9499_s22 = sadd.s32 4294967295, %s9393_s21   ;;  %s9393_s21 = sphi %s9493_s21, %s32_s21  }
   0x9   : > { %p6758_p0 = scmp.ge.s32.totalorder %s9393_s21, 1  ;;  %p414_p1 = scmp.lt.s32.totalorder %s9393_s21, 3 }
   0xa   : > { %p11489_p2 = scmp.eq.s32.totalorder %s9499_s22, 0  ;;  %s9395_s24 = smov [#allocation4]  }
   0xb   : > { %p9504_p3 = pnand %p6758_p0, %p414_p1  ;;  %s442_s25 = sshll.u32 %s9395_s24, 4  ;;  %s443_s25 = int_to_ptr.vmem [resolvable:$true] %s442_s25 }
   0xc   : > { %s9396_s26 = smov [#allocation7]   ;;  %s9397_s29 = smov [#allocation10]  }
   0xd   : > { %p8738_p4 = pneg %p9504_p3  ;;  %s469_s27 = sshll.u32 %s9396_s26, 4  ;;  %s9510_s27 = int_to_ptr.vmem [resolvable:$true] %s469_s27 }
   0xe   : > { %s497_s30 = sshll.u32 %s9397_s29, 4  ;;  %s9398_s0 = smov [#allocation13]   ;;  %s9518_s30 = int_to_ptr.vmem [resolvable:$true] %s497_s30 }
   0xf   : > { %p9514_p5 = pnand %p11489_p2, %p8738_p4  ;;  %s9520_s17 = sshll.u32 %s9398_s0, 4  ;;  %s522_s17 = int_to_ptr.vmem [resolvable:$true] %s9520_s17 }
  0x10   : > { %s9144_s19 = scalar_lea.vmem %s443_s25, 1152  ;;  %p9152_p10 = scmp.lt.s32.totalorder %s443_s25, %s443_s25 }
  0x11   : > { %p9524_p6 = pneg %p9514_p5  ;;  %p9145_p7 = scmp.ne.s32.totalorder %s443_s25, %s9144_s19 }
  0x12   : > { %p9153_p11 = scmp.lt.s32.totalorder %s9144_s19, %s9144_s19 }
  0x13   : > { %p9147_p8 = pnand %p9145_p7, %p9524_p6 }
  0x14   : > { %p9154_p12 = por %p9153_p11, %p9152_p10 }
  0x15   : > { %p9148_p9 = pneg %p9147_p8 }
  0x17   : > { %p9155_p13 = pnand %p9154_p12, %p9148_p9 }
  0x19   : > { %9158 = shalt.err (!%p9155_p13)
}
  0x1a   : > { %s9399_s20 = smov 64   ;;  %s9400_s24 = smov 4  }
  0x1b   : > { %8744 = dma.hbm_to_vmem [thread:$0]  (!%p9514_p5), %s11474_s3, 1152, %s443_s25, [#allocation5], %s9399_s20, %s9399_s20, %s9400_s24  }
  0x1c   : > { %s9170_s0 = scalar_lea.vmem %s9510_s27, 16  ;;  %s9177_s19 = scalar_lea.vmem %s9510_s27, 32 }
  0x1d   : > { %p9171_p0 = scmp.ne.s32.totalorder %s9510_s27, %s9170_s0  ;;  %p9178_p7 = scmp.lt.s32.totalorder %s9510_s27, %s9510_s27 }
  0x1e   : > { %p9179_p8 = scmp.lt.s32.totalorder %s9177_s19, %s9170_s0 }
  0x1f   : > { %p9173_p1 = pnand %p9171_p0, %p9524_p6 }
  0x20   : > { %p9180_p9 = por %p9179_p8, %p9178_p7 }
  0x21   : > { %p9174_p4 = pneg %p9173_p1 }
  0x23   : > { %p9181_p10 = pnand %p9180_p9, %p9174_p4 }
  0x25   : > { %9184 = shalt.err (!%p9181_p10)
}
  0x26   : > { %8750 = dma.hbm_to_vmem [thread:$0]  (!%p9514_p5), %s11476_s5, 16, %s9510_s27, [#allocation8]  }
  0x27   : > { %s9196_s25 = scalar_lea.vmem %s9518_s30, 16  ;;  %s9203_s26 = scalar_lea.vmem %s9518_s30, 32 }
  0x28   : > { %p9197_p11 = scmp.ne.s32.totalorder %s9518_s30, %s9196_s25  ;;  %p9204_p0 = scmp.lt.s32.totalorder %s9518_s30, %s9518_s30 }
  0x29   : > { %p9205_p1 = scmp.lt.s32.totalorder %s9203_s26, %s9196_s25 }
  0x2a   : > { %p9199_p12 = pnand %p9197_p11, %p9524_p6 }
  0x2b   : > { %p9206_p4 = por %p9205_p1, %p9204_p0 }
  0x2c   : > { %p9200_p13 = pneg %p9199_p12 }
  0x2e   : > { %p9207_p7 = pnand %p9206_p4, %p9200_p13 }
  0x30   : > { %9210 = shalt.err (!%p9207_p7)
}
  0x31   : > { %8756 = dma.hbm_to_vmem [thread:$0]  (!%p9514_p5), %s11480_s9, 16, %s9518_s30, [#allocation11]  }
  0x32   : > { %s9222_s27 = scalar_lea.vmem %s522_s17, 1024  ;;  %p9230_p11 = scmp.lt.s32.totalorder %s522_s17, %s522_s17 }
  0x33   : > { %p9223_p8 = scmp.ne.s32.totalorder %s522_s17, %s9222_s27  ;;  %p9231_p12 = scmp.lt.s32.totalorder %s9222_s27, %s9222_s27 }
  0x35   : > { %p9225_p9 = pnand %p9223_p8, %p9524_p6  ;;  %p9232_p0 = por %p9231_p12, %p9230_p11 }
  0x37   : > { %p9226_p10 = pneg %p9225_p9 }
  0x39   : > { %p9233_p13 = pnand %p9232_p0, %p9226_p10 }
  0x3b   : > { %9236 = shalt.err (!%p9233_p13)
}
  0x3c   : > { %8762 = dma.hbm_to_vmem [thread:$0]  (!%p9514_p5), %s11483_s12, 1024, %s522_s17, [#allocation14], %s9399_s20, %s9399_s20, %s9400_s24  }
  0x3d   : > { %s9401_s30 = smov [#allocation2]   ;;  %s9402_s25 = smov [#allocation6]  }
  0x3e   : > { %s429_s19 = sshll.u32 %s9401_s30, 4  ;;  %s455_s26 = sshll.u32 %s9402_s25, 4  ;;  %s430_s19 = int_to_ptr.vmem [resolvable:$true] %s429_s19  ;;  %s456_s26 = int_to_ptr.vmem [resolvable:$true] %s455_s26 }
  0x3f   : > { %s9248_s16 = scalar_lea.vmem %s430_s19, 1152  ;;  %p9256_p8 = scmp.lt.s32.totalorder %s430_s19, %s430_s19 }
  0x40   : > { %p9249_p1 = scmp.ne.s32.totalorder %s430_s19, %s9248_s16  ;;  %p9257_p9 = scmp.lt.s32.totalorder %s9248_s16, %s9248_s16 }
  0x42   : > { %p9251_p4 = pnand %p9249_p1, %p9524_p6  ;;  %p9258_p10 = por %p9257_p9, %p9256_p8 }
  0x44   : > { %p9252_p7 = pneg %p9251_p4 }
  0x46   : > { %p9259_p11 = pnand %p9258_p10, %p9252_p7 }
  0x48   : > { %9262 = shalt.err (!%p9259_p11)
}
  0x49   : > { %8741 = dma.hbm_to_vmem [thread:$0]  (!%p9514_p5), %s11473_s2, 1152, %s430_s19, [#allocation3], %s9399_s20, %s9399_s20, %s9400_s24  }
  0x4a   : > { %s9274_s27 = scalar_lea.vmem %s456_s26, 256  ;;  %p9282_p1 = scmp.lt.s32.totalorder %s456_s26, %s456_s26 }
  0x4b   : > { %p9275_p12 = scmp.ne.s32.totalorder %s456_s26, %s9274_s27  ;;  %p9283_p4 = scmp.lt.s32.totalorder %s9274_s27, %s9274_s27 }
  0x4d   : > { %p9277_p0 = pnand %p9275_p12, %p9524_p6  ;;  %p9284_p7 = por %p9283_p4, %p9282_p1 }
  0x4f   : > { %p9278_p13 = pneg %p9277_p0 }
  0x51   : > { %p9285_p8 = pnand %p9284_p7, %p9278_p13 }
  0x53   : > { %9288 = shalt.err (!%p9285_p8)
}
  0x54   : > { %8747 = dma.hbm_to_vmem [thread:$0]  (!%p9514_p5), %s11475_s4, 256, %s456_s26, [#allocation5], %s9399_s20, %s9399_s20, %s9400_s24  }
  0x55   : > { %s9403_s30 = smov [#allocation9]   ;;  %s9404_s25 = smov [#allocation12]  }
  0x56   : > { %s483_s19 = sshll.u32 %s9403_s30, 4  ;;  %s511_s16 = sshll.u32 %s9404_s25, 4  ;;  %s484_s19 = int_to_ptr.vmem [resolvable:$true] %s483_s19  ;;  %s512_s16 = int_to_ptr.vmem [resolvable:$true] %s511_s16 }
  0x57   : > { %s9300_s17 = scalar_lea.vmem %s484_s19, 16  ;;  %s9307_s21 = scalar_lea.vmem %s484_s19, 32 }
  0x58   : > { %p9301_p9 = scmp.ne.s32.totalorder %s484_s19, %s9300_s17  ;;  %p9308_p12 = scmp.lt.s32.totalorder %s484_s19, %s484_s19 }
  0x59   : > { %p9309_p0 = scmp.lt.s32.totalorder %s9307_s21, %s9300_s17 }
  0x5a   : > { %p9303_p10 = pnand %p9301_p9, %p9524_p6 }
  0x5b   : > { %p9310_p13 = por %p9309_p0, %p9308_p12 }
  0x5c   : > { %p9304_p11 = pneg %p9303_p10 }
  0x5e   : > { %p9311_p1 = pnand %p9310_p13, %p9304_p11 }
  0x60   : > { %9314 = shalt.err (!%p9311_p1)
}
  0x61   : > { %8753 = dma.hbm_to_vmem [thread:$0]  (!%p9514_p5), %s11478_s7, 16, %s484_s19, [#allocation8]  }
  0x62   : > { %s9326_s24 = scalar_lea.vmem %s512_s16, 16  ;;  %s9333_s26 = scalar_lea.vmem %s512_s16, 32 }
  0x63   : > { %p9327_p4 = scmp.ne.s32.totalorder %s512_s16, %s9326_s24  ;;  %p9334_p9 = scmp.lt.s32.totalorder %s512_s16, %s512_s16 }
  0x64   : > { %p9335_p10 = scmp.lt.s32.totalorder %s9333_s26, %s9326_s24 }
  0x65   : > { %p9329_p7 = pnand %p9327_p4, %p9524_p6 }
  0x66   : > { %p9336_p2 = por %p9335_p10, %p9334_p9 }
  0x67   : > { %p9330_p8 = pneg %p9329_p7 }
  0x69   : > { %p9337_p12 = pnand %p9336_p2, %p9330_p8 }
  0x6b   : > { %9340 = shalt.err (!%p9337_p12)
}
  0x6c   : > { %8759 = dma.hbm_to_vmem [thread:$0]  (!%p9514_p5), %s11482_s11, 16, %s512_s16, [#allocation11]  }
  0x6d   : > { %s9405_s30 = smov [#allocation15]  }
  0x6e   : > { %s535_s19 = sshll.u32 %s9405_s30, 4  ;;  %s536_s19 = int_to_ptr.vmem [resolvable:$true] %s535_s19 }
  0x6f   : > { %s9352_s25 = scalar_lea.vmem %s536_s19, 16  ;;  %s9359_s17 = scalar_lea.vmem %s536_s19, 32 }
  0x70   : > { %p9353_p11 = scmp.ne.s32.totalorder %s536_s19, %s9352_s25  ;;  %p9360_p1 = scmp.lt.s32.totalorder %s536_s19, %s536_s19 }
  0x71   : > { %p9361_p4 = scmp.lt.s32.totalorder %s9359_s17, %s9352_s25 }
  0x72   : > { %p9355_p0 = pnand %p9353_p11, %p9524_p6 }
  0x73   : > { %p9362_p2 = por %p9361_p4, %p9360_p1 }
  0x74   : > { %p9356_p13 = pneg %p9355_p0 }
  0x76   : > { %p9363_p7 = pnand %p9362_p2, %p9356_p13 }
  0x78   : > { %9366 = shalt.err (!%p9363_p7)
}
  0x79   : > { %8765 = dma.hbm_to_vmem [thread:$0]  (!%p9514_p5), %s11484_s13, 16, %s536_s19, [#allocation14]  }
  0x7a   : > { %556 = sbr.rel (%p9504_p3) target bundleno = 2117 (0x845), region = 76 }
  0x7f   : > { %p11532_p8 = scmp.eq.s32.totalorder %s9499_s22, 0 }
  0x81   : > { %9372 = dma.done.wait (%p11532_p8), [#allocation3], 1152   ;;  %p11533_p6 = pmov %p11532_p8 }
  0x83   : > { %9374 = vsyncadd (%p11533_p6), [#allocation3], 4294966144  ;;  %p11534_p9 = pmov %p11533_p6 }
  0x84   : > { %p11535_p10 = pmov %p11533_p6 }
  0x85   : > { %9376 = dma.done.wait (%p11534_p9), [#allocation5], 1408  }
  0x86   : > { %9378 = vsyncadd (%p11535_p10), [#allocation5], 4294965888  ;;  %p11536_p12 = pmov %p11533_p6 }
  0x87   : > { %p11537_p5 = pmov %p11533_p6 }
  0x88   : > { %9380 = dma.done.wait (%p11536_p12), [#allocation8], 32  }
  0x89   : > { %9382 = vsyncadd (%p11537_p5), [#allocation8], 4294967264  ;;  %p11538_p3 = pmov %p11537_p5 }
  0x8b   : > { %9384 = dma.done.wait (%p11538_p3), [#allocation11], 32   ;;  %p11539_p11 = pmov %p11538_p3 }
  0x8c   : > { %p11540_p0 = pmov %p11538_p3 }
  0x8d   : > { %9386 = vsyncadd (%p11539_p11), [#allocation11], 4294967264 }
  0x8e   : > { %9388 = dma.done.wait (%p11540_p0), [#allocation14], 1040   ;;  %p11541_p13 = pmov %p11540_p0 }
  0x8f   : > { %p648_p1 = scmp.lt.s32.totalorder %s9499_s22, 1  ;;  %s11542_s16 = sld [smem:[#allocation56_spill]]  ;;  %v8805_v0 = vld [vmem:[#allocation6 + $0x8] sm:$0xff]   ;;  %v8806_v1 = vld [vmem:[#allocation6] sm:$0xff]   ;;  %vm720_vm0 = vcmask 261120   ;;  %v8811_v6 = vld [vmem:[%s11472_s1] sm:$0xff]  }
  0x90   : > { %9390 = vsyncadd (%p11541_p13), [#allocation14], 4294966256  ;;  %8108 = vmatprep.subr.bf16.mxu1 %v8805_v0  ;;  %v8812_v7 = vld [vmem:[%s11472_s1 + $0x20] sm:$0xff]   ;;  %vm838_vm1 = vcmask 523264   ;;  %v8813_v37 = vld [vmem:[%s11472_s1 + $0x8] sm:$0xff]   ;;  %vm9407_vm2 = vmmov 0  }
  0x91   : > { %s11617_s22 = smov (!%p648_p1, %s9499_s22), 1  ;;  %8109 = vmatpush3.bf16.msra.mxu1 %v8805_v0  ;;  %8144 = vmatprep.mubr.msk.bf16.mxu0 %vm838_vm1, %v8812_v7  ;;  %v6787_v13 = vld [vmem:[#allocation7] ss:$0 sm:$0xff]  ;;  %v8814_v38 = vld [vmem:[%s11472_s1 + $0x28] sm:$0xff]   ;;  %v8815_v39 = vld [vmem:[%s11472_s1 + $0x10] sm:$0xff]   ;;  %vm5535_vm3 = vcmask 130048  }
  0x92   : > { %s9643_s23 = sshll.u32 %s11617_s22, 5  ;;  %8110 = vmatprep.subr.bf16.mxu1 %v8806_v1  ;;  %v8816_v40 = vld [vmem:[%s11472_s1 + $0x30] sm:$0xff]   ;;  %v8817_v41 = vld [vmem:[%s11472_s1 + $0x18] sm:$0xff]   ;;  %v8819_v43 = vld [vmem:[%s11472_s1 + $0x40] sm:$0xff]   ;;  %s11614_s28 = sld [smem:[#allocation57_spill]] }
  0x93   : > { %v8818_v42 = vld [vmem:[%s11472_s1 + $0x38] sm:$0xff]   ;;  %v8820_v44 = vld [vmem:[%s11472_s1 + $0x60] sm:$0xff]   ;;  %v8821_v45 = vld [vmem:[%s11472_s1 + $0x48] sm:$0xff]   ;;  %s10198_s21 = scalar_lea.vmem %s11485_s14, %s9643_s23  ;;  %s662_s17 = scalar_lea.vmem %s11486_s15, %s9643_s23 }
  0x94   : > { %v8822_v46 = vld [vmem:[%s11472_s1 + $0x68] sm:$0xff]   ;;  %v8823_v47 = vld [vmem:[%s11472_s1 + $0x50] sm:$0xff]   ;;  %v8825_v49 = vld [vmem:[%s11472_s1 + $0x58] sm:$0xff]  }
  0x95   : > { %s652_s20 = scalar_lea.vmem %s11542_s16, %s9643_s23  ;;  %8111 = vmatpush3.bf16.msra.mxu1 %v8806_v1  ;;  %v8824_v48 = vld [vmem:[%s11472_s1 + $0x70] sm:$0xff]   ;;  %v8826_v50 = vld [vmem:[%s11472_s1 + $0x78] sm:$0xff]   ;;  %v8827_v51 = vld [vmem:[%s11472_s1 + $0x80] sm:$0xff]   ;;  %s7266_s23 = sshll.u32 %s11617_s22, 3 }
  0x96   : > { %v8807_v2 = vld [vmem:[%s652_s20] sm:$0xff]   ;;  %v8808_v3 = vld [vmem:[%s652_s20 + $0x8] sm:$0xff]   ;;  %v8809_v4 = vld [vmem:[%s652_s20 + $0x10] sm:$0xff]  }
  0x97   : > { %8112 = vmatprep.mubr.msk.bf16.mxu1 %vm720_vm0, %v8807_v2  ;;  %v8810_v5 = vld [vmem:[%s652_s20 + $0x18] sm:$0xff]   ;;  %v8828_v52 = vld [vmem:[%s11472_s1 + $0xa0] sm:$0xff]   ;;  %v8829_v53 = vld [vmem:[%s11472_s1 + $0x88] sm:$0xff]  }
  0x98   : > { %8113 = vmatmul.mubr.msk.bf16.vlgmr.msra.gmra.mxu1 %vm720_vm0, %v8808_v3  ;;  %v8830_v54 = vld [vmem:[%s11472_s1 + $0xa8] sm:$0xff]   ;;  %v8831_v55 = vld [vmem:[%s11472_s1 + $0x90] sm:$0xff]   ;;  %v8833_v57 = vld [vmem:[%s11472_s1 + $0x98] sm:$0xff]   ;;  %s667_s18 = scalar_lea.vmem %s11614_s28, %s7266_s23 }
  0x99   : > { %8116 = vmatprep.mubr.msk.bf16.mxu1 %vm720_vm0, %v8809_v4  ;;  %v8832_v56 = vld [vmem:[%s11472_s1 + $0xb0] sm:$0xff]   ;;  %v8834_v58 = vld [vmem:[%s11472_s1 + $0xb8] sm:$0xff]   ;;  %v8835_v59 = vld [vmem:[%s11472_s1 + $0xc0] sm:$0xff]  }
  0x9a   : > { %v8836_v60 = vld [vmem:[%s11472_s1 + $0xe0] sm:$0xff]   ;;  %v8847_v61 = vld [vmem:[%s11477_s6 + $0x78] sm:$0xff]   ;;  %v8837_v62 = vld [vmem:[%s11472_s1 + $0xc8] sm:$0xff]  }
  0x9b   : > { %v8838_v63 = vld [vmem:[%s11472_s1 + $0xe8] sm:$0xff]   ;;  %v8839_v0 = vld [vmem:[%s11472_s1 + $0xd0] sm:$0xff]   ;;  %v8848_v2 = vld [vmem:[%s11477_s6 + $0x38] sm:$0xff]  }
  0x9c   : > { %v8841_v1 = vld [vmem:[%s11472_s1 + $0xf0] sm:$0xff]   ;;  %v8843_v7 = vld [vmem:[%s11472_s1 + $0x100] sm:$0xff]  }
  0x9d   : > { %v8849_v3 = vld [vmem:[%s11477_s6 + $0x70] sm:$0xff]  }
  0x9e   : > { %v8850_v4 = vld [vmem:[%s11477_s6 + $0x30] sm:$0xff]  }
  0xa0   : > { %8117 = vmatmul.mubr.msk.bf16.gmra.mxu1 %vm720_vm0, %v8810_v5  ;;  %v8840_v5 = vld [vmem:[%s11472_s1 + $0xd8] sm:$0xff]  }
  0xa1   : > { %8128 = vmatprep.mubr.msk.bf16.mxu1 %vm838_vm1, %v8811_v6  ;;  %v8842_v6 = vld [vmem:[%s11472_s1 + $0xf8] sm:$0xff]  }
 0x158   : > { %v8114_v8 = vpop.f32.mrf.mxu1 }
 0x159   : > { %v776_v24 = vadd.f32 %v8114_v8, %v6787_v13  ;;  %v8851_v8 = vld [vmem:[%s11477_s6 + $0x68] sm:$0xff]  }
 0x15a   : > { %v767_v9 = vpop.f32.mrf.mxu1 }
 0x15b   : > { %v800_v31 = vmax.f32 %v776_v24, 0.0  ;;  %v768_v32 = vadd.f32 %v6787_v13, %v767_v9  ;;  %v8852_v9 = vld [vmem:[%s11477_s6 + $0x28] sm:$0xff]  }
 0x15c   : > { %v8115_v10 = vpop.f32.mrf.mxu1  ;;  %v8863_v24 = vld [vmem:[%s11477_s6 + $0x48] sm:$0xff]  }
 0x15d   : > { %v779_v20 = vadd.f32 %v8115_v10, %v6787_v13  ;;  %v798_v35 = vmax.f32 %v768_v32, 0.0  ;;  %v8853_v10 = vld [vmem:[%s11477_s6 + $0x60] sm:$0xff]   ;;  %v8872_v32 = vld [vmem:[%s11477_s6 + $0x178] sm:$0xff]  }
 0x15e   : > { %v770_v11 = vpop.f32.mrf.mxu1 }
 0x15f   : > { %v801_v28 = vmax.f32 %v779_v20, 0.0  ;;  %v771_v29 = vadd.f32 %v6787_v13, %v770_v11  ;;  %v8856_v11 = vld [vmem:[%s11477_s6 + $0xf8] sm:$0xff]   ;;  %v8862_v20 = vld [vmem:[%s11477_s6 + $0xb0] sm:$0xff]  }
 0x160   : > { %v8118_v12 = vpop.f32.mrf.mxu1 }
 0x161   : > { %v792_v15 = vadd.f32 %v8118_v12, %v6787_v13  ;;  %v9667_v33 = vpack.c.bf16 %v801_v28, %v800_v31  ;;  %v799_v34 = vmax.f32 %v771_v29, 0.0  ;;  %v8854_v12 = vld [vmem:[%s11477_s6 + $0x20] sm:$0xff]  }
 0x162   : > { %v783_v14 = vpop.f32.mrf.mxu1  ;;  %v8867_v28 = vld [vmem:[%s11477_s6 + $0x40] sm:$0xff]  }
 0x163   : > { %v784_v17 = vadd.f32 %v6787_v13, %v783_v14  ;;  %v804_v21 = vmax.f32 %v792_v15, 0.0  ;;  %v9673_v36 = vpack.c.bf16 %v799_v34, %v798_v35  ;;  %v8855_v14 = vld [vmem:[%s11477_s6 + $0x58] sm:$0xff]   ;;  %v8845_v15 = vld [vmem:[%s11472_s1 + $0x110] sm:$0xff]   ;;  %v8870_v29 = vld [vmem:[%s11477_s6 + $0xa0] sm:$0xff]  }
 0x164   : > { %v8119_v16 = vpop.f32.mrf.mxu1  ;;  %v8869_v31 = vld [vmem:[%s11477_s6] sm:$0xff]   ;;  %v8875_v34 = vld [vmem:[%s11477_s6 + $0xd0] sm:$0xff]  }
 0x165   : > { %v795_v18 = vadd.f32 %v8119_v16, %v6787_v13  ;;  %v802_v25 = vmax.f32 %v784_v17, 0.0  ;;  %v8858_v16 = vld [vmem:[%s11477_s6 + $0xb8] sm:$0xff]   ;;  %v8860_v17 = vld [vmem:[%s11477_s6 + $0xf0] sm:$0xff]  }
 0x166   : > { %v786_v19 = vpop.f32.mrf.mxu1  ;;  %v8877_v35 = vld [vmem:[%s11477_s6 + $0x90] sm:$0xff]  }
 0x167   : > { %v805_v22 = vmax.f32 %v795_v18, 0.0  ;;  %v787_v23 = vadd.f32 %v6787_v13, %v786_v19  ;;  %v8844_v13 = vld [vmem:[%s11472_s1 + $0x108] sm:$0xff]   ;;  %v8857_v18 = vld [vmem:[%s11477_s6 + $0x18] sm:$0xff]   ;;  %v8859_v19 = vld [vmem:[%s11477_s6 + $0x50] sm:$0xff]  }
 0x169   : > { %v9657_v26 = vpack.c.bf16 %v805_v22, %v804_v21  ;;  %v803_v27 = vmax.f32 %v787_v23, 0.0  ;;  %v8864_v21 = vld [vmem:[%s11477_s6 + $0xe8] sm:$0xff]   ;;  %v8861_v22 = vld [vmem:[%s11477_s6 + $0x10] sm:$0xff]   ;;  %v8846_v23 = vld [vmem:[%s11472_s1 + $0x118] sm:$0xff]  }
 0x16b   : > { %v9659_v30 = vpack.c.bf16 %v803_v27, %v802_v25  ;;  %8120 = vmatprep.subr.bf16.mxu1 %v9657_v26  ;;  %8136 = vmatprep.subr.bf16.mxu0 %v9657_v26  ;;  %v8866_v25 = vld [vmem:[%s11477_s6 + $0xa8] sm:$0xff]  }
 0x16c   : > { %8121 = vmatpush3.bf16.msra.mxu1 %v9657_v26  ;;  %8137 = vmatpush3.bf16.msra.mxu0 %v9657_v26  ;;  %v8865_v27 = vld [vmem:[%s11477_s6 + $0x8] sm:$0xff]  }
 0x16d   : > { %8122 = vmatprep.subr.bf16.mxu1 %v9659_v30  ;;  %8138 = vmatprep.subr.bf16.mxu0 %v9659_v30 }
 0x170   : > { %8123 = vmatpush3.bf16.msra.mxu1 %v9659_v30  ;;  %8139 = vmatpush3.bf16.msra.mxu0 %v9659_v30 }
 0x171   : > { %8124 = vmatprep.subr.bf16.mxu1 %v9667_v33  ;;  %8140 = vmatprep.subr.bf16.mxu0 %v9667_v33 }
 0x174   : > { %8125 = vmatpush3.bf16.msra.mxu1 %v9667_v33  ;;  %8141 = vmatpush3.bf16.msra.mxu0 %v9667_v33 }
 0x175   : > { %8126 = vmatprep.subr.bf16.mxu1 %v9673_v36  ;;  %8142 = vmatprep.subr.bf16.mxu0 %v9673_v36 }
 0x178   : > { %8127 = vmatpush3.bf16.msra.mxu1 %v9673_v36  ;;  %8143 = vmatpush3.bf16.msra.mxu0 %v9673_v36 }
 0x179   : > { %8152 = vmatprep.subr.bf16.mxu1 %v9657_v26  ;;  %8168 = vmatprep.subr.bf16.mxu0 %v9657_v26 }
 0x17b   : > { %8129 = vmatmul.mubr.msk.bf16.vlgmr.msra.gmra.mxu1 %vm838_vm1, %v8813_v37  ;;  %8145 = vmatmul.mubr.msk.bf16.vlgmr.msra.gmra.mxu0 %vm838_vm1, %v8814_v38  ;;  %v8881_v37 = vld [vmem:[%s11477_s6 + $0x88] sm:$0xff]   ;;  %v8883_v38 = vld [vmem:[%s11477_s6 + $0xc0] sm:$0xff]  }
 0x17c   : > { %8153 = vmatpush3.bf16.msra.mxu1 %v9657_v26  ;;  %8169 = vmatpush3.bf16.msra.mxu0 %v9657_v26 }
 0x17d   : > { %8154 = vmatprep.subr.bf16.mxu1 %v9659_v30  ;;  %8170 = vmatprep.subr.bf16.mxu0 %v9659_v30 }
 0x17e   : > { %8132 = vmatprep.mubr.msk.bf16.mxu1 %vm838_vm1, %v8815_v39  ;;  %8148 = vmatprep.mubr.msk.bf16.mxu0 %vm838_vm1, %v8816_v40  ;;  %v8885_v39 = vld [vmem:[%s11477_s6 + $0x80] sm:$0xff]   ;;  %v8888_v40 = vld [vmem:[%s11477_s6 + $0x1f8] sm:$0xff]  }
 0x180   : > { %8155 = vmatpush3.bf16.msra.mxu1 %v9659_v30  ;;  %8171 = vmatpush3.bf16.msra.mxu0 %v9659_v30 }
 0x181   : > { %8156 = vmatprep.subr.bf16.mxu1 %v9667_v33  ;;  %8172 = vmatprep.subr.bf16.mxu0 %v9667_v33 }
 0x183   : > { %8133 = vmatmul.mubr.msk.bf16.gmra.mxu1 %vm838_vm1, %v8817_v41  ;;  %8149 = vmatmul.mubr.msk.bf16.gmra.mxu0 %vm838_vm1, %v8818_v42 }
 0x184   : > { %8157 = vmatpush3.bf16.msra.mxu1 %v9667_v33  ;;  %8173 = vmatpush3.bf16.msra.mxu0 %v9667_v33 }
 0x185   : > { %8158 = vmatprep.subr.bf16.mxu1 %v9673_v36  ;;  %8174 = vmatprep.subr.bf16.mxu0 %v9673_v36 }
 0x186   : > { %8160 = vmatprep.mubr.msk.bf16.mxu1 %vm838_vm1, %v8819_v43  ;;  %8176 = vmatprep.mubr.msk.bf16.mxu0 %vm838_vm1, %v8820_v44 }
 0x188   : > { %8159 = vmatpush3.bf16.msra.mxu1 %v9673_v36  ;;  %8175 = vmatpush3.bf16.msra.mxu0 %v9673_v36 }
 0x189   : > { %8184 = vmatprep.subr.bf16.mxu1 %v9657_v26  ;;  %8200 = vmatprep.subr.bf16.mxu0 %v9657_v26 }
 0x18b   : > { %8161 = vmatmul.mubr.msk.bf16.vlgmr.msra.gmra.mxu1 %vm838_vm1, %v8821_v45  ;;  %8177 = vmatmul.mubr.msk.bf16.vlgmr.msra.gmra.mxu0 %vm838_vm1, %v8822_v46 }
 0x18c   : > { %8185 = vmatpush3.bf16.msra.mxu1 %v9657_v26  ;;  %8201 = vmatpush3.bf16.msra.mxu0 %v9657_v26 }
 0x18d   : > { %8186 = vmatprep.subr.bf16.mxu1 %v9659_v30  ;;  %8202 = vmatprep.subr.bf16.mxu0 %v9659_v30 }
 0x18e   : > { %8164 = vmatprep.mubr.msk.bf16.mxu1 %vm838_vm1, %v8823_v47  ;;  %8180 = vmatprep.mubr.msk.bf16.mxu0 %vm838_vm1, %v8824_v48 }
 0x190   : > { %8187 = vmatpush3.bf16.msra.mxu1 %v9659_v30  ;;  %8203 = vmatpush3.bf16.msra.mxu0 %v9659_v30 }
 0x191   : > { %8188 = vmatprep.subr.bf16.mxu1 %v9667_v33  ;;  %8204 = vmatprep.subr.bf16.mxu0 %v9667_v33 }
 0x193   : > { %8165 = vmatmul.mubr.msk.bf16.gmra.mxu1 %vm838_vm1, %v8825_v49  ;;  %8181 = vmatmul.mubr.msk.bf16.gmra.mxu0 %vm838_vm1, %v8826_v50 }
 0x194   : > { %8189 = vmatpush3.bf16.msra.mxu1 %v9667_v33  ;;  %8205 = vmatpush3.bf16.msra.mxu0 %v9667_v33 }
 0x195   : > { %8190 = vmatprep.subr.bf16.mxu1 %v9673_v36  ;;  %8206 = vmatprep.subr.bf16.mxu0 %v9673_v36 }
 0x196   : > { %8192 = vmatprep.mubr.msk.bf16.mxu1 %vm838_vm1, %v8827_v51  ;;  %8208 = vmatprep.mubr.msk.bf16.mxu0 %vm838_vm1, %v8828_v52  ;;  %v8874_v51 = vld [vmem:[%s11477_s6 + $0x138] sm:$0xff]  }
 0x198   : > { %8191 = vmatpush3.bf16.msra.mxu1 %v9673_v36  ;;  %8207 = vmatpush3.bf16.msra.mxu0 %v9673_v36 }
 0x199   : > { %8216 = vmatprep.subr.bf16.mxu1 %v9657_v26  ;;  %8232 = vmatprep.subr.bf16.mxu0 %v9657_v26 }
 0x19b   : > { %8193 = vmatmul.mubr.msk.bf16.vlgmr.msra.gmra.mxu1 %vm838_vm1, %v8829_v53  ;;  %8209 = vmatmul.mubr.msk.bf16.vlgmr.msra.gmra.mxu0 %vm838_vm1, %v8830_v54  ;;  %v8876_v54 = vld [vmem:[%s11477_s6 + $0x170] sm:$0xff]  }
 0x19c   : > { %8217 = vmatpush3.bf16.msra.mxu1 %v9657_v26  ;;  %8233 = vmatpush3.bf16.msra.mxu0 %v9657_v26 }
 0x19d   : > { %8218 = vmatprep.subr.bf16.mxu1 %v9659_v30  ;;  %8234 = vmatprep.subr.bf16.mxu0 %v9659_v30 }
 0x19e   : > { %8196 = vmatprep.mubr.msk.bf16.mxu1 %vm838_vm1, %v8831_v55  ;;  %8212 = vmatprep.mubr.msk.bf16.mxu0 %vm838_vm1, %v8832_v56 }
 0x1a0   : > { %8219 = vmatpush3.bf16.msra.mxu1 %v9659_v30  ;;  %8235 = vmatpush3.bf16.msra.mxu0 %v9659_v30 }
 0x1a1   : > { %8220 = vmatprep.subr.bf16.mxu1 %v9667_v33  ;;  %8236 = vmatprep.subr.bf16.mxu0 %v9667_v33 }
 0x1a3   : > { %8197 = vmatmul.mubr.msk.bf16.gmra.mxu1 %vm838_vm1, %v8833_v57  ;;  %8213 = vmatmul.mubr.msk.bf16.gmra.mxu0 %vm838_vm1, %v8834_v58  ;;  %v8878_v58 = vld [vmem:[%s11477_s6 + $0x130] sm:$0xff]  }
 0x1a4   : > { %8221 = vmatpush3.bf16.msra.mxu1 %v9667_v33  ;;  %8237 = vmatpush3.bf16.msra.mxu0 %v9667_v33 }
 0x1a5   : > { %8222 = vmatprep.subr.bf16.mxu1 %v9673_v36  ;;  %8238 = vmatprep.subr.bf16.mxu0 %v9673_v36 }
 0x1a6   : > { %8224 = vmatprep.mubr.msk.bf16.mxu1 %vm838_vm1, %v8835_v59  ;;  %8240 = vmatprep.mubr.msk.bf16.mxu0 %vm838_vm1, %v8836_v60 }
 0x1a8   : > { %8223 = vmatpush3.bf16.msra.mxu1 %v9673_v36  ;;  %8239 = vmatpush3.bf16.msra.mxu0 %v9673_v36 }
 0x1a9   : > { %8248 = vmatprep.subr.bf16.mxu1 %v9657_v26  ;;  %7414 = vmatprep.subr.bf16.mxu0 %v8847_v61  ;;  %v8880_v61 = vld [vmem:[%s11477_s6 + $0x168] sm:$0xff]  }
 0x1ab   : > { %8225 = vmatmul.mubr.msk.bf16.vlgmr.msra.gmra.mxu1 %vm838_vm1, %v8837_v62  ;;  %8241 = vmatmul.mubr.msk.bf16.vlgmr.msra.gmra.mxu0 %vm838_vm1, %v8838_v63 }
 0x1ac   : > { %8249 = vmatpush3.bf16.msra.mxu1 %v9657_v26  ;;  %8228 = vmatprep.mubr.msk.bf16.mxu1 %vm838_vm1, %v8839_v0  ;;  %v8868_v26 = vld [vmem:[%s11477_s6 + $0xe0] sm:$0xff]   ;;  %v8882_v0 = vld [vmem:[%s11477_s6 + $0x128] sm:$0xff]  }
 0x1ad   : > { %8250 = vmatprep.subr.bf16.mxu1 %v9659_v30  ;;  %8244 = vmatprep.mubr.msk.bf16.mxu0 %vm838_vm1, %v8841_v1 }
 0x1ae   : > { %7415 = vmatpush3.bf16.msra.mxu0 %v8848_v2 }
 0x1af   : > { %7416 = vmatprep.subr.bf16.mxu0 %v8849_v3 }
 0x1b0   : > { %8251 = vmatpush3.bf16.msra.mxu1 %v9659_v30  ;;  %v8871_v30 = vld [vmem:[%s11477_s6 + $0xd8] sm:$0xff]  }
 0x1b1   : > { %8252 = vmatprep.subr.bf16.mxu1 %v9667_v33 }
 0x1b2   : > { %7417 = vmatpush3.bf16.msra.mxu0 %v8850_v4  ;;  %v8884_v4 = vld [vmem:[%s11477_s6 + $0x160] sm:$0xff]  }
 0x1b3   : > { %8229 = vmatmul.mubr.msk.bf16.gmra.mxu1 %vm838_vm1, %v8840_v5  ;;  %8245 = vmatmul.mubr.msk.bf16.gmra.mxu0 %vm838_vm1, %v8842_v6 }
 0x1b4   : > { %8253 = vmatpush3.bf16.msra.mxu1 %v9667_v33  ;;  %8256 = vmatprep.mubr.msk.bf16.mxu1 %vm838_vm1, %v8843_v7  ;;  %v8873_v33 = vld [vmem:[%s11477_s6 + $0x98] sm:$0xff]  }
 0x1b5   : > { %8254 = vmatprep.subr.bf16.mxu1 %v9673_v36  ;;  %7418 = vmatprep.subr.bf16.mxu0 %v8851_v8  ;;  %v8886_v8 = vld [vmem:[%s11477_s6 + $0x120] sm:$0xff]  }
 0x1b6   : > { %7419 = vmatpush3.bf16.msra.mxu0 %v8852_v9 }
 0x1b7   : > { %7420 = vmatprep.subr.bf16.mxu0 %v8853_v10 }
 0x1b8   : > { %8255 = vmatpush3.bf16.msra.mxu1 %v9673_v36  ;;  %v8879_v36 = vld [vmem:[%s11477_s6 + $0xc8] sm:$0xff]  }
 0x1b9   : > { %7454 = vmatprep.subr.bf16.mxu1 %v8856_v11  ;;  %v8887_v11 = vld [vmem:[%s11477_s6 + $0x158] sm:$0xff]  }
 0x1ba   : > { %7421 = vmatpush3.bf16.msra.mxu0 %v8854_v12 }
 0x1bb   : > { %8257 = vmatmul.mubr.msk.bf16.vlgmr.msra.gmra.mxu1 %vm838_vm1, %v8844_v13  ;;  %7422 = vmatprep.subr.bf16.mxu0 %v8855_v14 }
 0x1bc   : > { %8260 = vmatprep.mubr.msk.bf16.mxu1 %vm838_vm1, %v8845_v15  ;;  %7455 = vmatpush3.bf16.msra.mxu1 %v8858_v16 }
 0x1bd   : > { %7456 = vmatprep.subr.bf16.mxu1 %v8860_v17 }
 0x1be   : > { %7423 = vmatpush3.bf16.msra.mxu0 %v8857_v18 }
 0x1bf   : > { %7424 = vmatprep.subr.bf16.mxu0 %v8859_v19  ;;  %v8889_v19 = vld [vmem:[%s11477_s6 + $0x118] sm:$0xff]  }
 0x1c0   : > { %7457 = vmatpush3.bf16.msra.mxu1 %v8862_v20  ;;  %v8890_v20 = vld [vmem:[%s11477_s6 + $0x1b8] sm:$0xff]  }
 0x1c1   : > { %7458 = vmatprep.subr.bf16.mxu1 %v8864_v21 }
 0x1c2   : > { %7425 = vmatpush3.bf16.msra.mxu0 %v8861_v22 }
 0x1c3   : > { %8261 = vmatmul.mubr.msk.bf16.gmra.mxu1 %vm838_vm1, %v8846_v23  ;;  %7426 = vmatprep.subr.bf16.mxu0 %v8863_v24  ;;  %v8891_v23 = vld [vmem:[%s11477_s6 + $0x150] sm:$0xff]  }
 0x1c4   : > { %7459 = vmatpush3.bf16.msra.mxu1 %v8866_v25  ;;  %v8892_v24 = vld [vmem:[%s11477_s6 + $0x1f0] sm:$0xff]  }
 0x1c5   : > { %7460 = vmatprep.subr.bf16.mxu1 %v8868_v26 }
 0x1c6   : > { %7427 = vmatpush3.bf16.msra.mxu0 %v8865_v27 }
 0x1c7   : > { %7428 = vmatprep.subr.bf16.mxu0 %v8867_v28 }
 0x1c8   : > { %7461 = vmatpush3.bf16.msra.mxu1 %v8870_v29  ;;  %v8893_v29 = vld [vmem:[%s11477_s6 + $0x110] sm:$0xff]  }
 0x1c9   : > { %7462 = vmatprep.subr.bf16.mxu1 %v8871_v30  ;;  %v8894_v30 = vld [vmem:[%s11477_s6 + $0x1b0] sm:$0xff]  }
 0x1ca   : > { %7429 = vmatpush3.bf16.msra.mxu0 %v8869_v31  ;;  %v8895_v31 = vld [vmem:[%s11477_s6 + $0x148] sm:$0xff]  }
 0x1cb   : > { %7494 = vmatprep.subr.bf16.mxu0 %v8872_v32  ;;  %v8896_v32 = vld [vmem:[%s11477_s6 + $0x1e8] sm:$0xff]  }
 0x1cc   : > { %7463 = vmatpush3.bf16.msra.mxu1 %v8873_v33 }
 0x1cd   : > { %7464 = vmatprep.subr.bf16.mxu1 %v8875_v34 }
 0x1d0   : > { %7465 = vmatpush3.bf16.msra.mxu1 %v8877_v35 }
 0x1d1   : > { %7466 = vmatprep.subr.bf16.mxu1 %v8879_v36 }
 0x1d4   : > { %7467 = vmatpush3.bf16.msra.mxu1 %v8881_v37 }
 0x1d5   : > { %7468 = vmatprep.subr.bf16.mxu1 %v8883_v38 }
 0x1d8   : > { %7469 = vmatpush3.bf16.msra.mxu1 %v8885_v39  ;;  %v8897_v39 = vld [vmem:[%s11477_s6 + $0x108] sm:$0xff]  }
 0x1d9   : > { %7534 = vmatprep.subr.bf16.mxu1 %v8888_v40  ;;  %v8898_v40 = vld [vmem:[%s11477_s6 + $0x1a8] sm:$0xff]  }
 0x23b   : > { %v8130_v41 = vpop.f32.mrf.mxu1  ;;  %v8146_v42 = vpop.f32.mrf.mxu0 }
 0x23d   : > { %v885_v43 = vpop.f32.mrf.mxu1  ;;  %v991_v44 = vpop.f32.mrf.mxu0 }
 0x23f   : > { %v8131_v45 = vpop.f32.mrf.mxu1  ;;  %v8147_v46 = vpop.f32.mrf.mxu0 }
 0x240   : > { %v1774_v55 = vpack.c.bf16 %v8147_v46, %v8146_v42  ;;  %v1773_v1 = vpack.c.bf16 %v8131_v45, %v8130_v41  ;;  %v8899_v42 = vld [vmem:[%s11477_s6 + $0x140] sm:$0xff]  }
 0x241   : > { %v888_v47 = vpop.f32.mrf.mxu1  ;;  %v994_v48 = vpop.f32.mrf.mxu0 }
 0x242   : > { %v1764_v49 = vpack.c.bf16 %v888_v47, %v885_v43  ;;  %v1765_v50 = vpack.c.bf16 %v994_v48, %v991_v44  ;;  %v8900_v43 = vld [vmem:[%s11477_s6 + $0x1e0] sm:$0xff]  }
 0x243   : > { %v9978_v52 = vpop.f32.mrf.mxu1  ;;  %v8150_v53 = vpop.f32.mrf.mxu0  ;;  %v8901_v48 = vld [vmem:[%s11477_s6 + $0x100] sm:$0xff]  }
 0x244   : > { %2415 = vmatprep.mubr.bf16.mxu0 %v1765_v50  ;;  %v8903_v50 = vld [vmem:[%s11477_s6 + $0x1d8] sm:$0xff]  }
 0x245   : > { %v901_v56 = vpop.f32.mrf.mxu1  ;;  %v1007_v57 = vpop.f32.mrf.mxu0  ;;  %2416 = vmatmul.mubr.bf16.vlgmr.msra.gmra.mxu0 %v1764_v49  ;;  %v8902_v49 = vld [vmem:[%s11477_s6 + $0x1a0] sm:$0xff]  }
 0x246   : > { %2423 = vmatprep.mubr.bf16.mxu0 %v1774_v55  ;;  %7495 = vmatpush3.bf16.msra.mxu0 %v8874_v51 }
 0x247   : > { %v9986_v59 = vpop.f32.mrf.mxu1  ;;  %v8151_v60 = vpop.f32.mrf.mxu0  ;;  %7496 = vmatprep.subr.bf16.mxu0 %v8876_v54 }
 0x248   : > { %v1792_v21 = vpack.c.bf16 %v8151_v60, %v8150_v53  ;;  %v1791_v35 = vpack.c.bf16 %v9986_v59, %v9978_v52  ;;  %v8904_v53 = vld [vmem:[%s11477_s6 + $0x238] sm:$0xff]  }
 0x249   : > { %v904_v62 = vpop.f32.mrf.mxu1  ;;  %v1010_v63 = vpop.f32.mrf.mxu0  ;;  %v8905_v59 = vld [vmem:[%s11477_s6 + $0x198] sm:$0xff]  }
 0x24a   : > { %7497 = vmatpush3.bf16.msra.mxu0 %v8878_v58  ;;  %v1783_v5 = vpack.c.bf16 %v1010_v63, %v1007_v57  ;;  %v1782_v16 = vpack.c.bf16 %v904_v62, %v901_v56 }
 0x24b   : > { %v9994_v2 = vpop.f32.mrf.mxu1  ;;  %v8178_v3 = vpop.f32.mrf.mxu0  ;;  %7498 = vmatprep.subr.bf16.mxu0 %v8880_v61  ;;  %v8906_v61 = vld [vmem:[%s11477_s6 + $0x1d0] sm:$0xff]  }
 0x24d   : > { %v1097_v6 = vpop.f32.mrf.mxu1  ;;  %v1203_v7 = vpop.f32.mrf.mxu0  ;;  %2424 = vmatmul.mubr.bf16.gmra.mxu0 %v1773_v1  ;;  %v8907_v1 = vld [vmem:[%s11477_s6 + $0x230] sm:$0xff]  }
 0x24e   : > { %2431 = vmatprep.mubr.bf16.mxu0 %v1783_v5  ;;  %7499 = vmatpush3.bf16.msra.mxu0 %v8882_v0  ;;  %v8909_v5 = vld [vmem:[%s11477_s6 + $0x1c8] sm:$0xff]  }
 0x24f   : > { %v8163_v9 = vpop.f32.mrf.mxu1  ;;  %v8179_v10 = vpop.f32.mrf.mxu0  ;;  %7500 = vmatprep.subr.bf16.mxu0 %v8884_v4  ;;  %v8908_v4 = vld [vmem:[%s11477_s6 + $0x190] sm:$0xff]  }
 0x250   : > { %v1776_v22 = vpack.c.bf16 %v8179_v10, %v8178_v3  ;;  %v1775_v36 = vpack.c.bf16 %v8163_v9, %v9994_v2 }
 0x251   : > { %v1100_v12 = vpop.f32.mrf.mxu1  ;;  %v1206_v13 = vpop.f32.mrf.mxu0 }
 0x252   : > { %v1766_v14 = vpack.c.bf16 %v1100_v12, %v1097_v6  ;;  %v1767_v15 = vpack.c.bf16 %v1206_v13, %v1203_v7  ;;  %7501 = vmatpush3.bf16.msra.mxu0 %v8886_v8  ;;  %v8910_v8 = vld [vmem:[%s11477_s6 + $0x228] sm:$0xff]  }
 0x253   : > { %v10005_v17 = vpop.f32.mrf.mxu1  ;;  %v10007_v18 = vpop.f32.mrf.mxu0  ;;  %7502 = vmatprep.subr.bf16.mxu0 %v8887_v11  ;;  %v8911_v12 = vld [vmem:[%s11477_s6 + $0x188] sm:$0xff]  }
 0x254   : > { %2480 = vmatprep.mubr.bf16.mxu1 %v1767_v15 }
 0x255   : > { %v10021_v25 = vpop.f32.mrf.mxu1  ;;  %v1219_v26 = vpop.f32.mrf.mxu0  ;;  %2432 = vmatmul.mubr.bf16.gmra.mxu0 %v1782_v16  ;;  %2481 = vmatmul.mubr.bf16.vlgmr.msra.gmra.mxu1 %v1766_v14  ;;  %v8912_v14 = vld [vmem:[%s11477_s6 + $0x1c0] sm:$0xff]  }
 0x256   : > { %2439 = vmatprep.mubr.bf16.mxu0 %v1792_v21  ;;  %2488 = vmatprep.mubr.bf16.mxu1 %v1776_v22  ;;  %v8914_v21 = vld [vmem:[%s11477_s6 + $0x180] sm:$0xff]  }
 0x257   : > { %7503 = vmatpush3.bf16.msra.mxu0 %v8889_v19  ;;  %7535 = vmatpush3.bf16.msra.mxu1 %v8890_v20  ;;  %v10023_v27 = vpop.f32.mrf.mxu1  ;;  %v8183_v28 = vpop.f32.mrf.mxu0 }
 0x258   : > { %7504 = vmatprep.subr.bf16.mxu0 %v8891_v23  ;;  %7536 = vmatprep.subr.bf16.mxu1 %v8892_v24  ;;  %v1794_v60 = vpack.c.bf16 %v8183_v28, %v10007_v18  ;;  %v1793_v9 = vpack.c.bf16 %v10023_v27, %v10005_v17  ;;  %v8913_v17 = vld [vmem:[%s11477_s6 + $0x220] sm:$0xff]   ;;  %v8915_v24 = vld [vmem:[%s11477_s6 + $0x218] sm:$0xff]  }
 0x259   : > { %v1116_v33 = vpop.f32.mrf.mxu1  ;;  %v1222_v34 = vpop.f32.mrf.mxu0 }
 0x25a   : > { %v1785_v41 = vpack.c.bf16 %v1222_v34, %v1219_v26  ;;  %v1784_v56 = vpack.c.bf16 %v1116_v33, %v10021_v25  ;;  %v8916_v34 = vld [vmem:[%s11477_s6 + $0x210] sm:$0xff]  }
 0x25b   : > { %7505 = vmatpush3.bf16.msra.mxu0 %v8893_v29  ;;  %7537 = vmatpush3.bf16.msra.mxu1 %v8894_v30  ;;  %v10040_v37 = vpop.f32.mrf.mxu1  ;;  %v8210_v38 = vpop.f32.mrf.mxu0 }
 0x25c   : > { %7506 = vmatprep.subr.bf16.mxu0 %v8895_v31  ;;  %7538 = vmatprep.subr.bf16.mxu1 %v8896_v32 }
 0x25d   : > { %v1309_v44 = vpop.f32.mrf.mxu1  ;;  %v1415_v45 = vpop.f32.mrf.mxu0  ;;  %2440 = vmatmul.mubr.bf16.gmra.mxu0 %v1791_v35  ;;  %2489 = vmatmul.mubr.bf16.gmra.mxu1 %v1775_v36 }
 0x25e   : > { %2496 = vmatprep.mubr.bf16.mxu1 %v1785_v41 }
 0x25f   : > { %7507 = vmatpush3.bf16.msra.mxu0 %v8897_v39  ;;  %7539 = vmatpush3.bf16.msra.mxu1 %v8898_v40  ;;  %v8195_v46 = vpop.f32.mrf.mxu1  ;;  %v8211_v47 = vpop.f32.mrf.mxu0  ;;  %v8917_v39 = vld [vmem:[%s11477_s6 + $0x208] sm:$0xff]  }
 0x260   : > { %7508 = vmatprep.subr.bf16.mxu0 %v8899_v42  ;;  %7540 = vmatprep.subr.bf16.mxu1 %v8900_v43  ;;  %v1778_v62 = vpack.c.bf16 %v8211_v47, %v8210_v38  ;;  %v1777_v13 = vpack.c.bf16 %v8195_v46, %v10040_v37 }
 0x261   : > { %v1312_v51 = vpop.f32.mrf.mxu1  ;;  %v1418_v52 = vpop.f32.mrf.mxu0 }
 0x262   : > { %v1768_v54 = vpack.c.bf16 %v1312_v51, %v1309_v44  ;;  %v1769_v55 = vpack.c.bf16 %v1418_v52, %v1415_v45  ;;  %v8918_v45 = vld [vmem:[%s11477_s6 + $0x200] sm:$0xff]  }
 0x263   : > { %7509 = vmatpush3.bf16.msra.mxu0 %v8901_v48  ;;  %7541 = vmatpush3.bf16.msra.mxu1 %v8902_v49  ;;  %v10067_v57 = vpop.f32.mrf.mxu1  ;;  %v10069_v58 = vpop.f32.mrf.mxu0 }
 0x264   : > { %2545 = vmatprep.mubr.bf16.mxu0 %v1769_v55  ;;  %7542 = vmatprep.subr.bf16.mxu1 %v8903_v50 }
 0x265   : > { %v1325_v63 = vpop.f32.mrf.mxu1  ;;  %v1431_v0 = vpop.f32.mrf.mxu0  ;;  %2497 = vmatmul.mubr.bf16.gmra.mxu1 %v1784_v56  ;;  %8264 = vmatprep.subr.bf16.mxu0 %v8904_v53 }
 0x266   : > { %2546 = vmatmul.mubr.bf16.vlgmr.msra.gmra.mxu0 %v1768_v54  ;;  %2504 = vmatprep.mubr.bf16.mxu1 %v1794_v60 }
 0x267   : > { %2553 = vmatprep.mubr.bf16.mxu0 %v1778_v62  ;;  %7543 = vmatpush3.bf16.msra.mxu1 %v8905_v59  ;;  %v10081_v2 = vpop.f32.mrf.mxu1  ;;  %v8215_v3 = vpop.f32.mrf.mxu0  ;;  %v11490_v59 = vmov 0.0  }
 0x268   : > { %8265 = vmatpush3.bf16.msra.mxu0 %v8904_v53  ;;  %7544 = vmatprep.subr.bf16.mxu1 %v8906_v61  ;;  %v1796_v30 = vpack.c.bf16 %v8215_v3, %v10069_v58  ;;  %v1795_v42 = vpack.c.bf16 %v10081_v2, %v10067_v57 }
 0x269   : > { %v1328_v6 = vpop.f32.mrf.mxu1  ;;  %v1434_v7 = vpop.f32.mrf.mxu0  ;;  %8266 = vmatprep.subr.bf16.mxu0 %v8907_v1 }
 0x26a   : > { %v1787_v15 = vpack.c.bf16 %v1434_v7, %v1431_v0  ;;  %v1786_v29 = vpack.c.bf16 %v1328_v6, %v1325_v63 }
 0x26b   : > { %7545 = vmatpush3.bf16.msra.mxu1 %v8908_v4  ;;  %v8226_v10 = vpop.f32.mrf.mxu1  ;;  %v8242_v11 = vpop.f32.mrf.mxu0 }
 0x26c   : > { %8267 = vmatpush3.bf16.msra.mxu0 %v8907_v1  ;;  %7546 = vmatprep.subr.bf16.mxu1 %v8909_v5 }
 0x26d   : > { %v1521_v16 = vpop.f32.mrf.mxu1  ;;  %v1627_v18 = vpop.f32.mrf.mxu0  ;;  %2505 = vmatmul.mubr.bf16.gmra.mxu1 %v1793_v9  ;;  %8268 = vmatprep.subr.bf16.mxu0 %v8910_v8 }
 0x26e   : > { %2554 = vmatmul.mubr.bf16.gmra.mxu0 %v1777_v13 }
 0x26f   : > { %2561 = vmatprep.mubr.bf16.mxu0 %v1787_v15  ;;  %7547 = vmatpush3.bf16.msra.mxu1 %v8911_v12  ;;  %v8227_v19 = vpop.f32.mrf.mxu1  ;;  %v8243_v20 = vpop.f32.mrf.mxu0 }
 0x270   : > { %8269 = vmatpush3.bf16.msra.mxu0 %v8910_v8  ;;  %7548 = vmatprep.subr.bf16.mxu1 %v8912_v14  ;;  %v1780_v31 = vpack.c.bf16 %v8243_v20, %v8242_v11  ;;  %v1779_v43 = vpack.c.bf16 %v8227_v19, %v8226_v10 }
 0x271   : > { %v1524_v22 = vpop.f32.mrf.mxu1  ;;  %v1630_v23 = vpop.f32.mrf.mxu0  ;;  %8270 = vmatprep.subr.bf16.mxu0 %v8913_v17 }
 0x272   : > { %v1770_v25 = vpack.c.bf16 %v1524_v22, %v1521_v16  ;;  %v1771_v26 = vpack.c.bf16 %v1630_v23, %v1627_v18 }
 0x273   : > { %7549 = vmatpush3.bf16.msra.mxu1 %v8914_v21  ;;  %v8230_v27 = vpop.f32.mrf.mxu1  ;;  %v8246_v28 = vpop.f32.mrf.mxu0 }
 0x274   : > { %8271 = vmatpush3.bf16.msra.mxu0 %v8913_v17  ;;  %2610 = vmatprep.mubr.bf16.mxu1 %v1771_v26 }
 0x275   : > { %v1537_v32 = vpop.f32.mrf.mxu1  ;;  %8272 = vmatprep.subr.bf16.mxu0 %v8915_v24  ;;  %v1643_v33 = vpop.f32.mrf.mxu0  ;;  %8288 = vmatprep.subr.bf16.mxu1 %v11490_v59 }
 0x276   : > { %2562 = vmatmul.mubr.bf16.gmra.mxu0 %v1786_v29  ;;  %2611 = vmatmul.mubr.bf16.vlgmr.msra.gmra.mxu1 %v1770_v25 }
 0x277   : > { %2569 = vmatprep.mubr.bf16.mxu0 %v1796_v30  ;;  %2618 = vmatprep.mubr.bf16.mxu1 %v1780_v31  ;;  %v8231_v35 = vpop.f32.mrf.mxu1  ;;  %v8247_v36 = vpop.f32.mrf.mxu0 }
 0x278   : > { %8273 = vmatpush3.bf16.msra.mxu0 %v8915_v24  ;;  %v1798_v52 = vpack.c.bf16 %v8247_v36, %v8246_v28  ;;  %v1797_v58 = vpack.c.bf16 %v8231_v35, %v8230_v27 }
 0x279   : > { %v1540_v37 = vpop.f32.mrf.mxu1  ;;  %8274 = vmatprep.subr.bf16.mxu0 %v8916_v34  ;;  %v1646_v38 = vpop.f32.mrf.mxu0 }
 0x27a   : > { %v1789_v40 = vpack.c.bf16 %v1646_v38, %v1643_v33  ;;  %v1788_v51 = vpack.c.bf16 %v1540_v37, %v1537_v32 }
 0x27b   : > { %v8258_v41 = vpop.f32.mrf.mxu1 }
 0x27c   : > { %8275 = vmatpush3.bf16.msra.mxu0 %v8916_v34 }
 0x27d   : > { %v1733_v44 = vpop.f32.mrf.mxu1  ;;  %8276 = vmatprep.subr.bf16.mxu0 %v8917_v39 }
 0x27e   : > { %2570 = vmatmul.mubr.bf16.gmra.mxu0 %v1795_v42  ;;  %2619 = vmatmul.mubr.bf16.gmra.mxu1 %v1779_v43 }
 0x27f   : > { %2626 = vmatprep.mubr.bf16.mxu1 %v1789_v40  ;;  %v8259_v46 = vpop.f32.mrf.mxu1 }
 0x280   : > { %8277 = vmatpush3.bf16.msra.mxu0 %v8917_v39  ;;  %v1781_v49 = vpack.c.bf16 %v8259_v46, %v8258_v41 }
 0x281   : > { %v1736_v47 = vpop.f32.mrf.mxu1  ;;  %8278 = vmatprep.subr.bf16.mxu0 %v8918_v45 }
 0x282   : > { %v1772_v48 = vpack.c.bf16 %v1736_v47, %v1733_v44 }
 0x283   : > { %v8262_v50 = vpop.f32.mrf.mxu1 }
 0x284   : > { %8279 = vmatpush3.bf16.msra.mxu0 %v8918_v45  ;;  %8280 = vmatprep.mubr.bf16.mxu0 %v1772_v48 }
 0x285   : > { %v1749_v53 = vpop.f32.mrf.mxu1  ;;  %8300 = vmatprep.subr.bf16.mxu0 %v11490_v59 }
 0x286   : > { %2627 = vmatmul.mubr.bf16.gmra.mxu1 %v1788_v51 }
 0x287   : > { %8281 = vmatmul.mubr.bf16.vlgmr.msra.gmra.mxu0 %v1781_v49  ;;  %2634 = vmatprep.mubr.bf16.mxu1 %v1798_v52  ;;  %v8263_v54 = vpop.f32.mrf.mxu1  ;;  %v10166_v49 = vld [vmem:[#allocation9] ss:$0 sm:$0xff] }
 0x288   : > { %v1799_v57 = vpack.c.bf16 %v8263_v54, %v8262_v50 }
 0x289   : > { %v1752_v55 = vpop.f32.mrf.mxu1 }
 0x28a   : > { %v1790_v56 = vpack.c.bf16 %v1752_v55, %v1749_v53 }
 0x28c   : > { %8284 = vmatprep.mubr.bf16.mxu0 %v1790_v56 }
 0x28e   : > { %2635 = vmatmul.mubr.bf16.gmra.mxu1 %v1797_v58 }
 0x28f   : > { %8285 = vmatmul.mubr.bf16.gmra.mxu0 %v1799_v57  ;;  %8296 = vmatprep.mubr.msk.bf16.mxu1 %vm9407_vm2, %v11490_v59 }
 0x290   : > { %8308 = vmatprep.mubr.msk.bf16.mxu0 %vm9407_vm2, %v11490_v59 }
 0x305   : > { %v7430_v60 = vpop.f32.mrf.mxu0 }
 0x307   : > { %v7431_v61 = vpop.f32.mrf.mxu0 }
 0x308   : > { %v7432_v47 = vadd.f32 %v7431_v61, %v7430_v60 }
 0x309   : > { %v7433_v62 = vpop.f32.mrf.mxu0 }
 0x30b   : > { %v7434_v63 = vpop.f32.mrf.mxu0 }
 0x30c   : > { %v7435_v53 = vadd.f32 %v7434_v63, %v7433_v62 }
 0x30d   : > { %v7436_v0 = vpop.f32.mrf.mxu0 }
 0x30e   : > { %v2421_v62 = vadd.f32 %v7435_v53, %v10166_v49 }
 0x30f   : > { %v7437_v1 = vpop.f32.mrf.mxu0 }
 0x310   : > { %v7438_v44 = vadd.f32 %v7437_v1, %v7436_v0  ;;  %v2418_v0 = vadd.f32 %v7432_v47, %v10166_v49 }
 0x311   : > { %v7439_v2 = vpop.f32.mrf.mxu0 }
 0x312   : > { %v2426_v56 = vadd.f32 %v7438_v44, %v10166_v49 }
 0x313   : > { %v7440_v3 = vpop.f32.mrf.mxu0 }
 0x314   : > { %v7441_v48 = vadd.f32 %v7440_v3, %v7439_v2 }
 0x315   : > { %v10128_v4 = vpop.f32.mrf.mxu0  ;;  %v7470_v5 = vpop.f32.mrf.mxu1 }
 0x316   : > { %v2429_v1 = vadd.f32 %v7441_v48, %v10166_v49 }
 0x317   : > { %v10130_v6 = vpop.f32.mrf.mxu0  ;;  %v7471_v7 = vpop.f32.mrf.mxu1 }
 0x318   : > { %v7472_v54 = vadd.f32 %v7471_v7, %v7470_v5  ;;  %v7444_v63 = vadd.f32 %v10130_v6, %v10128_v4 }
 0x319   : > { %v10132_v8 = vpop.f32.mrf.mxu0  ;;  %v7473_v9 = vpop.f32.mrf.mxu1 }
 0x31a   : > { %v2483_v5 = vadd.f32 %v7472_v54, %v2418_v0  ;;  %v2434_v6 = vadd.f32 %v7444_v63, %v10166_v49 }
 0x31b   : > { %v10134_v10 = vpop.f32.mrf.mxu0  ;;  %v7474_v11 = vpop.f32.mrf.mxu1 }
 0x31c   : > { %v7475_v60 = vadd.f32 %v7474_v11, %v7473_v9  ;;  %v7447_v9 = vadd.f32 %v10134_v10, %v10132_v8 }
 0x31d   : > { %v10136_v12 = vpop.f32.mrf.mxu0  ;;  %v7476_v13 = vpop.f32.mrf.mxu1 }
 0x31e   : > { %v2486_v11 = vadd.f32 %v7475_v60, %v2421_v62 }
 0x31f   : > { %v10138_v14 = vpop.f32.mrf.mxu0  ;;  %v7477_v15 = vpop.f32.mrf.mxu1 }
 0x320   : > { %v7478_v50 = vadd.f32 %v7477_v15, %v7476_v13 }
 0x321   : > { %v10140_v16 = vpop.f32.mrf.mxu0  ;;  %v7479_v18 = vpop.f32.mrf.mxu1 }
 0x322   : > { %v2491_v61 = vadd.f32 %v7478_v50, %v2426_v56 }
 0x323   : > { %v10142_v17 = vpop.f32.mrf.mxu0  ;;  %v7480_v19 = vpop.f32.mrf.mxu1 }
 0x324   : > { %v7481_v55 = vadd.f32 %v7480_v19, %v7479_v18  ;;  %v7453_v53 = vadd.f32 %v10142_v17, %v10140_v16 }
 0x325   : > { %v10144_v20 = vpop.f32.mrf.mxu1 }
 0x326   : > { %v7510_v21 = vpop.f32.mrf.mxu0  ;;  %v2494_v7 = vadd.f32 %v7481_v55, %v2429_v1 }
 0x327   : > { %v10146_v22 = vpop.f32.mrf.mxu1 }
 0x328   : > { %v7511_v23 = vpop.f32.mrf.mxu0 }
 0x329   : > { %v10148_v24 = vpop.f32.mrf.mxu1  ;;  %v7512_v2 = vadd.f32 %v7511_v23, %v7510_v21  ;;  %v7450_v21 = vadd.f32 %v10138_v14, %v10136_v12 }
 0x32a   : > { %v7513_v25 = vpop.f32.mrf.mxu0 }
 0x32b   : > { %v10150_v26 = vpop.f32.mrf.mxu1  ;;  %v2442_v48 = vadd.f32 %v7450_v21, %v10166_v49 }
 0x32c   : > { %v7514_v27 = vpop.f32.mrf.mxu0  ;;  %v7487_v12 = vadd.f32 %v10150_v26, %v10148_v24 }
 0x32d   : > { %v10152_v28 = vpop.f32.mrf.mxu1  ;;  %v7515_v18 = vadd.f32 %v7514_v27, %v7513_v25  ;;  %v7484_v25 = vadd.f32 %v10146_v22, %v10144_v20 }
 0x32e   : > { %v7516_v29 = vpop.f32.mrf.mxu0 }
 0x32f   : > { %v10154_v30 = vpop.f32.mrf.mxu1  ;;  %v2551_v27 = vadd.f32 %v7515_v18, %v2486_v11  ;;  %v2499_v54 = vadd.f32 %v7484_v25, %v2434_v6 }
 0x330   : > { %v7517_v31 = vpop.f32.mrf.mxu0  ;;  %v7490_v14 = vadd.f32 %v10154_v30, %v10152_v28 }
 0x331   : > { %v10156_v32 = vpop.f32.mrf.mxu1  ;;  %v7518_v57 = vadd.f32 %v7517_v31, %v7516_v29 }
 0x332   : > { %v7519_v33 = vpop.f32.mrf.mxu0  ;;  %v2507_v16 = vadd.f32 %v7490_v14, %v2442_v48  ;;  %v8928_v14 = vld [vmem:[%s11479_s8 + $0x78] sm:$0xff]  }
 0x333   : > { %v10158_v34 = vpop.f32.mrf.mxu1  ;;  %v2556_v19 = vadd.f32 %v7518_v57, %v2491_v61  ;;  %v8929_v48 = vld [vmem:[%s11479_s8 + $0x38] sm:$0xff]  }
 0x334   : > { %11543 = vst [vmem:[#allocation22_spill] sm:$0xff] %v10158_v34  ;;  %v7520_v35 = vpop.f32.mrf.mxu0 }
 0x335   : > { %v7521_v3 = vadd.f32 %v7520_v35, %v7519_v33  ;;  %v2548_v33 = vadd.f32 %v7512_v2, %v2483_v5  ;;  %v2445_v2 = vadd.f32 %v7453_v53, %v10166_v49  ;;  %v8934_v53 = vld [vmem:[%s11479_s8 + $0x60] sm:$0xff]  }
 0x336   : > { %v7522_v36 = vpop.f32.mrf.mxu0  ;;  %v7550_v37 = vpop.f32.mrf.mxu1 }
 0x337   : > { %v2559_v35 = vadd.f32 %v7521_v3, %v2494_v7 }
 0x338   : > { %v7523_v38 = vpop.f32.mrf.mxu0  ;;  %v7551_v39 = vpop.f32.mrf.mxu1 }
 0x339   : > { %v7552_v29 = vadd.f32 %v7551_v39, %v7550_v37  ;;  %v2437_v39 = vadd.f32 %v7447_v9, %v10166_v49 }
 0x33a   : > { %v10160_v40 = vpop.f32.mrf.mxu0  ;;  %v7553_v41 = vpop.f32.mrf.mxu1 }
 0x33b   : > { %v2613_v37 = vadd.f32 %v7552_v29, %v2548_v33  ;;  %v2502_v57 = vadd.f32 %v7487_v12, %v2437_v39  ;;  %v11544_v17 = vld [vmem:[#allocation22_spill] sm:$0xff]  ;;  %v8924_v12 = vld [vmem:[#allocation2 + $0x20] sm:$0xff]  }
 0x33c   : > { %v10162_v42 = vpop.f32.mrf.mxu0  ;;  %v7554_v43 = vpop.f32.mrf.mxu1  ;;  %v7493_v0 = vadd.f32 %v11544_v17, %v10156_v32  ;;  %v8923_v39 = vld [vmem:[#allocation2 + $0x28] sm:$0xff]  }
 0x33d   : > { %v7527_v55 = vadd.f32 %v10162_v42, %v10160_v40  ;;  %v8944_v17 = vld [vmem:[%s11479_s8 + $0x48] sm:$0xff]  }
 0x33e   : > { %v10164_v45 = vpop.f32.mrf.mxu0  ;;  %v7556_v46 = vpop.f32.mrf.mxu1 }
 0x33f   : > { %v2567_v5 = vadd.f32 %v7527_v55, %v2502_v57  ;;  %v8937_v55 = vld [vmem:[%s11479_s8 + $0xf8] sm:$0xff]   ;;  %v8942_v57 = vld [vmem:[%s11479_s8 + $0x10] sm:$0xff]  }
 0x340   : > { %v7529_v51 = vpop.f32.mrf.mxu0  ;;  %v7557_v52 = vpop.f32.mrf.mxu1 }
 0x341   : > { %v7558_v13 = vadd.f32 %v7557_v52, %v7556_v46  ;;  %v7555_v46 = vadd.f32 %v7554_v43, %v7553_v41  ;;  %v7524_v41 = vadd.f32 %v7523_v38, %v7522_v36  ;;  %v7530_v24 = vadd.f32 %v7529_v51, %v10164_v45 }
 0x342   : > { %v10169_v58 = vpop.f32.mrf.mxu0  ;;  %v7559_v59 = vpop.f32.mrf.mxu1 }
 0x343   : > { %v2621_v47 = vadd.f32 %v7558_v13, %v2556_v19  ;;  %v2616_v52 = vadd.f32 %v7555_v46, %v2551_v27  ;;  %v2564_v40 = vadd.f32 %v7524_v41, %v2499_v54  ;;  %v2572_v3 = vadd.f32 %v7530_v24, %v2507_v16  ;;  %v8925_v41 = vld [vmem:[#allocation2 + $0x38] sm:$0xff]   ;;  %v8935_v54 = vld [vmem:[%s11479_s8 + $0x20] sm:$0xff]   ;;  %v8945_v16 = vld [vmem:[%s11479_s8 + $0xe8] sm:$0xff]  }
 0x344   : > { %v7532_v15 = vpop.f32.mrf.mxu0  ;;  %v7560_v34 = vpop.f32.mrf.mxu1  ;;  %v2510_v19 = vadd.f32 %v7493_v0, %v2445_v2  ;;  %v11545_v27 = vmov 0.0   ;;  %v8936_v24 = vld [vmem:[%s11479_s8 + $0x58] sm:$0xff]   ;;  %v8947_v0 = vld [vmem:[%s11479_s8 + $0xa8] sm:$0xff]  }
 0x345   : > { %v7561_v31 = vadd.f32 %v7560_v34, %v7559_v59  ;;  %v7533_v13 = vadd.f32 %v7532_v15, %v10169_v58  ;;  %v8953_v2 = vld [vmem:[%s11479_s8 + $0x178] sm:$0xff]  }
 0x346   : > { %v7562_v44 = vpop.f32.mrf.mxu1 }
 0x347   : > { %v8282_v23 = vpop.f32.mrf.mxu0  ;;  %v2624_v10 = vadd.f32 %v7561_v31, %v2559_v35  ;;  %v2575_v58 = vadd.f32 %v7533_v13, %v2510_v19  ;;  %v8956_v13 = vld [vmem:[%s11479_s8 + $0xd0] sm:$0xff]   ;;  %v8969_v19 = vld [vmem:[%s11479_s8 + $0x1f8] sm:$0xff]  }
 0x348   : > { %v7563_v4 = vpop.f32.mrf.mxu1  ;;  %v2686_v34 = vadd.f32 %v8282_v23, %v2621_v47 }
 0x349   : > { %v2677_v59 = vpop.f32.mrf.mxu0  ;;  %v7564_v30 = vadd.f32 %v7563_v4, %v7562_v44 }
 0x34a   : > { %v7565_v8 = vpop.f32.mrf.mxu1  ;;  %v2678_v20 = vadd.f32 %v2677_v59, %v2613_v37  ;;  %v2710_v28 = vmax.f32 %v2686_v34, 0.0  ;;  %v8919_v34 = vld [vmem:[#allocation2 + $0x8] sm:$0xff]   ;;  %v8920_v37 = vld [vmem:[#allocation2] sm:$0xff]  }
 0x34b   : > { %v8283_v43 = vpop.f32.mrf.mxu0  ;;  %v2629_v7 = vadd.f32 %v7564_v30, %v2564_v40  ;;  %v8938_v30 = vld [vmem:[%s11479_s8 + $0x18] sm:$0xff]   ;;  %v8946_v40 = vld [vmem:[%s11479_s8 + $0x8] sm:$0xff]  }
 0x34c   : > { %v2689_v22 = vadd.f32 %v8283_v43, %v2624_v10  ;;  %v7566_v50 = vpop.f32.mrf.mxu1  ;;  %v2708_v45 = vmax.f32 %v2678_v20, 0.0  ;;  %v8922_v10 = vld [vmem:[#allocation2 + $0x10] sm:$0xff]  }
 0x34d   : > { %v2680_v26 = vpop.f32.mrf.mxu0  ;;  %v7567_v1 = vadd.f32 %v7566_v50, %v7565_v8  ;;  %v8921_v8 = vld [vmem:[#allocation2 + $0x18] sm:$0xff]   ;;  %v8926_v43 = vld [vmem:[#allocation2 + $0x30] sm:$0xff]   ;;  %v8932_v50 = vld [vmem:[%s11479_s8 + $0x68] sm:$0xff]  }
 0x34e   : > { %v2711_v36 = vmax.f32 %v2689_v22, 0.0  ;;  %v2681_v38 = vadd.f32 %v2680_v26, %v2616_v52  ;;  %v7568_v56 = vpop.f32.mrf.mxu1  ;;  %v8930_v20 = vld [vmem:[%s11479_s8 + $0x70] sm:$0xff]   ;;  %v8933_v52 = vld [vmem:[%s11479_s8 + $0x28] sm:$0xff]   ;;  %v8927_v26 = vld [vmem:[#allocation2 + $0x40] sm:$0xff]  }
 0x34f   : > { %v8286_v42 = vpop.f32.mrf.mxu0  ;;  %v2632_v9 = vadd.f32 %v7567_v1, %v2567_v5  ;;  %v8931_v22 = vld [vmem:[%s11479_s8 + $0x30] sm:$0xff]   ;;  %v8951_v1 = vld [vmem:[%s11479_s8 + $0xa0] sm:$0xff]   ;;  %v8962_v5 = vld [vmem:[%s11479_s8 + $0x88] sm:$0xff]  }
 0x350   : > { %v10202_v51 = vpack.c.bf16 %v2711_v36, %v2710_v28  ;;  %v2709_v60 = vmax.f32 %v2681_v38, 0.0  ;;  %v7569_v61 = vpop.f32.mrf.mxu1  ;;  %v8939_v28 = vld [vmem:[%s11479_s8 + $0xb8] sm:$0xff]   ;;  %v8941_v36 = vld [vmem:[%s11479_s8 + $0xf0] sm:$0xff]  }
 0x351   : > { %v7570_v62 = vadd.f32 %v7569_v61, %v7568_v56  ;;  %v2693_v63 = vpop.f32.mrf.mxu0  ;;  %v8940_v38 = vld [vmem:[%s11479_s8 + $0x50] sm:$0xff]   ;;  %v8952_v61 = vld [vmem:[%s11479_s8 + $0xd8] sm:$0xff]  }
 0x352   : > { %7330 = vst [vmem:[%s10198_s21 + $0x8] sm:$0xff] %v10202_v51   ;;  %v10208_v32 = vpack.c.bf16 %v2709_v60, %v2708_v45  ;;  %v7571_v18 = vpop.f32.mrf.mxu1  ;;  %v2694_v44 = vadd.f32 %v2693_v63, %v2629_v7  ;;  %v8943_v56 = vld [vmem:[%s11479_s8 + $0xb0] sm:$0xff]   ;;  %v8948_v45 = vld [vmem:[%s11479_s8 + $0x40] sm:$0xff]   ;;  %v8960_v63 = vld [vmem:[%s11479_s8 + $0xc8] sm:$0xff]  }
 0x353   : > { %v2637_v29 = vadd.f32 %v7570_v62, %v2572_v3  ;;  %v8287_v31 = vpop.f32.mrf.mxu0  ;;  %v8950_v60 = vld [vmem:[%s11479_s8] sm:$0xff]   ;;  %v8954_v3 = vld [vmem:[%s11479_s8 + $0x98] sm:$0xff]   ;;  %v8958_v62 = vld [vmem:[%s11479_s8 + $0x90] sm:$0xff]  }
 0x354   : > { %7289 = vst [vmem:[%s10198_s21] sm:$0xff] %v10208_v32   ;;  %v7572_v49 = vpop.f32.mrf.mxu1  ;;  %v2712_v35 = vmax.f32 %v2694_v44, 0.0  ;;  %v8964_v7 = vld [vmem:[%s11479_s8 + $0xc0] sm:$0xff]  }
 0x355   : > { %v7573_v15 = vadd.f32 %v7572_v49, %v7571_v18  ;;  %v2696_v11 = vpop.f32.mrf.mxu0  ;;  %v2702_v23 = vadd.f32 %v8286_v42, %v2637_v29  ;;  %v8949_v42 = vld [vmem:[%s11479_s8 + $0xe0] sm:$0xff]  }
 0x356   : > { %v2697_v21 = vadd.f32 %v2696_v11, %v2632_v9  ;;  %v8966_v18 = vld [vmem:[%s11479_s8 + $0x80] sm:$0xff]  }
 0x357   : > { %v2640_v33 = vadd.f32 %v7573_v15, %v2575_v58  ;;  %v2714_v6 = vmax.f32 %v2702_v23, 0.0  ;;  %v8957_v23 = vld [vmem:[%s11479_s8 + $0x170] sm:$0xff]  }
 0x358   : > { %v2713_v46 = vmax.f32 %v2697_v21, 0.0  ;;  %v8955_v21 = vld [vmem:[%s11479_s8 + $0x138] sm:$0xff]  }
 0x359   : > { %v2705_v47 = vadd.f32 %v8287_v31, %v2640_v33 }
 0x35a   : > { %v10212_v4 = vpack.c.bf16 %v2713_v46, %v2712_v35  ;;  %v8959_v46 = vld [vmem:[%s11479_s8 + $0x130] sm:$0xff]  }
 0x35b   : > { %v2715_v25 = vmax.f32 %v2705_v47, 0.0  ;;  %v8961_v47 = vld [vmem:[%s11479_s8 + $0x168] sm:$0xff]  }
 0x35c   : > { %7331 = vst [vmem:[%s10198_s21 + $0x10] sm:$0xff] %v10212_v4  }
 0x35d   : > { %v10216_v59 = vpack.c.bf16 %v2715_v25, %v2714_v6  ;;  %v8963_v6 = vld [vmem:[%s11479_s8 + $0x128] sm:$0xff]   ;;  %v8965_v25 = vld [vmem:[%s11479_s8 + $0x160] sm:$0xff]  }
 0x35f   : > { %7332 = vst [vmem:[%s10198_s21 + $0x18] sm:$0xff] %v10216_v59   ;;  %8289 = vmatpush3.bf16.msra.mxu1 %v10216_v59  ;;  %8301 = vmatpush3.bf16.msra.mxu0 %v10216_v59 }
 0x360   : > { %8290 = vmatprep.subr.bf16.mxu1 %v11545_v27  ;;  %8302 = vmatprep.subr.bf16.mxu0 %v11545_v27 }
 0x363   : > { %8291 = vmatpush3.bf16.msra.mxu1 %v10212_v4  ;;  %8303 = vmatpush3.bf16.msra.mxu0 %v10212_v4 }
 0x364   : > { %8292 = vmatprep.subr.bf16.mxu1 %v11545_v27  ;;  %8304 = vmatprep.subr.bf16.mxu0 %v11545_v27 }
 0x367   : > { %8293 = vmatpush3.bf16.msra.mxu1 %v10202_v51  ;;  %8305 = vmatpush3.bf16.msra.mxu0 %v10202_v51 }
 0x368   : > { %8294 = vmatprep.subr.bf16.mxu1 %v11545_v27  ;;  %8306 = vmatprep.subr.bf16.mxu0 %v11545_v27 }
 0x36b   : > { %8295 = vmatpush3.bf16.msra.mxu1 %v10208_v32  ;;  %8307 = vmatpush3.bf16.msra.mxu0 %v10208_v32 }
 0x36c   : > { %8312 = vmatprep.subr.bf16.mxu1 %v11545_v27  ;;  %8324 = vmatprep.subr.bf16.mxu0 %v11545_v27 }
 0x36e   : > { %8309 = vmatmul.mubr.msk.bf16.vlgmr.msra.gmra.mxu0 %vm838_vm1, %v8919_v34  ;;  %8297 = vmatmul.mubr.msk.bf16.vlgmr.msra.gmra.mxu1 %vm838_vm1, %v8920_v37 }
 0x36f   : > { %8313 = vmatpush3.bf16.msra.mxu1 %v10216_v59  ;;  %8325 = vmatpush3.bf16.msra.mxu0 %v10216_v59 }
 0x370   : > { %8314 = vmatprep.subr.bf16.mxu1 %v11545_v27  ;;  %8326 = vmatprep.subr.bf16.mxu0 %v11545_v27 }
 0x371   : > { %8332 = vmatprep.mubr.msk.bf16.mxu0 %vm9407_vm2, %v11545_v27  ;;  %8320 = vmatprep.mubr.msk.bf16.mxu1 %vm9407_vm2, %v11545_v27 }
 0x373   : > { %8315 = vmatpush3.bf16.msra.mxu1 %v10212_v4  ;;  %8327 = vmatpush3.bf16.msra.mxu0 %v10212_v4 }
 0x374   : > { %8316 = vmatprep.subr.bf16.mxu1 %v11545_v27  ;;  %8328 = vmatprep.subr.bf16.mxu0 %v11545_v27 }
 0x377   : > { %8317 = vmatpush3.bf16.msra.mxu1 %v10202_v51  ;;  %8329 = vmatpush3.bf16.msra.mxu0 %v10202_v51 }
 0x378   : > { %8318 = vmatprep.subr.bf16.mxu1 %v11545_v27  ;;  %8330 = vmatprep.subr.bf16.mxu0 %v11545_v27 }
 0x37b   : > { %8319 = vmatpush3.bf16.msra.mxu1 %v10208_v32  ;;  %8331 = vmatpush3.bf16.msra.mxu0 %v10208_v32 }
 0x37c   : > { %8336 = vmatprep.subr.bf16.mxu1 %v11545_v27  ;;  %8348 = vmatprep.subr.bf16.mxu0 %v11545_v27 }
 0x37e   : > { %8333 = vmatmul.mubr.msk.bf16.vlgmr.msra.gmra.mxu0 %vm838_vm1, %v8921_v8  ;;  %8321 = vmatmul.mubr.msk.bf16.vlgmr.msra.gmra.mxu1 %vm838_vm1, %v8922_v10  ;;  %v8967_v8 = vld [vmem:[%s11479_s8 + $0x120] sm:$0xff]  }
 0x37f   : > { %8337 = vmatpush3.bf16.msra.mxu1 %v10216_v59  ;;  %8349 = vmatpush3.bf16.msra.mxu0 %v10216_v59 }
 0x380   : > { %8338 = vmatprep.subr.bf16.mxu1 %v11545_v27  ;;  %8350 = vmatprep.subr.bf16.mxu0 %v11545_v27 }
 0x381   : > { %8356 = vmatprep.mubr.msk.bf16.mxu0 %vm9407_vm2, %v11545_v27  ;;  %8344 = vmatprep.mubr.msk.bf16.mxu1 %vm9407_vm2, %v11545_v27 }
 0x383   : > { %8339 = vmatpush3.bf16.msra.mxu1 %v10212_v4  ;;  %8351 = vmatpush3.bf16.msra.mxu0 %v10212_v4 }
 0x384   : > { %8340 = vmatprep.subr.bf16.mxu1 %v11545_v27  ;;  %8352 = vmatprep.subr.bf16.mxu0 %v11545_v27 }
 0x387   : > { %8341 = vmatpush3.bf16.msra.mxu1 %v10202_v51  ;;  %8353 = vmatpush3.bf16.msra.mxu0 %v10202_v51 }
 0x388   : > { %8342 = vmatprep.subr.bf16.mxu1 %v11545_v27  ;;  %8354 = vmatprep.subr.bf16.mxu0 %v11545_v27 }
 0x38b   : > { %8343 = vmatpush3.bf16.msra.mxu1 %v10208_v32  ;;  %8355 = vmatpush3.bf16.msra.mxu0 %v10208_v32 }
 0x38c   : > { %8360 = vmatprep.subr.bf16.mxu1 %v11545_v27  ;;  %8372 = vmatprep.subr.bf16.mxu0 %v11545_v27 }
 0x38e   : > { %8357 = vmatmul.mubr.msk.bf16.vlgmr.msra.gmra.mxu0 %vm838_vm1, %v8923_v39  ;;  %8345 = vmatmul.mubr.msk.bf16.vlgmr.msra.gmra.mxu1 %vm838_vm1, %v8924_v12  ;;  %v8968_v12 = vld [vmem:[%s11479_s8 + $0x158] sm:$0xff]  }
 0x38f   : > { %8361 = vmatpush3.bf16.msra.mxu1 %v10216_v59  ;;  %8373 = vmatpush3.bf16.msra.mxu0 %v10216_v59 }
 0x390   : > { %8362 = vmatprep.subr.bf16.mxu1 %v11545_v27  ;;  %8374 = vmatprep.subr.bf16.mxu0 %v11545_v27 }
 0x391   : > { %8380 = vmatprep.mubr.msk.bf16.mxu0 %vm9407_vm2, %v11545_v27  ;;  %8368 = vmatprep.mubr.msk.bf16.mxu1 %vm9407_vm2, %v11545_v27 }
 0x393   : > { %8363 = vmatpush3.bf16.msra.mxu1 %v10212_v4  ;;  %8375 = vmatpush3.bf16.msra.mxu0 %v10212_v4 }
 0x394   : > { %8364 = vmatprep.subr.bf16.mxu1 %v11545_v27  ;;  %8376 = vmatprep.subr.bf16.mxu0 %v11545_v27 }
 0x397   : > { %8365 = vmatpush3.bf16.msra.mxu1 %v10202_v51  ;;  %8377 = vmatpush3.bf16.msra.mxu0 %v10202_v51 }
 0x398   : > { %8366 = vmatprep.subr.bf16.mxu1 %v11545_v27  ;;  %8378 = vmatprep.subr.bf16.mxu0 %v11545_v27 }
 0x39b   : > { %8367 = vmatpush3.bf16.msra.mxu1 %v10208_v32  ;;  %8379 = vmatpush3.bf16.msra.mxu0 %v10208_v32 }
 0x39c   : > { %8384 = vmatprep.subr.bf16.mxu1 %v11545_v27  ;;  %7631 = vmatprep.subr.bf16.mxu0 %v8928_v14 }
 0x39e   : > { %8381 = vmatmul.mubr.msk.bf16.vlgmr.msra.gmra.mxu0 %vm838_vm1, %v8925_v41  ;;  %8369 = vmatmul.mubr.msk.bf16.vlgmr.msra.gmra.mxu1 %vm838_vm1, %v8926_v43 }
 0x39f   : > { %8385 = vmatpush3.bf16.msra.mxu1 %v10216_v59  ;;  %8392 = vmatprep.mubr.msk.bf16.mxu1 %vm9407_vm2, %v11545_v27 }
 0x3a0   : > { %8386 = vmatprep.subr.bf16.mxu1 %v11545_v27  ;;  %7632 = vmatpush3.bf16.msra.mxu0 %v8929_v48 }
 0x3a1   : > { %7633 = vmatprep.subr.bf16.mxu0 %v8930_v20  ;;  %v8970_v20 = vld [vmem:[%s11479_s8 + $0x118] sm:$0xff]  }
 0x3a3   : > { %8387 = vmatpush3.bf16.msra.mxu1 %v10212_v4 }
 0x3a4   : > { %8388 = vmatprep.subr.bf16.mxu1 %v11545_v27  ;;  %7634 = vmatpush3.bf16.msra.mxu0 %v8931_v22  ;;  %v8971_v22 = vld [vmem:[%s11479_s8 + $0x1b8] sm:$0xff]  }
 0x3a5   : > { %7635 = vmatprep.subr.bf16.mxu0 %v8932_v50  ;;  %v8972_v50 = vld [vmem:[%s11479_s8 + $0x150] sm:$0xff]  }
 0x3a7   : > { %8389 = vmatpush3.bf16.msra.mxu1 %v10202_v51 }
 0x3a8   : > { %8390 = vmatprep.subr.bf16.mxu1 %v11545_v27  ;;  %7636 = vmatpush3.bf16.msra.mxu0 %v8933_v52  ;;  %v8973_v52 = vld [vmem:[%s11479_s8 + $0x1f0] sm:$0xff]  }
 0x3a9   : > { %7637 = vmatprep.subr.bf16.mxu0 %v8934_v53 }
 0x3ab   : > { %8391 = vmatpush3.bf16.msra.mxu1 %v10208_v32 }
 0x3ac   : > { %7638 = vmatpush3.bf16.msra.mxu0 %v8935_v54  ;;  %7653 = vmatprep.subr.bf16.mxu1 %v8937_v55  ;;  %v8974_v55 = vld [vmem:[%s11479_s8 + $0x110] sm:$0xff]  }
 0x3ad   : > { %7639 = vmatprep.subr.bf16.mxu0 %v8936_v24  ;;  %v8975_v24 = vld [vmem:[%s11479_s8 + $0x1b0] sm:$0xff]  }
 0x3ae   : > { %8393 = vmatmul.mubr.msk.bf16.vlgmr.msra.gmra.mxu1 %vm838_vm1, %v8927_v26  ;;  %v8976_v26 = vld [vmem:[%s11479_s8 + $0x148] sm:$0xff]  }
 0x3af   : > { %7654 = vmatpush3.bf16.msra.mxu1 %v8939_v28  ;;  %v8977_v28 = vld [vmem:[%s11479_s8 + $0x1e8] sm:$0xff]  }
 0x3b0   : > { %7640 = vmatpush3.bf16.msra.mxu0 %v8938_v30  ;;  %7655 = vmatprep.subr.bf16.mxu1 %v8941_v36  ;;  %v8978_v30 = vld [vmem:[%s11479_s8 + $0x108] sm:$0xff]  }
 0x3b1   : > { %7641 = vmatprep.subr.bf16.mxu0 %v8940_v38  ;;  %v8979_v36 = vld [vmem:[%s11479_s8 + $0x1a8] sm:$0xff]   ;;  %v8980_v38 = vld [vmem:[%s11479_s8 + $0x140] sm:$0xff]  }
 0x3b3   : > { %7656 = vmatpush3.bf16.msra.mxu1 %v8943_v56  ;;  %v8981_v56 = vld [vmem:[%s11479_s8 + $0x1e0] sm:$0xff]  }
 0x3b4   : > { %7642 = vmatpush3.bf16.msra.mxu0 %v8942_v57  ;;  %7657 = vmatprep.subr.bf16.mxu1 %v8945_v16 }
 0x3b5   : > { %7643 = vmatprep.subr.bf16.mxu0 %v8944_v17  ;;  %v8982_v17 = vld [vmem:[%s11479_s8 + $0x100] sm:$0xff]  }
 0x3b7   : > { %7658 = vmatpush3.bf16.msra.mxu1 %v8947_v0  ;;  %v8983_v0 = vld [vmem:[%s11479_s8 + $0x1a0] sm:$0xff]  }
 0x3b8   : > { %7644 = vmatpush3.bf16.msra.mxu0 %v8946_v40  ;;  %7659 = vmatprep.subr.bf16.mxu1 %v8949_v42 }
 0x3b9   : > { %7645 = vmatprep.subr.bf16.mxu0 %v8948_v45  ;;  %v8984_v45 = vld [vmem:[%s11479_s8 + $0x1d8] sm:$0xff]  }
 0x3bb   : > { %7660 = vmatpush3.bf16.msra.mxu1 %v8951_v1 }
 0x3bc   : > { %7646 = vmatpush3.bf16.msra.mxu0 %v8950_v60  ;;  %7661 = vmatprep.subr.bf16.mxu1 %v8952_v61 }
 0x3bd   : > { %7675 = vmatprep.subr.bf16.mxu0 %v8953_v2 }
 0x3bf   : > { %7662 = vmatpush3.bf16.msra.mxu1 %v8954_v3  ;;  %v8985_v3 = vld [vmem:[%s11479_s8 + $0x198] sm:$0xff]  }
 0x3c0   : > { %7663 = vmatprep.subr.bf16.mxu1 %v8956_v13  ;;  %v8986_v13 = vld [vmem:[%s11479_s8 + $0x238] sm:$0xff]  }
 0x3c3   : > { %7664 = vmatpush3.bf16.msra.mxu1 %v8958_v62  ;;  %v8987_v62 = vld [vmem:[%s11479_s8 + $0x1d0] sm:$0xff]  }
 0x3c4   : > { %7665 = vmatprep.subr.bf16.mxu1 %v8960_v63 }
 0x3c7   : > { %7666 = vmatpush3.bf16.msra.mxu1 %v8962_v5 }
 0x3c8   : > { %7667 = vmatprep.subr.bf16.mxu1 %v8964_v7  ;;  %v8988_v7 = vld [vmem:[%s11479_s8 + $0x190] sm:$0xff]  }
 0x3cb   : > { %7668 = vmatpush3.bf16.msra.mxu1 %v8966_v18  ;;  %v8989_v18 = vld [vmem:[%s11479_s8 + $0x230] sm:$0xff]  }
 0x3cc   : > { %7697 = vmatprep.subr.bf16.mxu1 %v8969_v19  ;;  %v8990_v19 = vld [vmem:[%s11479_s8 + $0x1c8] sm:$0xff]  }
 0x42e   : > { %v2816_v29 = vpop.f32.mrf.mxu0  ;;  %v2764_v31 = vpop.f32.mrf.mxu1 }
 0x430   : > { %v8310_v44 = vpop.f32.mrf.mxu0  ;;  %v8298_v49 = vpop.f32.mrf.mxu1 }
 0x431   : > { %v8993_v44 = vld [vmem:[%s11479_s8 + $0x1c0] sm:$0xff]  }
 0x432   : > { %v2819_v9 = vpop.f32.mrf.mxu0  ;;  %v2767_v58 = vpop.f32.mrf.mxu1 }
 0x433   : > { %v3188_v15 = vpack.c.bf16 %v2819_v9, %v2816_v29  ;;  %v3187_v11 = vpack.c.bf16 %v2767_v58, %v2764_v31  ;;  %v8991_v29 = vld [vmem:[%s11479_s8 + $0x188] sm:$0xff]   ;;  %v8994_v58 = vld [vmem:[%s11479_s8 + $0x180] sm:$0xff]  }
 0x434   : > { %v8311_v33 = vpop.f32.mrf.mxu0  ;;  %v8299_v35 = vpop.f32.mrf.mxu1  ;;  %v8992_v31 = vld [vmem:[%s11479_s8 + $0x228] sm:$0xff]  }
 0x435   : > { %3811 = vmatprep.mubr.bf16.mxu0 %v3188_v15  ;;  %v8995_v15 = vld [vmem:[%s11479_s8 + $0x220] sm:$0xff]  }
 0x436   : > { %3812 = vmatmul.mubr.bf16.vlgmr.msra.gmra.mxu0 %v3187_v11 }
 0x437   : > { %7676 = vmatpush3.bf16.msra.mxu0 %v8955_v21 }
 0x438   : > { %7677 = vmatprep.subr.bf16.mxu0 %v8957_v23 }
 0x43b   : > { %7678 = vmatpush3.bf16.msra.mxu0 %v8959_v46 }
 0x43c   : > { %7679 = vmatprep.subr.bf16.mxu0 %v8961_v47  ;;  %v8996_v47 = vld [vmem:[%s11479_s8 + $0x218] sm:$0xff]  }
 0x43e   : > { %v2920_v34 = vpop.f32.mrf.mxu0  ;;  %v2868_v37 = vpop.f32.mrf.mxu1 }
 0x43f   : > { %7680 = vmatpush3.bf16.msra.mxu0 %v8963_v6 }
 0x440   : > { %v8334_v10 = vpop.f32.mrf.mxu0  ;;  %v8322_v39 = vpop.f32.mrf.mxu1  ;;  %7681 = vmatprep.subr.bf16.mxu0 %v8965_v25 }
 0x441   : > { %v8999_v39 = vld [vmem:[%s11479_s8 + $0x200] sm:$0xff]  }
 0x442   : > { %v2923_v14 = vpop.f32.mrf.mxu0  ;;  %v2871_v41 = vpop.f32.mrf.mxu1 }
 0x443   : > { %v3190_v43 = vpack.c.bf16 %v2923_v14, %v2920_v34  ;;  %7682 = vmatpush3.bf16.msra.mxu0 %v8967_v8  ;;  %v3189_v48 = vpack.c.bf16 %v2871_v41, %v2868_v37  ;;  %v8997_v34 = vld [vmem:[%s11479_s8 + $0x210] sm:$0xff]   ;;  %v9097_v37 = vld [vmem:[%s11472_s1] sm:$0xff]   ;;  %v8998_v8 = vld [vmem:[%s11479_s8 + $0x208] sm:$0xff]  }
 0x444   : > { %7683 = vmatprep.subr.bf16.mxu0 %v8968_v12  ;;  %v8335_v53 = vpop.f32.mrf.mxu0  ;;  %v8323_v54 = vpop.f32.mrf.mxu1 }
 0x445   : > { %3852 = vmatprep.mubr.bf16.mxu1 %v3190_v43  ;;  %v9103_v53 = vld [vmem:[%s11472_s1 + $0x28] sm:$0xff]  }
 0x446   : > { %3853 = vmatmul.mubr.bf16.vlgmr.msra.gmra.mxu1 %v3189_v48  ;;  %v9098_v48 = vld [vmem:[%s11472_s1 + $0x8] sm:$0xff]  }
 0x447   : > { %7684 = vmatpush3.bf16.msra.mxu0 %v8970_v20  ;;  %7698 = vmatpush3.bf16.msra.mxu1 %v8971_v22  ;;  %v9099_v20 = vld [vmem:[%s11472_s1 + $0x10] sm:$0xff]   ;;  %v9100_v22 = vld [vmem:[%s11472_s1 + $0x40] sm:$0xff]   ;;  %v9104_v54 = vld [vmem:[%s11472_s1 + $0x48] sm:$0xff]  }
 0x448   : > { %7685 = vmatprep.subr.bf16.mxu0 %v8972_v50  ;;  %7699 = vmatprep.subr.bf16.mxu1 %v8973_v52  ;;  %v9101_v50 = vld [vmem:[%s11472_s1 + $0x18] sm:$0xff]   ;;  %v9102_v52 = vld [vmem:[%s11472_s1 + $0x20] sm:$0xff]  }
 0x44b   : > { %7686 = vmatpush3.bf16.msra.mxu0 %v8974_v55  ;;  %7700 = vmatpush3.bf16.msra.mxu1 %v8975_v24  ;;  %v9105_v55 = vld [vmem:[%s11472_s1 + $0x30] sm:$0xff]  }
 0x44c   : > { %7687 = vmatprep.subr.bf16.mxu0 %v8976_v26  ;;  %7701 = vmatprep.subr.bf16.mxu1 %v8977_v28  ;;  %v9106_v24 = vld [vmem:[%s11472_s1 + $0x50] sm:$0xff]   ;;  %v9107_v26 = vld [vmem:[%s11472_s1 + $0x38] sm:$0xff]  }
 0x44d   : > { %v9108_v28 = vld [vmem:[%s11472_s1 + $0x58] sm:$0xff]  }
 0x44e   : > { %v3024_v57 = vpop.f32.mrf.mxu0  ;;  %v2972_v16 = vpop.f32.mrf.mxu1 }
 0x44f   : > { %7688 = vmatpush3.bf16.msra.mxu0 %v8978_v30  ;;  %7702 = vmatpush3.bf16.msra.mxu1 %v8979_v36  ;;  %v9109_v30 = vld [vmem:[%s11472_s1 + $0x60] sm:$0xff]  }
 0x450   : > { %v8358_v40 = vpop.f32.mrf.mxu0  ;;  %v8346_v42 = vpop.f32.mrf.mxu1  ;;  %7689 = vmatprep.subr.bf16.mxu0 %v8980_v38  ;;  %7703 = vmatprep.subr.bf16.mxu1 %v8981_v56  ;;  %v9110_v36 = vld [vmem:[%s11472_s1 + $0x80] sm:$0xff]   ;;  %v9111_v38 = vld [vmem:[%s11472_s1 + $0x68] sm:$0xff]  }
 0x451   : > { %v9112_v56 = vld [vmem:[%s11472_s1 + $0x88] sm:$0xff]   ;;  %v9117_v40 = vld [vmem:[%s11472_s1 + $0xa0] sm:$0xff]  }
 0x452   : > { %v3027_v1 = vpop.f32.mrf.mxu0  ;;  %v2975_v60 = vpop.f32.mrf.mxu1  ;;  %v9118_v42 = vld [vmem:[%s11472_s1 + $0xc0] sm:$0xff]  }
 0x453   : > { %v3192_v61 = vpack.c.bf16 %v3027_v1, %v3024_v57  ;;  %7690 = vmatpush3.bf16.msra.mxu0 %v8982_v17  ;;  %7704 = vmatpush3.bf16.msra.mxu1 %v8983_v0  ;;  %v3191_v2 = vpack.c.bf16 %v2975_v60, %v2972_v16  ;;  %v9113_v57 = vld [vmem:[%s11472_s1 + $0x70] sm:$0xff]   ;;  %v9115_v17 = vld [vmem:[%s11472_s1 + $0x78] sm:$0xff]   ;;  %v9120_v1 = vld [vmem:[%s11472_s1 + $0xc8] sm:$0xff]  }
 0x454   : > { %7705 = vmatprep.subr.bf16.mxu1 %v8984_v45  ;;  %8396 = vmatprep.subr.bf16.mxu0 %v11545_v27  ;;  %v8359_v63 = vpop.f32.mrf.mxu0  ;;  %v8347_v5 = vpop.f32.mrf.mxu1  ;;  %v9114_v16 = vld [vmem:[%s11472_s1 + $0x90] sm:$0xff]   ;;  %v9116_v0 = vld [vmem:[%s11472_s1 + $0x98] sm:$0xff]   ;;  %v9119_v45 = vld [vmem:[%s11472_s1 + $0xa8] sm:$0xff]  }
 0x455   : > { %3893 = vmatprep.mubr.bf16.mxu0 %v3192_v61  ;;  %v9121_v60 = vld [vmem:[%s11472_s1 + $0xb0] sm:$0xff]   ;;  %v9127_v63 = vld [vmem:[%s11472_s1 + $0xe8] sm:$0xff]  }
 0x456   : > { %3894 = vmatmul.mubr.bf16.vlgmr.msra.gmra.mxu0 %v3191_v2  ;;  %v9122_v61 = vld [vmem:[%s11472_s1 + $0xd0] sm:$0xff]   ;;  %v9124_v2 = vld [vmem:[%s11472_s1 + $0xd8] sm:$0xff]  }
 0x457   : > { %7706 = vmatpush3.bf16.msra.mxu1 %v8985_v3  ;;  %8397 = vmatpush3.bf16.msra.mxu0 %v8986_v13  ;;  %v9125_v3 = vld [vmem:[%s11472_s1 + $0xe0] sm:$0xff]   ;;  %v9129_v5 = vld [vmem:[%s11472_s1 + $0xf0] sm:$0xff]  }
 0x458   : > { %7707 = vmatprep.subr.bf16.mxu1 %v8987_v62  ;;  %8398 = vmatprep.subr.bf16.mxu0 %v11545_v27  ;;  %v9126_v13 = vld [vmem:[%s11472_s1 + $0x100] sm:$0xff]   ;;  %v10745_v62 = vld [vmem:[%s11481_s10 + $0x70] sm:$0xff]  }
 0x459   : > { %8412 = vmatprep.mubr.msk.bf16.mxu0 %vm9407_vm2, %v11545_v27 }
 0x45b   : > { %7708 = vmatpush3.bf16.msra.mxu1 %v8988_v7  ;;  %8399 = vmatpush3.bf16.msra.mxu0 %v8989_v18  ;;  %v9130_v7 = vld [vmem:[%s11472_s1 + $0x110] sm:$0xff]  }
 0x45c   : > { %7709 = vmatprep.subr.bf16.mxu1 %v8990_v19  ;;  %8400 = vmatprep.subr.bf16.mxu0 %v11545_v27  ;;  %v10767_v18 = vld [vmem:[%s11481_s10 + $0x30] sm:$0xff]   ;;  %v10773_v19 = vld [vmem:[%s11481_s10 + $0x68] sm:$0xff]  }
 0x45e   : > { %v3128_v49 = vpop.f32.mrf.mxu0  ;;  %v3076_v9 = vpop.f32.mrf.mxu1 }
 0x45f   : > { %7710 = vmatpush3.bf16.msra.mxu1 %v8991_v29  ;;  %8401 = vmatpush3.bf16.msra.mxu0 %v8992_v31  ;;  %v10779_v29 = vld [vmem:[%s11481_s10 + $0x28] sm:$0xff]   ;;  %v10785_v31 = vld [vmem:[%s11481_s10 + $0x60] sm:$0xff]  }
 0x460   : > { %v8382_v11 = vpop.f32.mrf.mxu0  ;;  %v8370_v21 = vpop.f32.mrf.mxu1  ;;  %7711 = vmatprep.subr.bf16.mxu1 %v8993_v44  ;;  %8402 = vmatprep.subr.bf16.mxu0 %v11545_v27  ;;  %v10790_v44 = vld [vmem:[%s11481_s10 + $0xf8] sm:$0xff]  }
 0x461   : > { %v10817_v11 = vld [vmem:[%s11481_s10 + $0x58] sm:$0xff]   ;;  %v10822_v21 = vld [vmem:[%s11481_s10 + $0xf0] sm:$0xff]  }
 0x462   : > { %v3131_v23 = vpop.f32.mrf.mxu0  ;;  %v3079_v33 = vpop.f32.mrf.mxu1 }
 0x463   : > { %v3194_v35 = vpack.c.bf16 %v3131_v23, %v3128_v49  ;;  %7712 = vmatpush3.bf16.msra.mxu1 %v8994_v58  ;;  %8403 = vmatpush3.bf16.msra.mxu0 %v8995_v15  ;;  %v3193_v46 = vpack.c.bf16 %v3079_v33, %v3076_v9  ;;  %v9131_v49 = vld [vmem:[%s11472_s1 + $0xf8] sm:$0xff]   ;;  %v10810_v15 = vld [vmem:[%s11481_s10 + $0x20] sm:$0xff]   ;;  %v10827_v23 = vld [vmem:[%s11481_s10 + $0xb0] sm:$0xff]  }
 0x464   : > { %8416 = vmatprep.subr.bf16.mxu1 %v10216_v59  ;;  %8404 = vmatprep.subr.bf16.mxu0 %v11545_v27  ;;  %v8371_v6 = vpop.f32.mrf.mxu1  ;;  %v8383_v25 = vpop.f32.mrf.mxu0  ;;  %v9132_v9 = vld [vmem:[%s11472_s1 + $0x118] sm:$0xff]  }
 0x465   : > { %3934 = vmatprep.mubr.bf16.mxu1 %v3194_v35  ;;  %v10803_v58 = vld [vmem:[%s11481_s10 + $0xb8] sm:$0xff]   ;;  %v10841_v35 = vld [vmem:[%s11481_s10 + $0x50] sm:$0xff]   ;;  %v10865_v25 = vld [vmem:[%s11481_s10 + $0x48] sm:$0xff]  }
 0x466   : > { %3935 = vmatmul.mubr.bf16.vlgmr.msra.gmra.mxu1 %v3193_v46  ;;  %v10834_v33 = vld [vmem:[%s11481_s10 + $0x18] sm:$0xff]   ;;  %v10846_v46 = vld [vmem:[%s11481_s10 + $0xe8] sm:$0xff]   ;;  %v10858_v6 = vld [vmem:[%s11481_s10 + $0x10] sm:$0xff]  }
 0x467   : > { %8405 = vmatpush3.bf16.msra.mxu0 %v8996_v47  ;;  %8417 = vmatpush3.bf16.msra.mxu1 %v10216_v59  ;;  %v10851_v47 = vld [vmem:[%s11481_s10 + $0xa8] sm:$0xff]  }
 0x468   : > { %8418 = vmatprep.subr.bf16.mxu1 %v10212_v4  ;;  %8406 = vmatprep.subr.bf16.mxu0 %v11545_v27 }
 0x469   : > { %8424 = vmatprep.mubr.msk.bf16.mxu1 %vm838_vm1, %v9097_v37  ;;  %v10875_v37 = vld [vmem:[%s11481_s10 + $0xa0] sm:$0xff]  }
 0x46b   : > { %8407 = vmatpush3.bf16.msra.mxu0 %v8997_v34  ;;  %8419 = vmatpush3.bf16.msra.mxu1 %v10212_v4  ;;  %v10870_v34 = vld [vmem:[%s11481_s10 + $0xe0] sm:$0xff]  }
 0x46c   : > { %8420 = vmatprep.subr.bf16.mxu1 %v10202_v51  ;;  %8408 = vmatprep.subr.bf16.mxu0 %v11545_v27 }
 0x46e   : > { %v3180_v10 = vpop.f32.mrf.mxu1 }
 0x46f   : > { %8409 = vmatpush3.bf16.msra.mxu0 %v8998_v8  ;;  %8421 = vmatpush3.bf16.msra.mxu1 %v10202_v51  ;;  %v10882_v8 = vld [vmem:[%s11481_s10 + $0x8] sm:$0xff]  }
 0x470   : > { %8422 = vmatprep.subr.bf16.mxu1 %v10208_v32  ;;  %v8394_v12 = vpop.f32.mrf.mxu1  ;;  %8410 = vmatprep.subr.bf16.mxu0 %v11545_v27 }
 0x471   : > { %v10899_v12 = vld [vmem:[%s11481_s10 + $0x98] sm:$0xff]  }
 0x472   : > { %v3183_v14 = vpop.f32.mrf.mxu1 }
 0x473   : > { %v3195_v41 = vpack.c.bf16 %v3183_v14, %v3180_v10  ;;  %8411 = vmatpush3.bf16.msra.mxu0 %v8999_v39  ;;  %8423 = vmatpush3.bf16.msra.mxu1 %v10208_v32  ;;  %v10889_v10 = vld [vmem:[%s11481_s10 + $0x40] sm:$0xff]   ;;  %v10894_v39 = vld [vmem:[%s11481_s10 + $0xd8] sm:$0xff]  }
 0x474   : > { %8432 = vmatprep.subr.bf16.mxu1 %v10216_v59  ;;  %8448 = vmatprep.subr.bf16.mxu0 %v10216_v59  ;;  %v8395_v43 = vpop.f32.mrf.mxu1  ;;  %11546 = vst [vmem:[#allocation22_spill] sm:$0xff] %v10889_v10  ;;  %v10906_v14 = vld [vmem:[%s11481_s10] sm:$0xff]  }
 0x475   : > { %11547 = vst [vmem:[#allocation23_spill] sm:$0xff] %v10906_v14  ;;  %v10918_v43 = vld [vmem:[%s11481_s10 + $0xd0] sm:$0xff]  }
 0x476   : > { %8413 = vmatmul.mubr.bf16.vlgmr.msra.gmra.mxu0 %v3195_v41  ;;  %8425 = vmatmul.mubr.msk.bf16.vlgmr.msra.gmra.mxu1 %vm838_vm1, %v9098_v48  ;;  %v10913_v41 = vld [vmem:[%s11481_s10 + $0x178] sm:$0xff]   ;;  %v10923_v48 = vld [vmem:[%s11481_s10 + $0x90] sm:$0xff]  }
 0x477   : > { %8433 = vmatpush3.bf16.msra.mxu1 %v10216_v59  ;;  %8449 = vmatpush3.bf16.msra.mxu0 %v10216_v59  ;;  %11548 = vst [vmem:[#allocation24_spill] sm:$0xff] %v10913_v41 }
 0x478   : > { %8434 = vmatprep.subr.bf16.mxu1 %v10212_v4  ;;  %8450 = vmatprep.subr.bf16.mxu0 %v10212_v4 }
 0x479   : > { %8428 = vmatprep.mubr.msk.bf16.mxu1 %vm838_vm1, %v9099_v20  ;;  %8456 = vmatprep.mubr.msk.bf16.mxu0 %vm838_vm1, %v9100_v22  ;;  %v10932_v20 = vld [vmem:[%s11481_s10 + $0xc8] sm:$0xff]  }
 0x47a   : > { %v10937_v22 = vld [vmem:[%s11481_s10 + $0x88] sm:$0xff]  }
 0x47b   : > { %8435 = vmatpush3.bf16.msra.mxu1 %v10212_v4  ;;  %8451 = vmatpush3.bf16.msra.mxu0 %v10212_v4 }
 0x47c   : > { %8436 = vmatprep.subr.bf16.mxu1 %v10202_v51  ;;  %8452 = vmatprep.subr.bf16.mxu0 %v10202_v51 }
 0x47e   : > { %8429 = vmatmul.mubr.msk.bf16.gmra.mxu1 %vm838_vm1, %v9101_v50  ;;  %v10944_v50 = vld [vmem:[%s11481_s10 + $0xc0] sm:$0xff]  }
 0x47f   : > { %8437 = vmatpush3.bf16.msra.mxu1 %v10202_v51  ;;  %8453 = vmatpush3.bf16.msra.mxu0 %v10202_v51 }
 0x480   : > { %8438 = vmatprep.subr.bf16.mxu1 %v10208_v32  ;;  %8454 = vmatprep.subr.bf16.mxu0 %v10208_v32 }
 0x481   : > { %8440 = vmatprep.mubr.msk.bf16.mxu1 %vm838_vm1, %v9102_v52  ;;  %v10949_v52 = vld [vmem:[%s11481_s10 + $0x80] sm:$0xff]  }
 0x483   : > { %8439 = vmatpush3.bf16.msra.mxu1 %v10208_v32  ;;  %8455 = vmatpush3.bf16.msra.mxu0 %v10208_v32 }
 0x484   : > { %8464 = vmatprep.subr.bf16.mxu1 %v10216_v59  ;;  %8480 = vmatprep.subr.bf16.mxu0 %v10216_v59 }
 0x486   : > { %8441 = vmatmul.mubr.msk.bf16.vlgmr.msra.gmra.mxu1 %vm838_vm1, %v9103_v53  ;;  %8457 = vmatmul.mubr.msk.bf16.vlgmr.msra.gmra.mxu0 %vm838_vm1, %v9104_v54  ;;  %v10956_v53 = vld [vmem:[%s11481_s10 + $0x1f8] sm:$0xff]  }
 0x487   : > { %8465 = vmatpush3.bf16.msra.mxu1 %v10216_v59  ;;  %8481 = vmatpush3.bf16.msra.mxu0 %v10216_v59 }
 0x488   : > { %8466 = vmatprep.subr.bf16.mxu1 %v10212_v4  ;;  %8482 = vmatprep.subr.bf16.mxu0 %v10212_v4 }
 0x489   : > { %8444 = vmatprep.mubr.msk.bf16.mxu1 %vm838_vm1, %v9105_v55  ;;  %8460 = vmatprep.mubr.msk.bf16.mxu0 %vm838_vm1, %v9106_v24 }
 0x48b   : > { %8467 = vmatpush3.bf16.msra.mxu1 %v10212_v4  ;;  %8483 = vmatpush3.bf16.msra.mxu0 %v10212_v4 }
 0x48c   : > { %8468 = vmatprep.subr.bf16.mxu1 %v10202_v51  ;;  %8484 = vmatprep.subr.bf16.mxu0 %v10202_v51 }
 0x48e   : > { %8445 = vmatmul.mubr.msk.bf16.gmra.mxu1 %vm838_vm1, %v9107_v26  ;;  %8461 = vmatmul.mubr.msk.bf16.gmra.mxu0 %vm838_vm1, %v9108_v28 }
 0x48f   : > { %8469 = vmatpush3.bf16.msra.mxu1 %v10202_v51  ;;  %8485 = vmatpush3.bf16.msra.mxu0 %v10202_v51 }
 0x490   : > { %8470 = vmatprep.subr.bf16.mxu1 %v10208_v32  ;;  %8486 = vmatprep.subr.bf16.mxu0 %v10208_v32 }
 0x491   : > { %8472 = vmatprep.mubr.msk.bf16.mxu1 %vm838_vm1, %v9109_v30  ;;  %8488 = vmatprep.mubr.msk.bf16.mxu0 %vm838_vm1, %v9110_v36  ;;  %v7025_v36 = vld [vmem:[#allocation10] ss:$0 sm:$0xff] }
 0x493   : > { %8471 = vmatpush3.bf16.msra.mxu1 %v10208_v32  ;;  %8487 = vmatpush3.bf16.msra.mxu0 %v10208_v32 }
 0x494   : > { %8496 = vmatprep.subr.bf16.mxu1 %v10216_v59  ;;  %8512 = vmatprep.subr.bf16.mxu0 %v10216_v59 }
 0x496   : > { %8473 = vmatmul.mubr.msk.bf16.vlgmr.msra.gmra.mxu1 %vm838_vm1, %v9111_v38  ;;  %8489 = vmatmul.mubr.msk.bf16.vlgmr.msra.gmra.mxu0 %vm838_vm1, %v9112_v56 }
 0x497   : > { %8497 = vmatpush3.bf16.msra.mxu1 %v10216_v59  ;;  %8513 = vmatpush3.bf16.msra.mxu0 %v10216_v59 }
 0x498   : > { %8498 = vmatprep.subr.bf16.mxu1 %v10212_v4  ;;  %8514 = vmatprep.subr.bf16.mxu0 %v10212_v4 }
 0x499   : > { %8476 = vmatprep.mubr.msk.bf16.mxu1 %vm838_vm1, %v9113_v57  ;;  %8492 = vmatprep.mubr.msk.bf16.mxu0 %vm838_vm1, %v9114_v16 }
 0x49b   : > { %8499 = vmatpush3.bf16.msra.mxu1 %v10212_v4  ;;  %8515 = vmatpush3.bf16.msra.mxu0 %v10212_v4 }
 0x49c   : > { %8500 = vmatprep.subr.bf16.mxu1 %v10202_v51  ;;  %8516 = vmatprep.subr.bf16.mxu0 %v10202_v51 }
 0x49e   : > { %8477 = vmatmul.mubr.msk.bf16.gmra.mxu1 %vm838_vm1, %v9115_v17  ;;  %8493 = vmatmul.mubr.msk.bf16.gmra.mxu0 %vm838_vm1, %v9116_v0 }
 0x49f   : > { %8501 = vmatpush3.bf16.msra.mxu1 %v10202_v51  ;;  %8517 = vmatpush3.bf16.msra.mxu0 %v10202_v51 }
 0x4a0   : > { %8502 = vmatprep.subr.bf16.mxu1 %v10208_v32  ;;  %8518 = vmatprep.subr.bf16.mxu0 %v10208_v32 }
 0x4a1   : > { %8504 = vmatprep.mubr.msk.bf16.mxu1 %vm838_vm1, %v9117_v40  ;;  %8520 = vmatprep.mubr.msk.bf16.mxu0 %vm838_vm1, %v9118_v42 }
 0x4a3   : > { %8503 = vmatpush3.bf16.msra.mxu1 %v10208_v32  ;;  %8519 = vmatpush3.bf16.msra.mxu0 %v10208_v32 }
 0x4a4   : > { %8528 = vmatprep.subr.bf16.mxu1 %v10216_v59  ;;  %8544 = vmatprep.subr.bf16.mxu0 %v10216_v59 }
 0x4a6   : > { %8505 = vmatmul.mubr.msk.bf16.vlgmr.msra.gmra.mxu1 %vm838_vm1, %v9119_v45  ;;  %8521 = vmatmul.mubr.msk.bf16.vlgmr.msra.gmra.mxu0 %vm838_vm1, %v9120_v1 }
 0x4a7   : > { %8529 = vmatpush3.bf16.msra.mxu1 %v10216_v59  ;;  %8545 = vmatpush3.bf16.msra.mxu0 %v10216_v59  ;;  %v9123_v59 = vld [vmem:[%s11472_s1 + $0xb8] sm:$0xff]  }
 0x4a8   : > { %8530 = vmatprep.subr.bf16.mxu1 %v10212_v4  ;;  %8546 = vmatprep.subr.bf16.mxu0 %v10212_v4 }
 0x4a9   : > { %8508 = vmatprep.mubr.msk.bf16.mxu1 %vm838_vm1, %v9121_v60  ;;  %8524 = vmatprep.mubr.msk.bf16.mxu0 %vm838_vm1, %v9122_v61 }
 0x4ab   : > { %8531 = vmatpush3.bf16.msra.mxu1 %v10212_v4  ;;  %8547 = vmatpush3.bf16.msra.mxu0 %v10212_v4  ;;  %v10724_v4 = vld [vmem:[%s11481_s10 + $0x78] sm:$0xff]  }
 0x4ac   : > { %8532 = vmatprep.subr.bf16.mxu1 %v10202_v51  ;;  %8548 = vmatprep.subr.bf16.mxu0 %v10202_v51 }
 0x4ae   : > { %8509 = vmatmul.mubr.msk.bf16.gmra.mxu1 %vm838_vm1, %v9123_v59  ;;  %8525 = vmatmul.mubr.msk.bf16.gmra.mxu0 %vm838_vm1, %v9124_v2 }
 0x4af   : > { %8533 = vmatpush3.bf16.msra.mxu1 %v10202_v51  ;;  %8549 = vmatpush3.bf16.msra.mxu0 %v10202_v51  ;;  %v10740_v51 = vld [vmem:[%s11481_s10 + $0x38] sm:$0xff]  }
 0x4b0   : > { %8534 = vmatprep.subr.bf16.mxu1 %v10208_v32  ;;  %8550 = vmatprep.subr.bf16.mxu0 %v10208_v32 }
 0x4b1   : > { %8536 = vmatprep.mubr.msk.bf16.mxu1 %vm838_vm1, %v9125_v3  ;;  %8552 = vmatprep.mubr.msk.bf16.mxu0 %vm838_vm1, %v9126_v13 }
 0x4b3   : > { %8535 = vmatpush3.bf16.msra.mxu1 %v10208_v32  ;;  %8551 = vmatpush3.bf16.msra.mxu0 %v10208_v32  ;;  %v9128_v32 = vld [vmem:[%s11472_s1 + $0x108] sm:$0xff]  }
 0x4b4   : > { %7800 = vmatprep.subr.bf16.mxu1 %v10724_v4  ;;  %7840 = vmatprep.subr.bf16.mxu0 %v10790_v44 }
 0x4b6   : > { %8537 = vmatmul.mubr.msk.bf16.vlgmr.msra.gmra.mxu1 %vm838_vm1, %v9127_v63  ;;  %8553 = vmatmul.mubr.msk.bf16.vlgmr.msra.gmra.mxu0 %vm838_vm1, %v9128_v32 }
 0x4b7   : > { %8540 = vmatprep.mubr.msk.bf16.mxu1 %vm838_vm1, %v9129_v5  ;;  %8556 = vmatprep.mubr.msk.bf16.mxu0 %vm838_vm1, %v9130_v7 }
 0x4b8   : > { %7801 = vmatpush3.bf16.msra.mxu1 %v10740_v51  ;;  %7841 = vmatpush3.bf16.msra.mxu0 %v10803_v58 }
 0x4b9   : > { %7802 = vmatprep.subr.bf16.mxu1 %v10745_v62  ;;  %7842 = vmatprep.subr.bf16.mxu0 %v10822_v21 }
 0x4bc   : > { %7803 = vmatpush3.bf16.msra.mxu1 %v10767_v18  ;;  %7843 = vmatpush3.bf16.msra.mxu0 %v10827_v23 }
 0x4bd   : > { %7804 = vmatprep.subr.bf16.mxu1 %v10773_v19  ;;  %7844 = vmatprep.subr.bf16.mxu0 %v10846_v46 }
 0x4be   : > { %8541 = vmatmul.mubr.msk.bf16.gmra.mxu1 %vm838_vm1, %v9131_v49  ;;  %8557 = vmatmul.mubr.msk.bf16.gmra.mxu0 %vm838_vm1, %v9132_v9 }
 0x4c0   : > { %7805 = vmatpush3.bf16.msra.mxu1 %v10779_v29  ;;  %7845 = vmatpush3.bf16.msra.mxu0 %v10851_v47 }
 0x4c1   : > { %7806 = vmatprep.subr.bf16.mxu1 %v10785_v31  ;;  %7846 = vmatprep.subr.bf16.mxu0 %v10870_v34 }
 0x4c4   : > { %7807 = vmatpush3.bf16.msra.mxu1 %v10810_v15  ;;  %7847 = vmatpush3.bf16.msra.mxu0 %v10875_v37 }
 0x4c5   : > { %7808 = vmatprep.subr.bf16.mxu1 %v10817_v11  ;;  %7848 = vmatprep.subr.bf16.mxu0 %v10894_v39 }
 0x4c8   : > { %7809 = vmatpush3.bf16.msra.mxu1 %v10834_v33  ;;  %7849 = vmatpush3.bf16.msra.mxu0 %v10899_v12 }
 0x4c9   : > { %7810 = vmatprep.subr.bf16.mxu1 %v10841_v35  ;;  %7850 = vmatprep.subr.bf16.mxu0 %v10918_v43 }
 0x4cc   : > { %7811 = vmatpush3.bf16.msra.mxu1 %v10858_v6  ;;  %7851 = vmatpush3.bf16.msra.mxu0 %v10923_v48 }
 0x4cd   : > { %7812 = vmatprep.subr.bf16.mxu1 %v10865_v25  ;;  %7852 = vmatprep.subr.bf16.mxu0 %v10932_v20 }
 0x4d0   : > { %7813 = vmatpush3.bf16.msra.mxu1 %v10882_v8  ;;  %7853 = vmatpush3.bf16.msra.mxu0 %v10937_v22 }
 0x4d1   : > { %7814 = vmatprep.subr.bf16.mxu1 %v10889_v10  ;;  %7854 = vmatprep.subr.bf16.mxu0 %v10944_v50 }
 0x4d4   : > { %7815 = vmatpush3.bf16.msra.mxu1 %v10906_v14  ;;  %7855 = vmatpush3.bf16.msra.mxu0 %v10949_v52 }
 0x4d5   : > { %7880 = vmatprep.subr.bf16.mxu1 %v10913_v41  ;;  %7920 = vmatprep.subr.bf16.mxu0 %v10956_v53 }
 0x4f6   : > { %v7647_v54 = vpop.f32.mrf.mxu0 }
 0x4f8   : > { %v7648_v55 = vpop.f32.mrf.mxu0 }
 0x4f9   : > { %v7649_v24 = vadd.f32 %v7648_v55, %v7647_v54 }
 0x4fa   : > { %v7650_v26 = vpop.f32.mrf.mxu0 }
 0x4fb   : > { %v3814_v57 = vadd.f32 %v7649_v24, %v7025_v36 }
 0x4fc   : > { %v7651_v28 = vpop.f32.mrf.mxu0 }
 0x4fd   : > { %v7652_v30 = vadd.f32 %v7651_v28, %v7650_v26 }
 0x4ff   : > { %v3817_v42 = vadd.f32 %v7652_v30, %v7025_v36 }
 0x506   : > { %v7669_v38 = vpop.f32.mrf.mxu1 }
 0x508   : > { %v7670_v56 = vpop.f32.mrf.mxu1 }
 0x509   : > { %v7671_v16 = vadd.f32 %v7670_v56, %v7669_v38 }
 0x50a   : > { %v7672_v17 = vpop.f32.mrf.mxu1 }
 0x50b   : > { %v3855_v0 = vadd.f32 %v7671_v16, %v3814_v57 }
 0x50c   : > { %v7673_v40 = vpop.f32.mrf.mxu1 }
 0x50d   : > { %v7674_v45 = vadd.f32 %v7673_v40, %v7672_v17 }
 0x50f   : > { %v3858_v1 = vadd.f32 %v7674_v45, %v3817_v42 }
 0x516   : > { %v7691_v60 = vpop.f32.mrf.mxu0 }
 0x518   : > { %v7692_v61 = vpop.f32.mrf.mxu0 }
 0x519   : > { %v7693_v59 = vadd.f32 %v7692_v61, %v7691_v60 }
 0x51a   : > { %v7694_v2 = vpop.f32.mrf.mxu0 }
 0x51b   : > { %v3896_v3 = vadd.f32 %v7693_v59, %v3855_v0 }
 0x51c   : > { %v7695_v13 = vpop.f32.mrf.mxu0 }
 0x51d   : > { %v7696_v63 = vadd.f32 %v7695_v13, %v7694_v2 }
 0x51f   : > { %v3899_v32 = vadd.f32 %v7696_v63, %v3858_v1 }
 0x526   : > { %v7713_v5 = vpop.f32.mrf.mxu1 }
 0x528   : > { %v7714_v7 = vpop.f32.mrf.mxu1 }
 0x529   : > { %v7715_v49 = vadd.f32 %v7714_v7, %v7713_v5 }
 0x52a   : > { %v7716_v9 = vpop.f32.mrf.mxu1 }
 0x52b   : > { %v3937_v54 = vadd.f32 %v7715_v49, %v3896_v3 }
 0x52c   : > { %v7717_v55 = vpop.f32.mrf.mxu1 }
 0x52d   : > { %v7718_v24 = vadd.f32 %v7717_v55, %v7716_v9  ;;  %v10976_v55 = vld [vmem:[%s11481_s10 + $0x138] sm:$0xff]  }
 0x52e   : > { %11549 = vst [vmem:[#allocation25_spill] sm:$0xff] %v10976_v55 }
 0x52f   : > { %v3940_v26 = vadd.f32 %v7718_v24, %v3899_v32 }
 0x536   : > { %v3977_v28 = vpop.f32.mrf.mxu0  ;;  %v8426_v30 = vpop.f32.mrf.mxu1 }
 0x537   : > { %v3978_v36 = vadd.f32 %v3977_v28, %v3937_v54  ;;  %v10981_v28 = vld [vmem:[%s11481_s10 + $0x170] sm:$0xff]  }
 0x538   : > { %v8414_v38 = vpop.f32.mrf.mxu0  ;;  %v4021_v56 = vpop.f32.mrf.mxu1  ;;  %11550 = vst [vmem:[#allocation26_spill] sm:$0xff] %v10981_v28 }
 0x539   : > { %v3984_v42 = vmax.f32 %v3978_v36, 0.0 }
 0x53a   : > { %v3980_v57 = vpop.f32.mrf.mxu0  ;;  %v8427_v16 = vpop.f32.mrf.mxu1 }
 0x53b   : > { %v3981_v17 = vadd.f32 %v3980_v57, %v3940_v26 }
 0x53c   : > { %v4024_v0 = vpop.f32.mrf.mxu1  ;;  %v8415_v40 = vpop.f32.mrf.mxu0 }
 0x53d   : > { %v3985_v45 = vmax.f32 %v3981_v17, 0.0  ;;  %v4572_v24 = vpack.c.bf16 %v4024_v0, %v4021_v56  ;;  %v10991_v56 = vld [vmem:[%s11481_s10 + $0x130] sm:$0xff]   ;;  %v10997_v40 = vld [vmem:[%s11481_s10 + $0x168] sm:$0xff]  }
 0x53e   : > { %v10959_v1 = vpop.f32.mrf.mxu1  ;;  %11551 = vst [vmem:[#allocation27_spill] sm:$0xff] %v10991_v56  ;;  %11552 = vst [vmem:[#allocation28_spill] sm:$0xff] %v10997_v40 }
 0x53f   : > { %v10961_v60 = vpack.c.bf16 %v3985_v45, %v3984_v42 }
 0x540   : > { %v10963_v61 = vpop.f32.mrf.mxu1 }
 0x542   : > { %v10965_v59 = vpop.f32.mrf.mxu1 }
 0x544   : > { %v10967_v2 = vpop.f32.mrf.mxu1 }
 0x546   : > { %v8442_v3 = vpop.f32.mrf.mxu1  ;;  %v10969_v13 = vpop.f32.mrf.mxu0 }
 0x548   : > { %v4086_v63 = vpop.f32.mrf.mxu1  ;;  %v4151_v32 = vpop.f32.mrf.mxu0 }
 0x54a   : > { %v8443_v5 = vpop.f32.mrf.mxu1  ;;  %v10971_v7 = vpop.f32.mrf.mxu0 }
 0x54b   : > { %v4582_v38 = vpack.c.bf16 %v8443_v5, %v8442_v3  ;;  %v4581_v5 = vpack.c.bf16 %v8427_v16, %v8426_v30  ;;  %v11023_v30 = vld [vmem:[%s11481_s10 + $0x120] sm:$0xff]  }
 0x54c   : > { %v4089_v49 = vpop.f32.mrf.mxu1  ;;  %v4154_v9 = vpop.f32.mrf.mxu0  ;;  %11555 = vst [vmem:[#allocation31_spill] sm:$0xff] %v11023_v30 }
 0x54d   : > { %v4573_v54 = vpack.c.bf16 %v4089_v49, %v4086_v63  ;;  %v11007_v63 = vld [vmem:[%s11481_s10 + $0x128] sm:$0xff]   ;;  %v4574_v41 = vpack.c.bf16 %v4154_v9, %v4151_v32  ;;  %v11070_v9 = vld [vmem:[%s11481_s10 + $0x110] sm:$0xff]  }
 0x54e   : > { %v8446_v26 = vpop.f32.mrf.mxu1  ;;  %v10983_v36 = vpop.f32.mrf.mxu0  ;;  %11553 = vst [vmem:[#allocation29_spill] sm:$0xff] %v11007_v63  ;;  %11561 = vst [vmem:[#allocation37_spill] sm:$0xff] %v11070_v9 }
 0x54f   : > { %5223 = vmatprep.mubr.bf16.mxu1 %v4573_v54  ;;  %v11013_v54 = vld [vmem:[%s11481_s10 + $0x160] sm:$0xff]  }
 0x550   : > { %v4102_v57 = vpop.f32.mrf.mxu1  ;;  %5224 = vmatmul.mubr.bf16.vlgmr.msra.gmra.mxu1 %v4572_v24  ;;  %v10985_v17 = vpop.f32.mrf.mxu0  ;;  %11554 = vst [vmem:[#allocation30_spill] sm:$0xff] %v11013_v54 }
 0x551   : > { %7881 = vmatpush3.bf16.msra.mxu1 %v10976_v55  ;;  %5231 = vmatprep.mubr.bf16.mxu1 %v4582_v38  ;;  %v4590_v55 = vpack.c.bf16 %v10967_v2, %v10963_v61 }
 0x552   : > { %v8447_v0 = vpop.f32.mrf.mxu1  ;;  %7882 = vmatprep.subr.bf16.mxu1 %v10981_v28  ;;  %v10999_v42 = vpop.f32.mrf.mxu0 }
 0x553   : > { %v4600_v10 = vpack.c.bf16 %v8447_v0, %v8446_v26  ;;  %v11086_v26 = vld [vmem:[%s11481_s10 + $0x1e8] sm:$0xff]  }
 0x554   : > { %v4105_v45 = vpop.f32.mrf.mxu1  ;;  %v11001_v3 = vpop.f32.mrf.mxu0  ;;  %11564 = vst [vmem:[#allocation40_spill] sm:$0xff] %v11086_v26 }
 0x555   : > { %7883 = vmatpush3.bf16.msra.mxu1 %v10991_v56  ;;  %v4591_v38 = vpack.c.bf16 %v4105_v45, %v4102_v57 }
 0x556   : > { %v8474_v49 = vpop.f32.mrf.mxu1  ;;  %7884 = vmatprep.subr.bf16.mxu1 %v10997_v40  ;;  %v11015_v24 = vpop.f32.mrf.mxu0  ;;  %v11029_v40 = vld [vmem:[%s11481_s10 + $0x158] sm:$0xff]  }
 0x557   : > { %11556 = vst [vmem:[#allocation32_spill] sm:$0xff] %v11029_v40 }
 0x558   : > { %v4216_v28 = vpop.f32.mrf.mxu1  ;;  %5232 = vmatmul.mubr.bf16.gmra.mxu1 %v4581_v5  ;;  %v11017_v56 = vpop.f32.mrf.mxu0 }
 0x559   : > { %7885 = vmatpush3.bf16.msra.mxu1 %v11007_v63  ;;  %5239 = vmatprep.mubr.bf16.mxu1 %v4591_v38  ;;  %v11039_v38 = vld [vmem:[%s11481_s10 + $0x118] sm:$0xff]  }
 0x55a   : > { %v8475_v16 = vpop.f32.mrf.mxu1  ;;  %7886 = vmatprep.subr.bf16.mxu1 %v11013_v54  ;;  %v11031_v57 = vpop.f32.mrf.mxu0  ;;  %11557 = vst [vmem:[#allocation33_spill] sm:$0xff] %v11039_v38  ;;  %v11044_v54 = vld [vmem:[%s11481_s10 + $0x1b8] sm:$0xff]  }
 0x55b   : > { %11558 = vst [vmem:[#allocation34_spill] sm:$0xff] %v11044_v54  ;;  %v4584_v32 = vpack.c.bf16 %v8475_v16, %v8474_v49  ;;  %v11098_v16 = vld [vmem:[%s11481_s10 + $0x108] sm:$0xff]  }
 0x55c   : > { %v4219_v45 = vpop.f32.mrf.mxu1  ;;  %v11033_v5 = vpop.f32.mrf.mxu0  ;;  %11565 = vst [vmem:[#allocation41_spill] sm:$0xff] %v11098_v16 }
 0x55d   : > { %v4575_v63 = vpack.c.bf16 %v4219_v45, %v4216_v28  ;;  %7887 = vmatpush3.bf16.msra.mxu1 %v11023_v30  ;;  %v11054_v28 = vld [vmem:[%s11481_s10 + $0x150] sm:$0xff]  }
 0x55e   : > { %v11048_v14 = vpop.f32.mrf.mxu1  ;;  %7888 = vmatprep.subr.bf16.mxu1 %v11029_v40  ;;  %11559 = vst [vmem:[#allocation35_spill] sm:$0xff] %v11054_v28  ;;  %v11056_v45 = vpop.f32.mrf.mxu0  ;;  %v11061_v30 = vld [vmem:[%s11481_s10 + $0x1f0] sm:$0xff]  }
 0x55f   : > { %5288 = vmatprep.mubr.bf16.mxu0 %v4575_v63  ;;  %11560 = vst [vmem:[#allocation36_spill] sm:$0xff] %v11061_v30  ;;  %v11075_v63 = vld [vmem:[%s11481_s10 + $0x1b0] sm:$0xff]  }
 0x560   : > { %v4232_v61 = vpop.f32.mrf.mxu1  ;;  %5240 = vmatmul.mubr.bf16.gmra.mxu1 %v4590_v55  ;;  %5289 = vmatmul.mubr.bf16.vlgmr.msra.gmra.mxu0 %v4574_v41  ;;  %v11063_v2 = vpop.f32.mrf.mxu0  ;;  %11562 = vst [vmem:[#allocation38_spill] sm:$0xff] %v11075_v63  ;;  %v11081_v41 = vld [vmem:[%s11481_s10 + $0x148] sm:$0xff]  }
 0x561   : > { %7889 = vmatpush3.bf16.msra.mxu1 %v11039_v38  ;;  %7921 = vmatpush3.bf16.msra.mxu0 %v11044_v54  ;;  %11563 = vst [vmem:[#allocation39_spill] sm:$0xff] %v11081_v41  ;;  %v4583_v38 = vpack.c.bf16 %v10971_v7, %v10969_v13  ;;  %v11130_v7 = vld [vmem:[%s11481_s10 + $0x100] sm:$0xff]   ;;  %v4576_v54 = vpack.c.bf16 %v11033_v5, %v11017_v56 }
 0x562   : > { %5247 = vmatprep.mubr.bf16.mxu1 %v4600_v10  ;;  %v8479_v55 = vpop.f32.mrf.mxu1  ;;  %7890 = vmatprep.subr.bf16.mxu1 %v11054_v28  ;;  %v11088_v0 = vpop.f32.mrf.mxu0  ;;  %v11103_v28 = vld [vmem:[%s11481_s10 + $0x1a8] sm:$0xff]   ;;  %11569 = vst [vmem:[#allocation45_spill] sm:$0xff] %v11130_v7 }
 0x563   : > { %7922 = vmatprep.subr.bf16.mxu0 %v11061_v30  ;;  %5296 = vmatprep.mubr.bf16.mxu0 %v4584_v32  ;;  %11566 = vst [vmem:[#allocation42_spill] sm:$0xff] %v11103_v28  ;;  %v4599_v32 = vpack.c.bf16 %v10965_v59, %v10959_v1  ;;  %v4602_v56 = vpack.c.bf16 %v8479_v55, %v11048_v14  ;;  %v11194_v14 = vld [vmem:[%s11481_s10 + $0x1c8] sm:$0xff]  }
 0x564   : > { %v4235_v49 = vpop.f32.mrf.mxu1  ;;  %v11091_v10 = vpop.f32.mrf.mxu0  ;;  %11575 = vst [vmem:[#allocation51_spill] sm:$0xff] %v11194_v14 }
 0x565   : > { %7891 = vmatpush3.bf16.msra.mxu1 %v11070_v9  ;;  %7923 = vmatpush3.bf16.msra.mxu0 %v11075_v63  ;;  %v11114_v9 = vld [vmem:[%s11481_s10 + $0x140] sm:$0xff]   ;;  %v4593_v13 = vpack.c.bf16 %v4235_v49, %v4232_v61  ;;  %v11147_v61 = vld [vmem:[%s11481_s10 + $0x238] sm:$0xff]  }
 0x566   : > { %v8506_v40 = vpop.f32.mrf.mxu1  ;;  %7892 = vmatprep.subr.bf16.mxu1 %v11081_v41  ;;  %7924 = vmatprep.subr.bf16.mxu0 %v11086_v26  ;;  %11567 = vst [vmem:[#allocation43_spill] sm:$0xff] %v11114_v9  ;;  %v11119_v63 = vld [vmem:[%s11481_s10 + $0x1e0] sm:$0xff]   ;;  %v11121_v30 = vpop.f32.mrf.mxu0  ;;  %11571 = vst [vmem:[#allocation47_spill] sm:$0xff] %v11147_v61 }
 0x567   : > { %11568 = vst [vmem:[#allocation44_spill] sm:$0xff] %v11119_v63  ;;  %v11135_v41 = vld [vmem:[%s11481_s10 + $0x1a0] sm:$0xff]  }
 0x568   : > { %v4346_v1 = vpop.f32.mrf.mxu1  ;;  %5248 = vmatmul.mubr.bf16.gmra.mxu1 %v4599_v32  ;;  %5297 = vmatmul.mubr.bf16.gmra.mxu0 %v4583_v38  ;;  %v11123_v59 = vpop.f32.mrf.mxu0  ;;  %v11142_v38 = vld [vmem:[%s11481_s10 + $0x1d8] sm:$0xff]  }
 0x569   : > { %7893 = vmatpush3.bf16.msra.mxu1 %v11098_v16  ;;  %7925 = vmatpush3.bf16.msra.mxu0 %v11103_v28  ;;  %11570 = vst [vmem:[#allocation46_spill] sm:$0xff] %v11142_v38 }
 0x56a   : > { %v8507_v26 = vpop.f32.mrf.mxu1  ;;  %7894 = vmatprep.subr.bf16.mxu1 %v11114_v9  ;;  %7926 = vmatprep.subr.bf16.mxu0 %v11119_v63  ;;  %v11149_v49 = vpop.f32.mrf.mxu0  ;;  %v11158_v9 = vld [vmem:[%s11481_s10 + $0x198] sm:$0xff]   ;;  %v4592_v63 = vpack.c.bf16 %v11001_v3, %v10985_v17  ;;  %v11178_v17 = vld [vmem:[%s11481_s10 + $0x230] sm:$0xff]  }
 0x56b   : > { %5304 = vmatprep.mubr.bf16.mxu0 %v4593_v13  ;;  %11573 = vst [vmem:[#allocation49_spill] sm:$0xff] %v11178_v17 }
 0x56c   : > { %v4349_v32 = vpop.f32.mrf.mxu1  ;;  %v11151_v16 = vpop.f32.mrf.mxu0 }
 0x56d   : > { %v4577_v28 = vpack.c.bf16 %v4349_v32, %v4346_v1  ;;  %7895 = vmatpush3.bf16.msra.mxu1 %v11130_v7  ;;  %7927 = vmatpush3.bf16.msra.mxu0 %v11135_v41  ;;  %v11171_v1 = vld [vmem:[%s11481_s10 + $0x1d0] sm:$0xff]   ;;  %v4586_v7 = vpack.c.bf16 %v8507_v26, %v8506_v40  ;;  %v11199_v40 = vld [vmem:[%s11481_s10 + $0x228] sm:$0xff]  }
 0x56e   : > { %v11164_v13 = vpop.f32.mrf.mxu1  ;;  %7928 = vmatprep.subr.bf16.mxu0 %v11142_v38  ;;  %8560 = vmatprep.subr.bf16.mxu1 %v11147_v61  ;;  %11572 = vst [vmem:[#allocation48_spill] sm:$0xff] %v11171_v1  ;;  %v11173_v32 = vpop.f32.mrf.mxu0  ;;  %11576 = vst [vmem:[#allocation52_spill] sm:$0xff] %v11199_v40  ;;  %v11211_v26 = vld [vmem:[%s11481_s10 + $0x188] sm:$0xff]  }
 0x56f   : > { %5353 = vmatprep.mubr.bf16.mxu1 %v4577_v28  ;;  %v11188_v28 = vld [vmem:[%s11481_s10 + $0x190] sm:$0xff]   ;;  %11577 = vst [vmem:[#allocation53_spill] sm:$0xff] %v11211_v26 }
 0x570   : > { %v4362_v3 = vpop.f32.mrf.mxu1  ;;  %5305 = vmatmul.mubr.bf16.gmra.mxu0 %v4592_v63  ;;  %5354 = vmatmul.mubr.bf16.vlgmr.msra.gmra.mxu1 %v4576_v54  ;;  %v11181_v5 = vpop.f32.mrf.mxu0  ;;  %11574 = vst [vmem:[#allocation50_spill] sm:$0xff] %v11188_v28 }
 0x571   : > { %7929 = vmatpush3.bf16.msra.mxu0 %v11158_v9  ;;  %8561 = vmatpush3.bf16.msra.mxu1 %v11147_v61  ;;  %v4585_v61 = vpack.c.bf16 %v11031_v57, %v11015_v24  ;;  %v11236_v57 = vld [vmem:[%s11481_s10 + $0x180] sm:$0xff]  }
 0x572   : > { %5312 = vmatprep.mubr.bf16.mxu0 %v4602_v56  ;;  %v8511_v38 = vpop.f32.mrf.mxu1  ;;  %7930 = vmatprep.subr.bf16.mxu0 %v11171_v1  ;;  %v11201_v54 = vpop.f32.mrf.mxu0  ;;  %v4601_v56 = vpack.c.bf16 %v10999_v42, %v10983_v36 }
 0x573   : > { %8562 = vmatprep.subr.bf16.mxu1 %v11178_v17  ;;  %5361 = vmatprep.mubr.bf16.mxu1 %v4586_v7  ;;  %v11222_v7 = vld [vmem:[%s11481_s10 + $0x1c0] sm:$0xff]  }
 0x574   : > { %v4365_v63 = vpop.f32.mrf.mxu1  ;;  %v11204_v55 = vpop.f32.mrf.mxu0  ;;  %11578 = vst [vmem:[#allocation54_spill] sm:$0xff] %v11222_v7 }
 0x575   : > { %7931 = vmatpush3.bf16.msra.mxu0 %v11188_v28  ;;  %8563 = vmatpush3.bf16.msra.mxu1 %v11178_v17  ;;  %v11227_v17 = vld [vmem:[%s11481_s10 + $0x220] sm:$0xff]   ;;  %v4595_v24 = vpack.c.bf16 %v4365_v63, %v4362_v3 }
 0x576   : > { %v8538_v1 = vpop.f32.mrf.mxu1  ;;  %7932 = vmatprep.subr.bf16.mxu0 %v11194_v14  ;;  %8564 = vmatprep.subr.bf16.mxu1 %v11199_v40  ;;  %11579 = vst [vmem:[#allocation55_spill] sm:$0xff] %v11227_v17  ;;  %v11229_v28 = vpop.f32.mrf.mxu0 }
 0x578   : > { %v4476_v36 = vpop.f32.mrf.mxu1  ;;  %5313 = vmatmul.mubr.bf16.gmra.mxu0 %v4601_v56  ;;  %5362 = vmatmul.mubr.bf16.gmra.mxu1 %v4585_v61  ;;  %v4541_v42 = vpop.f32.mrf.mxu0  ;;  %v11243_v61 = vld [vmem:[%s11481_s10 + $0x218] sm:$0xff]  }
 0x579   : > { %7933 = vmatpush3.bf16.msra.mxu0 %v11211_v26  ;;  %8565 = vmatpush3.bf16.msra.mxu1 %v11199_v40  ;;  %v4594_v26 = vpack.c.bf16 %v11091_v10, %v11063_v2 }
 0x57a   : > { %v8539_v14 = vpop.f32.mrf.mxu1  ;;  %7934 = vmatprep.subr.bf16.mxu0 %v11222_v7  ;;  %8566 = vmatprep.subr.bf16.mxu1 %v11227_v17  ;;  %v8555_v3 = vpop.f32.mrf.mxu0  ;;  %v4578_v7 = vpack.c.bf16 %v11151_v16, %v11123_v59  ;;  %v11265_v16 = vld [vmem:[%s11481_s10 + $0x208] sm:$0xff]  }
 0x57b   : > { %5369 = vmatprep.mubr.bf16.mxu1 %v4595_v24  ;;  %v11256_v24 = vld [vmem:[%s11481_s10 + $0x210] sm:$0xff]   ;;  %v4588_v10 = vpack.c.bf16 %v8539_v14, %v8538_v1  ;;  %v4603_v1 = vpack.c.bf16 %v11088_v0, %v11056_v45  ;;  %v11277_v14 = vld [vmem:[%s11481_s10 + $0x200] sm:$0xff]   ;;  %v4596_v0 = vpack.c.bf16 %v11204_v55, %v11181_v5  ;;  %v9072_v5 = vld [vmem:[#allocation4] sm:$0xff]  }
 0x57c   : > { %v4479_v63 = vpop.f32.mrf.mxu1  ;;  %v4544_v56 = vpop.f32.mrf.mxu0  ;;  %v9073_v55 = vld [vmem:[#allocation4 + $0x10] sm:$0xff]  }
 0x57d   : > { %v4579_v40 = vpack.c.bf16 %v4479_v63, %v4476_v36  ;;  %7935 = vmatpush3.bf16.msra.mxu0 %v11236_v57  ;;  %8567 = vmatpush3.bf16.msra.mxu1 %v11227_v17  ;;  %v4604_v17 = vpack.c.bf16 %v8511_v38, %v11164_v13 }
 0x57e   : > { %8568 = vmatprep.subr.bf16.mxu1 %v11243_v61  ;;  %8584 = vmatprep.subr.bf16.mxu0 %v11545_v27  ;;  %v8542_v36 = vpop.f32.mrf.mxu1  ;;  %v8558_v63 = vpop.f32.mrf.mxu0 }
 0x57f   : > { %5418 = vmatprep.mubr.bf16.mxu0 %v4579_v40 }
 0x580   : > { %5370 = vmatmul.mubr.bf16.gmra.mxu1 %v4594_v26  ;;  %5419 = vmatmul.mubr.bf16.vlgmr.msra.gmra.mxu0 %v4578_v7  ;;  %v4492_v2 = vpop.f32.mrf.mxu1  ;;  %v4557_v40 = vpop.f32.mrf.mxu0  ;;  %v4580_v26 = vpack.c.bf16 %v4544_v56, %v4541_v42 }
 0x581   : > { %8569 = vmatpush3.bf16.msra.mxu1 %v11243_v61  ;;  %8585 = vmatpush3.bf16.msra.mxu0 %v10961_v60 }
 0x582   : > { %5377 = vmatprep.mubr.bf16.mxu1 %v4604_v17  ;;  %8570 = vmatprep.subr.bf16.mxu1 %v11256_v24  ;;  %v8543_v59 = vpop.f32.mrf.mxu1  ;;  %v4587_v17 = vpack.c.bf16 %v11149_v49, %v11121_v30  ;;  %v8559_v7 = vpop.f32.mrf.mxu0  ;;  %v4589_v30 = vpack.c.bf16 %v8555_v3, %v11229_v28  ;;  %v4605_v28 = vpack.c.bf16 %v11201_v54, %v11173_v32  ;;  %v9074_v32 = vld [vmem:[#allocation4 + $0x8] sm:$0xff]   ;;  %v9075_v54 = vld [vmem:[#allocation4 + $0x20] sm:$0xff]   ;;  %v9076_v3 = vld [vmem:[#allocation4 + $0x18] sm:$0xff]  }
 0x583   : > { %5426 = vmatprep.mubr.bf16.mxu0 %v4588_v10  ;;  %8590 = vmatprep.subr.bf16.mxu0 %v11545_v27  ;;  %v4606_v42 = vpack.c.bf16 %v8543_v59, %v8542_v36  ;;  %v4607_v56 = vpack.c.bf16 %v8559_v7, %v8558_v63  ;;  %v9077_v36 = vld [vmem:[#allocation4 + $0x30] sm:$0xff]   ;;  %v9078_v63 = vld [vmem:[#allocation4 + $0x28] sm:$0xff]   ;;  %v9079_v10 = vld [vmem:[#allocation4 + $0x38] sm:$0xff]  }
 0x584   : > { %v4495_v38 = vpop.f32.mrf.mxu1  ;;  %v4560_v45 = vpop.f32.mrf.mxu0 }
 0x585   : > { %8571 = vmatpush3.bf16.msra.mxu1 %v11256_v24  ;;  %v4597_v13 = vpack.c.bf16 %v4495_v38, %v4492_v2  ;;  %v4598_v49 = vpack.c.bf16 %v4560_v45, %v4557_v40  ;;  %v9080_v2 = vld [vmem:[#allocation4 + $0x40] sm:$0xff]  }
 0x586   : > { %8572 = vmatprep.subr.bf16.mxu1 %v11265_v16 }
 0x588   : > { %5378 = vmatmul.mubr.bf16.gmra.mxu1 %v4603_v1  ;;  %5427 = vmatmul.mubr.bf16.gmra.mxu0 %v4587_v17 }
 0x589   : > { %8573 = vmatpush3.bf16.msra.mxu1 %v11265_v16  ;;  %5434 = vmatprep.mubr.bf16.mxu0 %v4597_v13 }
 0x58a   : > { %8574 = vmatprep.subr.bf16.mxu1 %v11277_v14  ;;  %8576 = vmatprep.mubr.bf16.mxu1 %v4580_v26 }
 0x58d   : > { %8575 = vmatpush3.bf16.msra.mxu1 %v11277_v14 }
 0x58e   : > { %8596 = vmatprep.subr.bf16.mxu1 %v11545_v27 }
 0x590   : > { %5435 = vmatmul.mubr.bf16.gmra.mxu0 %v4596_v0  ;;  %8577 = vmatmul.mubr.bf16.vlgmr.msra.gmra.mxu1 %v4589_v30 }
 0x591   : > { %8597 = vmatpush3.bf16.msra.mxu1 %v10961_v60  ;;  %5442 = vmatprep.mubr.bf16.mxu0 %v4606_v42 }
 0x592   : > { %8580 = vmatprep.mubr.bf16.mxu1 %v4598_v49  ;;  %8608 = vmatprep.subr.bf16.mxu1 %v11545_v27 }
 0x598   : > { %5443 = vmatmul.mubr.bf16.gmra.mxu0 %v4605_v28  ;;  %8581 = vmatmul.mubr.bf16.gmra.mxu1 %v4607_v56 }
 0x599   : > { %8586 = vmatprep.mubr.msk.bf16.mxu0 %vm9407_vm2, %v11545_v27  ;;  %8598 = vmatprep.mubr.msk.bf16.mxu1 %vm9407_vm2, %v11545_v27 }
 0x5a0   : > { %8587 = vmatmul.mubr.msk.bf16.vlgmr.msra.gmra.mxu0 %vm5535_vm3, %v9072_v5  ;;  %8599 = vmatmul.mubr.msk.bf16.vlgmr.msra.gmra.mxu1 %vm5535_vm3, %v9073_v55 }
 0x5a1   : > { %8591 = vmatpush3.bf16.msra.mxu0 %v10961_v60  ;;  %8609 = vmatpush3.bf16.msra.mxu1 %v10961_v60 }
 0x5a2   : > { %8592 = vmatprep.mubr.msk.bf16.mxu0 %vm9407_vm2, %v11545_v27  ;;  %8602 = vmatprep.subr.bf16.mxu0 %v11545_v27 }
 0x5a3   : > { %8610 = vmatprep.mubr.msk.bf16.mxu1 %vm9407_vm2, %v11545_v27  ;;  %8620 = vmatprep.subr.bf16.mxu1 %v11545_v27 }
 0x5a8   : > { %8593 = vmatmul.mubr.msk.bf16.vlgmr.msra.gmra.mxu0 %vm5535_vm3, %v9074_v32  ;;  %8611 = vmatmul.mubr.msk.bf16.vlgmr.msra.gmra.mxu1 %vm5535_vm3, %v9075_v54 }
 0x5a9   : > { %8603 = vmatpush3.bf16.msra.mxu0 %v10961_v60  ;;  %8621 = vmatpush3.bf16.msra.mxu1 %v10961_v60 }
 0x5aa   : > { %8604 = vmatprep.mubr.msk.bf16.mxu0 %vm9407_vm2, %v11545_v27  ;;  %8614 = vmatprep.subr.bf16.mxu0 %v11545_v27 }
 0x5ab   : > { %8622 = vmatprep.mubr.msk.bf16.mxu1 %vm9407_vm2, %v11545_v27  ;;  %8632 = vmatprep.subr.bf16.mxu1 %v11545_v27 }
 0x5b0   : > { %8605 = vmatmul.mubr.msk.bf16.vlgmr.msra.gmra.mxu0 %vm5535_vm3, %v9076_v3  ;;  %8623 = vmatmul.mubr.msk.bf16.vlgmr.msra.gmra.mxu1 %vm5535_vm3, %v9077_v36 }
 0x5b1   : > { %8615 = vmatpush3.bf16.msra.mxu0 %v10961_v60  ;;  %8633 = vmatpush3.bf16.msra.mxu1 %v10961_v60 }
 0x5b2   : > { %8616 = vmatprep.mubr.msk.bf16.mxu0 %vm9407_vm2, %v11545_v27  ;;  %8626 = vmatprep.subr.bf16.mxu0 %v11545_v27 }
 0x5b3   : > { %8634 = vmatprep.mubr.msk.bf16.mxu1 %vm9407_vm2, %v11545_v27  ;;  %8012 = vmatprep.subr.bf16.mxu1 %v10790_v44 }
 0x5b8   : > { %8617 = vmatmul.mubr.msk.bf16.vlgmr.msra.gmra.mxu0 %vm5535_vm3, %v9078_v63  ;;  %8635 = vmatmul.mubr.msk.bf16.vlgmr.msra.gmra.mxu1 %vm5535_vm3, %v9080_v2 }
 0x5b9   : > { %8627 = vmatpush3.bf16.msra.mxu0 %v10961_v60  ;;  %8628 = vmatprep.mubr.msk.bf16.mxu0 %vm9407_vm2, %v11545_v27 }
 0x5ba   : > { %7990 = vmatprep.subr.bf16.mxu0 %v10724_v4  ;;  %8013 = vmatpush3.bf16.msra.mxu1 %v10803_v58  ;;  %v11580_v4 = vld [vmem:[#allocation22_spill] sm:$0xff] }
 0x5bb   : > { %8014 = vmatprep.subr.bf16.mxu1 %v10822_v21 }
 0x5be   : > { %8015 = vmatpush3.bf16.msra.mxu1 %v10827_v23 }
 0x5bf   : > { %8016 = vmatprep.subr.bf16.mxu1 %v10846_v46  ;;  %v11363_v46 = vld [vmem:[#allocation12] ss:$0 sm:$0xff] }
 0x5c0   : > { %8629 = vmatmul.mubr.msk.bf16.vlgmr.msra.gmra.mxu0 %vm5535_vm3, %v9079_v10 }
 0x5c1   : > { %7991 = vmatpush3.bf16.msra.mxu0 %v10740_v51  ;;  %v11581_v51 = vld [vmem:[#allocation23_spill] sm:$0xff] }
 0x5c2   : > { %7992 = vmatprep.subr.bf16.mxu0 %v10745_v62  ;;  %8017 = vmatpush3.bf16.msra.mxu1 %v10851_v47  ;;  %v11582_v62 = vld [vmem:[#allocation24_spill] sm:$0xff] }
 0x5c3   : > { %8018 = vmatprep.subr.bf16.mxu1 %v10870_v34 }
 0x5c5   : > { %7993 = vmatpush3.bf16.msra.mxu0 %v10767_v18 }
 0x5c6   : > { %7994 = vmatprep.subr.bf16.mxu0 %v10773_v19  ;;  %8019 = vmatpush3.bf16.msra.mxu1 %v10875_v37 }
 0x5c7   : > { %8020 = vmatprep.subr.bf16.mxu1 %v10894_v39 }
 0x5c9   : > { %7995 = vmatpush3.bf16.msra.mxu0 %v10779_v29 }
 0x5ca   : > { %7996 = vmatprep.subr.bf16.mxu0 %v10785_v31  ;;  %8021 = vmatpush3.bf16.msra.mxu1 %v10899_v12 }
 0x5cb   : > { %8022 = vmatprep.subr.bf16.mxu1 %v10918_v43 }
 0x5cd   : > { %7997 = vmatpush3.bf16.msra.mxu0 %v10810_v15 }
 0x5ce   : > { %7998 = vmatprep.subr.bf16.mxu0 %v10817_v11  ;;  %8023 = vmatpush3.bf16.msra.mxu1 %v10923_v48 }
 0x5cf   : > { %8024 = vmatprep.subr.bf16.mxu1 %v10932_v20 }
 0x5d1   : > { %7999 = vmatpush3.bf16.msra.mxu0 %v10834_v33 }
 0x5d2   : > { %8000 = vmatprep.subr.bf16.mxu0 %v10841_v35  ;;  %8025 = vmatpush3.bf16.msra.mxu1 %v10937_v22 }
 0x5d3   : > { %8026 = vmatprep.subr.bf16.mxu1 %v10944_v50 }
 0x5d5   : > { %8001 = vmatpush3.bf16.msra.mxu0 %v10858_v6 }
 0x5d6   : > { %8002 = vmatprep.subr.bf16.mxu0 %v10865_v25  ;;  %8027 = vmatpush3.bf16.msra.mxu1 %v10949_v52 }
 0x5d7   : > { %8056 = vmatprep.subr.bf16.mxu1 %v10956_v53 }
 0x5d9   : > { %8003 = vmatpush3.bf16.msra.mxu0 %v10882_v8 }
 0x5da   : > { %8004 = vmatprep.subr.bf16.mxu0 %v11580_v4 }
 0x5dd   : > { %8005 = vmatpush3.bf16.msra.mxu0 %v11581_v51 }
 0x5de   : > { %8034 = vmatprep.subr.bf16.mxu0 %v11582_v62 }
 0x610   : > { %v7816_v18 = vpop.f32.mrf.mxu1 }
 0x612   : > { %v7817_v19 = vpop.f32.mrf.mxu1 }
 0x613   : > { %v7818_v29 = vadd.f32 %v7817_v19, %v7816_v18 }
 0x614   : > { %v7819_v31 = vpop.f32.mrf.mxu1 }
 0x615   : > { %v5226_v37 = vadd.f32 %v7818_v29, %v11363_v46 }
 0x616   : > { %v7820_v44 = vpop.f32.mrf.mxu1 }
 0x617   : > { %v7821_v58 = vadd.f32 %v7820_v44, %v7819_v31 }
 0x618   : > { %v7822_v15 = vpop.f32.mrf.mxu1 }
 0x619   : > { %v5229_v50 = vadd.f32 %v7821_v58, %v11363_v46 }
 0x61a   : > { %v7823_v11 = vpop.f32.mrf.mxu1 }
 0x61b   : > { %v7824_v21 = vadd.f32 %v7823_v11, %v7822_v15 }
 0x61c   : > { %v7825_v23 = vpop.f32.mrf.mxu1 }
 0x61d   : > { %v5234_v1 = vadd.f32 %v7824_v21, %v11363_v46 }
 0x61e   : > { %v7826_v33 = vpop.f32.mrf.mxu1 }
 0x61f   : > { %v7827_v35 = vadd.f32 %v7826_v33, %v7825_v23 }
 0x620   : > { %v7828_v47 = vpop.f32.mrf.mxu1  ;;  %v7856_v6 = vpop.f32.mrf.mxu0 }
 0x621   : > { %v5237_v42 = vadd.f32 %v7827_v35, %v11363_v46 }
 0x622   : > { %v7829_v25 = vpop.f32.mrf.mxu1  ;;  %v7857_v34 = vpop.f32.mrf.mxu0 }
 0x623   : > { %v7830_v8 = vadd.f32 %v7829_v25, %v7828_v47  ;;  %v7858_v39 = vadd.f32 %v7857_v34, %v7856_v6 }
 0x624   : > { %v7831_v12 = vpop.f32.mrf.mxu1  ;;  %v7859_v43 = vpop.f32.mrf.mxu0 }
 0x625   : > { %v5291_v48 = vadd.f32 %v7858_v39, %v5226_v37  ;;  %v5242_v36 = vadd.f32 %v7830_v8, %v11363_v46 }
 0x626   : > { %v7832_v20 = vpop.f32.mrf.mxu1  ;;  %v7860_v22 = vpop.f32.mrf.mxu0 }
 0x627   : > { %v7833_v52 = vadd.f32 %v7832_v20, %v7831_v12  ;;  %v7861_v53 = vadd.f32 %v7860_v22, %v7859_v43 }
 0x628   : > { %v7834_v60 = vpop.f32.mrf.mxu1  ;;  %v7862_v59 = vpop.f32.mrf.mxu0 }
 0x629   : > { %v5294_v40 = vadd.f32 %v7861_v53, %v5229_v50  ;;  %v5245_v29 = vadd.f32 %v7833_v52, %v11363_v46 }
 0x62a   : > { %v7835_v38 = vpop.f32.mrf.mxu1  ;;  %v7863_v13 = vpop.f32.mrf.mxu0 }
 0x62b   : > { %v7836_v17 = vadd.f32 %v7835_v38, %v7834_v60  ;;  %v7864_v26 = vadd.f32 %v7863_v13, %v7862_v59 }
 0x62c   : > { %v7837_v7 = vpop.f32.mrf.mxu1  ;;  %v7865_v45 = vpop.f32.mrf.mxu0 }
 0x62d   : > { %v5299_v30 = vadd.f32 %v7864_v26, %v5234_v1  ;;  %v5250_v35 = vadd.f32 %v7836_v17, %v11363_v46 }
 0x62e   : > { %v7838_v0 = vpop.f32.mrf.mxu1  ;;  %v7866_v49 = vpop.f32.mrf.mxu0 }
 0x62f   : > { %v7839_v56 = vadd.f32 %v7838_v0, %v7837_v7  ;;  %v7867_v28 = vadd.f32 %v7866_v49, %v7865_v45 }
 0x630   : > { %v7868_v5 = vpop.f32.mrf.mxu0  ;;  %v7896_v55 = vpop.f32.mrf.mxu1 }
 0x631   : > { %v5302_v32 = vadd.f32 %v7867_v28, %v5237_v42  ;;  %v5253_v43 = vadd.f32 %v7839_v56, %v11363_v46 }
 0x632   : > { %v7869_v54 = vpop.f32.mrf.mxu0  ;;  %v7897_v3 = vpop.f32.mrf.mxu1 }
 0x633   : > { %v7870_v63 = vadd.f32 %v7869_v54, %v7868_v5  ;;  %v7898_v2 = vadd.f32 %v7897_v3, %v7896_v55 }
 0x634   : > { %v7871_v10 = vpop.f32.mrf.mxu0  ;;  %v7899_v4 = vpop.f32.mrf.mxu1 }
 0x635   : > { %v5307_v51 = vadd.f32 %v7870_v63, %v5242_v36  ;;  %v5356_v62 = vadd.f32 %v7898_v2, %v5291_v48 }
 0x636   : > { %v7872_v18 = vpop.f32.mrf.mxu0  ;;  %v7900_v19 = vpop.f32.mrf.mxu1 }
 0x637   : > { %v7873_v31 = vadd.f32 %v7872_v18, %v7871_v10  ;;  %v7901_v44 = vadd.f32 %v7900_v19, %v7899_v4 }
 0x638   : > { %v7874_v58 = vpop.f32.mrf.mxu0  ;;  %v7902_v15 = vpop.f32.mrf.mxu1 }
 0x639   : > { %v5310_v11 = vadd.f32 %v7873_v31, %v5245_v29  ;;  %v5359_v21 = vadd.f32 %v7901_v44, %v5294_v40 }
 0x63a   : > { %v7875_v23 = vpop.f32.mrf.mxu0  ;;  %v7903_v33 = vpop.f32.mrf.mxu1 }
 0x63b   : > { %v7876_v47 = vadd.f32 %v7875_v23, %v7874_v58  ;;  %v7904_v6 = vadd.f32 %v7903_v33, %v7902_v15 }
 0x63c   : > { %v7877_v25 = vpop.f32.mrf.mxu0  ;;  %v7905_v34 = vpop.f32.mrf.mxu1 }
 0x63d   : > { %v5315_v37 = vadd.f32 %v7876_v47, %v5250_v35  ;;  %v5364_v8 = vadd.f32 %v7904_v6, %v5299_v30 }
 0x63e   : > { %v7878_v39 = vpop.f32.mrf.mxu0  ;;  %v7906_v12 = vpop.f32.mrf.mxu1 }
 0x63f   : > { %v7879_v48 = vadd.f32 %v7878_v39, %v7877_v25  ;;  %v7907_v20 = vadd.f32 %v7906_v12, %v7905_v34 }
 0x640   : > { %v7908_v22 = vpop.f32.mrf.mxu1  ;;  %v7936_v50 = vpop.f32.mrf.mxu0 }
 0x641   : > { %v5318_v52 = vadd.f32 %v7879_v48, %v5253_v43  ;;  %v5367_v53 = vadd.f32 %v7907_v20, %v5302_v32 }
 0x642   : > { %v7909_v60 = vpop.f32.mrf.mxu1  ;;  %v7937_v59 = vpop.f32.mrf.mxu0 }
 0x643   : > { %v7910_v40 = vadd.f32 %v7909_v60, %v7908_v22  ;;  %v7938_v38 = vadd.f32 %v7937_v59, %v7936_v50 }
 0x644   : > { %v7911_v13 = vpop.f32.mrf.mxu1  ;;  %v7939_v1 = vpop.f32.mrf.mxu0 }
 0x645   : > { %v5372_v17 = vadd.f32 %v7910_v40, %v5307_v51  ;;  %v5421_v26 = vadd.f32 %v7938_v38, %v5356_v62 }
 0x646   : > { %v7912_v7 = vpop.f32.mrf.mxu1  ;;  %v7940_v45 = vpop.f32.mrf.mxu0 }
 0x647   : > { %v7913_v30 = vadd.f32 %v7912_v7, %v7911_v13  ;;  %v7941_v0 = vadd.f32 %v7940_v45, %v7939_v1 }
 0x648   : > { %v7914_v49 = vpop.f32.mrf.mxu1  ;;  %v7942_v42 = vpop.f32.mrf.mxu0 }
 0x649   : > { %v5375_v56 = vadd.f32 %v7913_v30, %v5310_v11  ;;  %v5424_v28 = vadd.f32 %v7941_v0, %v5359_v21 }
 0x64a   : > { %v7915_v5 = vpop.f32.mrf.mxu1  ;;  %v7943_v55 = vpop.f32.mrf.mxu0 }
 0x64b   : > { %v7916_v54 = vadd.f32 %v7915_v5, %v7914_v49  ;;  %v7944_v32 = vadd.f32 %v7943_v55, %v7942_v42 }
 0x64c   : > { %v7917_v3 = vpop.f32.mrf.mxu1  ;;  %v7945_v36 = vpop.f32.mrf.mxu0 }
 0x64d   : > { %v5380_v63 = vadd.f32 %v7916_v54, %v5315_v37  ;;  %v5429_v2 = vadd.f32 %v7944_v32, %v5364_v8 }
 0x64e   : > { %v7918_v10 = vpop.f32.mrf.mxu1  ;;  %v7946_v4 = vpop.f32.mrf.mxu0 }
 0x64f   : > { %v7919_v51 = vadd.f32 %v7918_v10, %v7917_v3  ;;  %v7947_v62 = vadd.f32 %v7946_v4, %v7945_v36 }
 0x650   : > { %v7948_v18 = vpop.f32.mrf.mxu0  ;;  %v8578_v19 = vpop.f32.mrf.mxu1 }
 0x651   : > { %v5383_v29 = vadd.f32 %v7919_v51, %v5318_v52  ;;  %v5494_v31 = vadd.f32 %v8578_v19, %v5429_v2  ;;  %v5432_v44 = vadd.f32 %v7947_v62, %v5367_v53 }
 0x652   : > { %v7949_v58 = vpop.f32.mrf.mxu0  ;;  %v5485_v15 = vpop.f32.mrf.mxu1 }
 0x653   : > { %v7950_v11 = vadd.f32 %v7949_v58, %v7948_v18  ;;  %v5486_v21 = vadd.f32 %v5485_v15, %v5421_v26  ;;  %v5518_v34 = vmax.f32 %v5494_v31, 0.0 }
 0x654   : > { %v7951_v23 = vpop.f32.mrf.mxu0  ;;  %v8579_v33 = vpop.f32.mrf.mxu1 }
 0x655   : > { %v5497_v35 = vadd.f32 %v8579_v33, %v5432_v44  ;;  %v5437_v47 = vadd.f32 %v7950_v11, %v5372_v17  ;;  %v5516_v48 = vmax.f32 %v5486_v21, 0.0 }
 0x656   : > { %v7952_v6 = vpop.f32.mrf.mxu0  ;;  %v5488_v25 = vpop.f32.mrf.mxu1 }
 0x657   : > { %v5519_v37 = vmax.f32 %v5497_v35, 0.0  ;;  %v7953_v8 = vadd.f32 %v7952_v6, %v7951_v23  ;;  %v5489_v39 = vadd.f32 %v5488_v25, %v5424_v28  ;;  %v11583_v35 = vld [vmem:[#allocation25_spill] sm:$0xff]  ;;  %v11584_v6 = vld [vmem:[#allocation26_spill] sm:$0xff] }
 0x658   : > { %v7954_v12 = vpop.f32.mrf.mxu0  ;;  %v8582_v43 = vpop.f32.mrf.mxu1 }
 0x659   : > { %v11373_v20 = vpack.c.bf16 %v5519_v37, %v5518_v34  ;;  %v5517_v22 = vmax.f32 %v5489_v39, 0.0  ;;  %v5440_v50 = vadd.f32 %v7953_v8, %v5375_v56 }
 0x65a   : > { %v7955_v52 = vpop.f32.mrf.mxu0  ;;  %v5501_v53 = vpop.f32.mrf.mxu1 }
 0x65b   : > { %v11375_v60 = vpack.c.bf16 %v5517_v22, %v5516_v48  ;;  %v7956_v59 = vadd.f32 %v7955_v52, %v7954_v12  ;;  %v5502_v40 = vadd.f32 %v5501_v53, %v5437_v47  ;;  %v11585_v12 = vld [vmem:[#allocation27_spill] sm:$0xff]  ;;  %v11587_v53 = vld [vmem:[#allocation29_spill] sm:$0xff] }
 0x65c   : > { %v7957_v38 = vpop.f32.mrf.mxu0  ;;  %v8583_v13 = vpop.f32.mrf.mxu1 }
 0x65d   : > { %v5445_v1 = vadd.f32 %v7956_v59, %v5380_v63  ;;  %v5520_v42 = vmax.f32 %v5502_v40, 0.0  ;;  %v11588_v59 = vld [vmem:[#allocation34_spill] sm:$0xff] }
 0x65e   : > { %v7958_v17 = vpop.f32.mrf.mxu0  ;;  %v5504_v26 = vpop.f32.mrf.mxu1  ;;  %v11589_v40 = vld [vmem:[#allocation30_spill] sm:$0xff] }
 0x65f   : > { %v5510_v7 = vadd.f32 %v8582_v43, %v5445_v1  ;;  %v7959_v45 = vadd.f32 %v7958_v17, %v7957_v38  ;;  %v5505_v30 = vadd.f32 %v5504_v26, %v5440_v50  ;;  %v11586_v43 = vld [vmem:[#allocation28_spill] sm:$0xff] }
 0x660   : > { %v5573_v0 = vpop.f32.mrf.mxu0  ;;  %v5677_v49 = vpop.f32.mrf.mxu1  ;;  %v11590_v38 = vld [vmem:[#allocation36_spill] sm:$0xff] }
 0x661   : > { %v5448_v28 = vadd.f32 %v7959_v45, %v5383_v29  ;;  %v5521_v5 = vmax.f32 %v5505_v30, 0.0  ;;  %v5522_v2 = vmax.f32 %v5510_v7, 0.0  ;;  %v11591_v7 = vld [vmem:[#allocation31_spill] sm:$0xff]  ;;  %v11592_v45 = vld [vmem:[#allocation38_spill] sm:$0xff] }
 0x662   : > { %v8588_v56 = vpop.f32.mrf.mxu0  ;;  %v8600_v55 = vpop.f32.mrf.mxu1 }
 0x663   : > { %v5513_v54 = vadd.f32 %v8583_v13, %v5448_v28  ;;  %v11377_v32 = vpack.c.bf16 %v5521_v5, %v5520_v42  ;;  %v11595_v56 = vld [vmem:[#allocation33_spill] sm:$0xff]  ;;  %v11596_v55 = vld [vmem:[#allocation42_spill] sm:$0xff] }
 0x664   : > { %v5576_v3 = vpop.f32.mrf.mxu0  ;;  %v5680_v36 = vpop.f32.mrf.mxu1 }
 0x665   : > { %v5523_v10 = vmax.f32 %v5513_v54, 0.0  ;;  %v5996_v15 = vpack.c.bf16 %v5576_v3, %v5573_v0  ;;  %v5998_v37 = vpack.c.bf16 %v5680_v36, %v5677_v49  ;;  %v11593_v0 = vld [vmem:[#allocation32_spill] sm:$0xff]  ;;  %v11597_v54 = vld [vmem:[#allocation35_spill] sm:$0xff] }
 0x666   : > { %v8589_v63 = vpop.f32.mrf.mxu0  ;;  %v8601_v4 = vpop.f32.mrf.mxu1  ;;  %v11594_v49 = vld [vmem:[#allocation40_spill] sm:$0xff] }
 0x667   : > { %v11379_v51 = vpack.c.bf16 %v5523_v10, %v5522_v2  ;;  %v11598_v3 = vld [vmem:[#allocation44_spill] sm:$0xff]  ;;  %v11599_v10 = vld [vmem:[#allocation37_spill] sm:$0xff]  ;;  %v11600_v4 = vld [vmem:[#allocation39_spill] sm:$0xff] }
 0x668   : > { %v5625_v62 = vpop.f32.mrf.mxu0  ;;  %v11381_v18 = vpop.f32.mrf.mxu1 }
 0x66a   : > { %v8594_v19 = vpop.f32.mrf.mxu0  ;;  %v8612_v31 = vpop.f32.mrf.mxu1 }
 0x66b   : > { %v11602_v31 = vld [vmem:[#allocation41_spill] sm:$0xff] }
 0x66c   : > { %v5628_v29 = vpop.f32.mrf.mxu0  ;;  %v11383_v44 = vpop.f32.mrf.mxu1 }
 0x66d   : > { %v5997_v58 = vpack.c.bf16 %v5628_v29, %v5625_v62  ;;  %v11601_v62 = vld [vmem:[#allocation46_spill] sm:$0xff]  ;;  %v11603_v29 = vld [vmem:[#allocation43_spill] sm:$0xff] }
 0x66e   : > { %v8595_v11 = vpop.f32.mrf.mxu0  ;;  %v8613_v21 = vpop.f32.mrf.mxu1 }
 0x66f   : > { %6037 = vmatprep.mubr.bf16.mxu0 %v5997_v58  ;;  %v11604_v58 = vld [vmem:[#allocation48_spill] sm:$0xff]  ;;  %v11606_v11 = vld [vmem:[#allocation50_spill] sm:$0xff]  ;;  %v11607_v21 = vld [vmem:[#allocation51_spill] sm:$0xff] }
 0x670   : > { %v5729_v23 = vpop.f32.mrf.mxu0  ;;  %6038 = vmatmul.mubr.bf16.vlgmr.msra.gmra.mxu0 %v5996_v15  ;;  %v11385_v33 = vpop.f32.mrf.mxu1  ;;  %v11605_v15 = vld [vmem:[#allocation45_spill] sm:$0xff] }
 0x671   : > { %8035 = vmatpush3.bf16.msra.mxu0 %v11583_v35  ;;  %v11609_v35 = vld [vmem:[#allocation47_spill] sm:$0xff] }
 0x672   : > { %v8606_v47 = vpop.f32.mrf.mxu0  ;;  %8036 = vmatprep.subr.bf16.mxu0 %v11584_v6  ;;  %v8624_v25 = vpop.f32.mrf.mxu1 }
 0x673   : > { %v9081_v47 = vld [vmem:[#allocation13 + $0x38] sm:$0xff]  }
 0x674   : > { %v5732_v34 = vpop.f32.mrf.mxu0  ;;  %v5888_v8 = vpop.f32.mrf.mxu1  ;;  %v11612_v25 = vld [vmem:[#allocation52_spill] sm:$0xff] }
 0x675   : > { %v5999_v39 = vpack.c.bf16 %v5732_v34, %v5729_v23  ;;  %8037 = vmatpush3.bf16.msra.mxu0 %v11585_v12  ;;  %v11608_v23 = vld [vmem:[#allocation53_spill] sm:$0xff]  ;;  %v6002_v6 = vpack.c.bf16 %v5888_v8, %v11385_v33  ;;  %v9083_v34 = vld [vmem:[#allocation13 + $0x28] sm:$0xff]  }
 0x676   : > { %8038 = vmatprep.subr.bf16.mxu0 %v11586_v43  ;;  %v8607_v48 = vpop.f32.mrf.mxu0  ;;  %v8625_v22 = vpop.f32.mrf.mxu1  ;;  %v9085_v33 = vld [vmem:[#allocation13 + $0x18] sm:$0xff]   ;;  %v9087_v8 = vld [vmem:[#allocation13 + $0x8] sm:$0xff]   ;;  %v9092_v12 = vld [vmem:[#allocation13 + $0x20] sm:$0xff]  }
 0x677   : > { %6078 = vmatprep.mubr.bf16.mxu1 %v5999_v39  ;;  %v9091_v39 = vld [vmem:[#allocation13 + $0x28] sm:$0xff]   ;;  %v9093_v43 = vld [vmem:[#allocation13 + $0x18] sm:$0xff]  }
 0x678   : > { %6079 = vmatmul.mubr.bf16.vlgmr.msra.gmra.mxu1 %v5998_v37  ;;  %v5833_v50 = vpop.f32.mrf.mxu0  ;;  %v11391_v52 = vpop.f32.mrf.mxu1  ;;  %v11613_v37 = vld [vmem:[#allocation55_spill] sm:$0xff] }
 0x679   : > { %8039 = vmatpush3.bf16.msra.mxu0 %v11587_v53  ;;  %8057 = vmatpush3.bf16.msra.mxu1 %v11588_v59 }
 0x67a   : > { %8040 = vmatprep.subr.bf16.mxu0 %v11589_v40  ;;  %8058 = vmatprep.subr.bf16.mxu1 %v11590_v38  ;;  %v8618_v13 = vpop.f32.mrf.mxu0  ;;  %v8636_v1 = vpop.f32.mrf.mxu1 }
 0x67c   : > { %v5836_v17 = vpop.f32.mrf.mxu0  ;;  %v11397_v26 = vpop.f32.mrf.mxu1 }
 0x67d   : > { %8041 = vmatpush3.bf16.msra.mxu0 %v11591_v7  ;;  %8059 = vmatpush3.bf16.msra.mxu1 %v11592_v45  ;;  %v6001_v30 = vpack.c.bf16 %v5836_v17, %v5833_v50 }
 0x67e   : > { %8042 = vmatprep.subr.bf16.mxu0 %v11593_v0  ;;  %8060 = vmatprep.subr.bf16.mxu1 %v11594_v49  ;;  %v8619_v42 = vpop.f32.mrf.mxu0  ;;  %v8637_v28 = vpop.f32.mrf.mxu1 }
 0x67f   : > { %6119 = vmatprep.mubr.bf16.mxu0 %v6001_v30 }
 0x680   : > { %v5937_v5 = vpop.f32.mrf.mxu0 }
 0x681   : > { %8043 = vmatpush3.bf16.msra.mxu0 %v11595_v56  ;;  %8061 = vmatpush3.bf16.msra.mxu1 %v11596_v55 }
 0x682   : > { %8044 = vmatprep.subr.bf16.mxu0 %v11597_v54  ;;  %8062 = vmatprep.subr.bf16.mxu1 %v11598_v3  ;;  %v8630_v36 = vpop.f32.mrf.mxu0 }
 0x684   : > { %v5940_v2 = vpop.f32.mrf.mxu0 }
 0x685   : > { %8045 = vmatpush3.bf16.msra.mxu0 %v11599_v10  ;;  %8063 = vmatpush3.bf16.msra.mxu1 %v11135_v41  ;;  %v6003_v63 = vpack.c.bf16 %v5940_v2, %v5937_v5  ;;  %v6000_v41 = vpack.c.bf16 %v11383_v44, %v11381_v18  ;;  %v11611_v18 = vld [vmem:[#allocation49_spill] sm:$0xff]  ;;  %v9082_v44 = vld [vmem:[#allocation13 + $0x30] sm:$0xff]  }
 0x686   : > { %8046 = vmatprep.subr.bf16.mxu0 %v11600_v4  ;;  %8064 = vmatprep.subr.bf16.mxu1 %v11601_v62  ;;  %v8631_v19 = vpop.f32.mrf.mxu0 }
 0x687   : > { %6160 = vmatprep.mubr.bf16.mxu1 %v6003_v63 }
 0x689   : > { %8047 = vmatpush3.bf16.msra.mxu0 %v11602_v31  ;;  %8065 = vmatpush3.bf16.msra.mxu1 %v11158_v9  ;;  %v11610_v9 = vld [vmem:[#allocation54_spill] sm:$0xff] }
 0x68a   : > { %8048 = vmatprep.subr.bf16.mxu0 %v11603_v29  ;;  %8066 = vmatprep.subr.bf16.mxu1 %v11604_v58 }
 0x68d   : > { %8049 = vmatpush3.bf16.msra.mxu0 %v11605_v15  ;;  %8067 = vmatpush3.bf16.msra.mxu1 %v11606_v11 }
 0x68e   : > { %8068 = vmatprep.subr.bf16.mxu1 %v11607_v21  ;;  %8638 = vmatprep.subr.bf16.mxu0 %v11545_v27 }
 0x690   : > { %6120 = vmatmul.mubr.bf16.vlgmr.msra.gmra.mxu0 %v6000_v41 }
 0x691   : > { %8069 = vmatpush3.bf16.msra.mxu1 %v11608_v23  ;;  %8639 = vmatpush3.bf16.msra.mxu0 %v11609_v35 }
 0x692   : > { %8070 = vmatprep.subr.bf16.mxu1 %v11610_v9  ;;  %8640 = vmatprep.subr.bf16.mxu0 %v11545_v27  ;;  %v7233_v9 = vld [vmem:[#allocation15] ss:$0 sm:$0xff] }
 0x693   : > { %8654 = vmatprep.mubr.msk.bf16.mxu0 %vm9407_vm2, %v11545_v27 }
 0x695   : > { %8071 = vmatpush3.bf16.msra.mxu1 %v11236_v57  ;;  %8641 = vmatpush3.bf16.msra.mxu0 %v11611_v18  ;;  %v9084_v57 = vld [vmem:[#allocation13 + $0x20] sm:$0xff]  }
 0x696   : > { %8642 = vmatprep.subr.bf16.mxu0 %v11545_v27  ;;  %8658 = vmatprep.subr.bf16.mxu1 %v9081_v47 }
 0x698   : > { %6161 = vmatmul.mubr.bf16.vlgmr.msra.gmra.mxu1 %v6002_v6 }
 0x699   : > { %8643 = vmatpush3.bf16.msra.mxu0 %v11612_v25  ;;  %8659 = vmatpush3.bf16.msra.mxu1 %v9081_v47 }
 0x69a   : > { %8674 = vmatprep.mubr.bf16.mxu1 %v11375_v60  ;;  %8644 = vmatprep.subr.bf16.mxu0 %v11545_v27  ;;  %v9086_v60 = vld [vmem:[#allocation13 + $0x10] sm:$0xff]  }
 0x69b   : > { %8660 = vmatprep.subr.bf16.mxu1 %v9082_v44 }
 0x69d   : > { %8645 = vmatpush3.bf16.msra.mxu0 %v11613_v37  ;;  %8661 = vmatpush3.bf16.msra.mxu1 %v9082_v44 }
 0x69e   : > { %8646 = vmatprep.subr.bf16.mxu0 %v11545_v27  ;;  %8662 = vmatprep.subr.bf16.mxu1 %v9083_v34 }
 0x6a1   : > { %8647 = vmatpush3.bf16.msra.mxu0 %v11243_v61  ;;  %8663 = vmatpush3.bf16.msra.mxu1 %v9083_v34  ;;  %v6004_v61 = vpack.c.bf16 %v11397_v26, %v11391_v52 }
 0x6a2   : > { %8648 = vmatprep.subr.bf16.mxu0 %v11545_v27  ;;  %8664 = vmatprep.subr.bf16.mxu1 %v9084_v57 }
 0x6a5   : > { %8649 = vmatpush3.bf16.msra.mxu0 %v11256_v24  ;;  %8665 = vmatpush3.bf16.msra.mxu1 %v9084_v57  ;;  %v9088_v24 = vld [vmem:[#allocation13] sm:$0xff]  }
 0x6a6   : > { %8650 = vmatprep.subr.bf16.mxu0 %v11545_v27  ;;  %8666 = vmatprep.subr.bf16.mxu1 %v9085_v33 }
 0x6a9   : > { %8651 = vmatpush3.bf16.msra.mxu0 %v11265_v16  ;;  %8667 = vmatpush3.bf16.msra.mxu1 %v9085_v33  ;;  %v9089_v16 = vld [vmem:[#allocation13 + $0x38] sm:$0xff]  }
 0x6aa   : > { %8652 = vmatprep.subr.bf16.mxu0 %v11545_v27  ;;  %8668 = vmatprep.subr.bf16.mxu1 %v9086_v60 }
 0x6ad   : > { %8653 = vmatpush3.bf16.msra.mxu0 %v11277_v14  ;;  %8669 = vmatpush3.bf16.msra.mxu1 %v9086_v60  ;;  %v9090_v14 = vld [vmem:[#allocation13 + $0x30] sm:$0xff]  }
 0x6ae   : > { %8670 = vmatprep.subr.bf16.mxu1 %v9087_v8  ;;  %8682 = vmatprep.subr.bf16.mxu0 %v11545_v27 }
 0x6b0   : > { %8655 = vmatmul.mubr.bf16.vlgmr.msra.gmra.mxu0 %v6004_v61 }
 0x6b1   : > { %8671 = vmatpush3.bf16.msra.mxu1 %v9087_v8  ;;  %8698 = vmatprep.mubr.msk.bf16.mxu0 %vm9407_vm2, %v11545_v27 }
 0x6b2   : > { %8672 = vmatprep.subr.bf16.mxu1 %v9088_v24  ;;  %8683 = vmatpush3.bf16.msra.mxu0 %v9089_v16 }
 0x6b3   : > { %8684 = vmatprep.subr.bf16.mxu0 %v11545_v27 }
 0x6b5   : > { %8673 = vmatpush3.bf16.msra.mxu1 %v9088_v24 }
 0x6b6   : > { %8685 = vmatpush3.bf16.msra.mxu0 %v9090_v14 }
 0x6b7   : > { %8686 = vmatprep.subr.bf16.mxu0 %v11545_v27 }
 0x6b8   : > { %8675 = vmatmul.mubr.bf16.vlgmr.msra.gmra.mxu1 %v11373_v20  ;;  %v9094_v20 = vld [vmem:[#allocation13 + $0x10] sm:$0xff]  }
 0x6b9   : > { %8678 = vmatprep.mubr.bf16.mxu1 %v11377_v32  ;;  %v9095_v32 = vld [vmem:[#allocation13 + $0x8] sm:$0xff]  }
 0x6ba   : > { %8687 = vmatpush3.bf16.msra.mxu0 %v9091_v39 }
 0x6bb   : > { %8688 = vmatprep.subr.bf16.mxu0 %v11545_v27 }
 0x6be   : > { %8689 = vmatpush3.bf16.msra.mxu0 %v9092_v12 }
 0x6bf   : > { %8690 = vmatprep.subr.bf16.mxu0 %v11545_v27 }
 0x6c0   : > { %8679 = vmatmul.mubr.bf16.gmra.mxu1 %v11379_v51  ;;  %v9096_v51 = vld [vmem:[#allocation13] sm:$0xff]  }
 0x6c2   : > { %8691 = vmatpush3.bf16.msra.mxu0 %v9093_v43 }
 0x6c3   : > { %8692 = vmatprep.subr.bf16.mxu0 %v11545_v27 }
 0x6c6   : > { %8693 = vmatpush3.bf16.msra.mxu0 %v9094_v20 }
 0x6c7   : > { %8694 = vmatprep.subr.bf16.mxu0 %v11545_v27 }
 0x6ca   : > { %8695 = vmatpush3.bf16.msra.mxu0 %v9095_v32 }
 0x6cb   : > { %8696 = vmatprep.subr.bf16.mxu0 %v11545_v27 }
 0x6ce   : > { %8697 = vmatpush3.bf16.msra.mxu0 %v9096_v51 }
 0x730   : > { %v8006_v48 = vpop.f32.mrf.mxu0 }
 0x732   : > { %v8007_v50 = vpop.f32.mrf.mxu0 }
 0x733   : > { %v8008_v45 = vadd.f32 %v8007_v50, %v8006_v48 }
 0x734   : > { %v8009_v53 = vpop.f32.mrf.mxu0 }
 0x735   : > { %v6040_v42 = vadd.f32 %v8008_v45, %v11363_v46 }
 0x736   : > { %v8010_v40 = vpop.f32.mrf.mxu0 }
 0x737   : > { %v8011_v0 = vadd.f32 %v8010_v40, %v8009_v53 }
 0x738   : > { %v8028_v22 = vpop.f32.mrf.mxu1 }
 0x739   : > { %v6043_v55 = vadd.f32 %v8011_v0, %v11363_v46 }
 0x73a   : > { %v8029_v52 = vpop.f32.mrf.mxu1 }
 0x73b   : > { %v8030_v49 = vadd.f32 %v8029_v52, %v8028_v22 }
 0x73c   : > { %v8031_v59 = vpop.f32.mrf.mxu1 }
 0x73d   : > { %v6081_v54 = vadd.f32 %v8030_v49, %v6040_v42 }
 0x73e   : > { %v8032_v38 = vpop.f32.mrf.mxu1 }
 0x73f   : > { %v8033_v28 = vadd.f32 %v8032_v38, %v8031_v59 }
 0x741   : > { %v6084_v2 = vadd.f32 %v8033_v28, %v6043_v55 }
 0x750   : > { %v8050_v13 = vpop.f32.mrf.mxu0 }
 0x752   : > { %v8051_v17 = vpop.f32.mrf.mxu0 }
 0x753   : > { %v8052_v5 = vadd.f32 %v8051_v17, %v8050_v13 }
 0x754   : > { %v8053_v7 = vpop.f32.mrf.mxu0 }
 0x755   : > { %v6122_v10 = vadd.f32 %v8052_v5, %v6081_v54 }
 0x756   : > { %v8054_v27 = vpop.f32.mrf.mxu0 }
 0x757   : > { %v8055_v3 = vadd.f32 %v8054_v27, %v8053_v7 }
 0x758   : > { %v8072_v1 = vpop.f32.mrf.mxu1 }
 0x759   : > { %v6125_v62 = vadd.f32 %v8055_v3, %v6084_v2 }
 0x75a   : > { %v8073_v26 = vpop.f32.mrf.mxu1 }
 0x75b   : > { %v8074_v36 = vadd.f32 %v8073_v26, %v8072_v1 }
 0x75c   : > { %v8075_v30 = vpop.f32.mrf.mxu1 }
 0x75d   : > { %v6163_v19 = vadd.f32 %v8074_v36, %v6122_v10 }
 0x75e   : > { %v8076_v56 = vpop.f32.mrf.mxu1 }
 0x75f   : > { %v8077_v63 = vadd.f32 %v8076_v56, %v8075_v30 }
 0x761   : > { %v6166_v58 = vadd.f32 %v8077_v63, %v6125_v62 }
 0x770   : > { %v6203_v4 = vpop.f32.mrf.mxu0 }
 0x771   : > { %v6204_v29 = vadd.f32 %v6203_v4, %v6163_v19 }
 0x772   : > { %v8656_v31 = vpop.f32.mrf.mxu0 }
 0x773   : > { %v6210_v21 = vmax.f32 %v6204_v29, 0.0 }
 0x774   : > { %v6206_v15 = vpop.f32.mrf.mxu0 }
 0x775   : > { %v6207_v11 = vadd.f32 %v6206_v15, %v6166_v58 }
 0x776   : > { %v8657_v41 = vpop.f32.mrf.mxu0 }
 0x777   : > { %v6211_v23 = vmax.f32 %v6207_v11, 0.0 }
 0x778   : > { %v8676_v35 = vpop.f32.mrf.mxu1 }
 0x779   : > { %v6212_v46 = vpack.c.bf16 %v6211_v23, %v6210_v21  ;;  %v6363_v18 = vadd.f32 %v8676_v35, %v7233_v9 }
 0x77a   : > { %v6354_v47 = vpop.f32.mrf.mxu1 }
 0x77b   : > { %8699 = vmatmul.mubr.bf16.vlgmr.msra.gmra.mxu0 %v6212_v46  ;;  %v6355_v34 = vadd.f32 %v7233_v9, %v6354_v47 }
 0x77c   : > { %v8677_v6 = vpop.f32.mrf.mxu1 }
 0x77d   : > { %v6366_v44 = vadd.f32 %v8677_v6, %v7233_v9 }
 0x77e   : > { %v6357_v25 = vpop.f32.mrf.mxu1 }
 0x77f   : > { %v7313_v37 = vpack.c.bf16 %v6366_v44, %v6363_v18  ;;  %v6358_v57 = vadd.f32 %v7233_v9, %v6357_v25 }
 0x780   : > { %v8680_v33 = vpop.f32.mrf.mxu1 }
 0x781   : > { %7333 = vst [vmem:[%s662_s17 + $0x8] sm:$0xff] %v7313_v37   ;;  %v7308_v60 = vpack.c.bf16 %v6358_v57, %v6355_v34  ;;  %v6379_v24 = vadd.f32 %v8680_v33, %v7233_v9 }
 0x782   : > { %v6370_v8 = vpop.f32.mrf.mxu1 }
 0x783   : > { %7309 = vst [vmem:[%s662_s17] sm:$0xff] %v7308_v60   ;;  %v6371_v39 = vadd.f32 %v7233_v9, %v6370_v8 }
 0x784   : > { %v8681_v61 = vpop.f32.mrf.mxu1 }
 0x785   : > { %v6382_v16 = vadd.f32 %v8681_v61, %v7233_v9 }
 0x786   : > { %v6373_v14 = vpop.f32.mrf.mxu1 }
 0x787   : > { %v7323_v12 = vpack.c.bf16 %v6382_v16, %v6379_v24  ;;  %v6374_v43 = vadd.f32 %v7233_v9, %v6373_v14 }
 0x789   : > { %7335 = vst [vmem:[%s662_s17 + $0x18] sm:$0xff] %v7323_v12   ;;  %v7318_v20 = vpack.c.bf16 %v6374_v43, %v6371_v39 }
 0x78b   : > { %7334 = vst [vmem:[%s662_s17 + $0x10] sm:$0xff] %v7318_v20  }
 0x83b   : > { %v6530_v32 = vpop.f32.mrf.mxu0 }
 0x83c   : > { %v6531_v22 = vadd.f32 %v7233_v9, %v6530_v32 }
 0x83d   : > { %v8700_v51 = vpop.f32.mrf.mxu0 }
 0x83f   : > { %v6533_v48 = vpop.f32.mrf.mxu0 }
 0x840   : > { %v6534_v50 = vadd.f32 %v7233_v9, %v6533_v48 }
 0x841   : > { %v8701_v52 = vpop.f32.mrf.mxu0 }
 0x842   : > { %v7328_v53 = vpack.c.bf16 %v6534_v50, %v6531_v22 }
 0x844   : > { %7329 = vst [vmem:[%s667_s18] sm:$0xff] %v7328_v53  }
 0x845 PF: > { %s11615_s16 = sld [smem:[#allocation21_spill]] }
 0x84b   : > { %s32_s21 = sadd.s32 1, %s11615_s16  }
 0x84c   : > { %p29_p4 = scmp.ge.s32.totalorder %s32_s21, 4  }
 0x84e   :  { %31 = sbr.rel (!%p29_p4) target bundleno = 8 (0x8), region = 191 }
 0x853   :  { %6600 = vsyncpa [#allocation3], 1 }
 0x854   :  { %6602 = vsyncpa [#allocation3 + $0x1], 1 }
 0x855   :  { %6603 = vsyncpa [#allocation5], 1 }
 0x856   :  { %6604 = vsyncpa [#allocation8], 1 }
 0x857   :  { %6605 = vsyncpa [#allocation11], 1 }
 0x858   :  { %6606 = vsyncpa [#allocation14], 1 }

// kernel: generalized_rcnn_forward.3
= control target key start
LH: loop header
LB: loop body
LE: loop exit
PB: predicated region body
PF: predicated region fallthrough
CT: control target
= control target key end

     0   :  { %vm1450_vm0 = vcmask 261120   ;;  %s4575_s1 = inlined_call_operand.vmem [shape: bf16[1568,128], index: 1, kind: input, shape index: {}]   ;;  %s4576_s0 = inlined_call_operand.vmem [shape: bf16[128,1568], index: 0, kind: input, shape index: {}]   ;;  %s4577_s2 = inlined_call_operand.vmem [shape: f32[1,128], index: 2, kind: input, shape index: {}]   ;;  %s4578_s3 = inlined_call_operand.vmem [shape: bf16[128,128], index: 3, kind: input, shape index: {}]   ;;  %s4579_s5 = inlined_call_operand.vmem [shape: bf16[128,128], index: 5, kind: input, shape index: {}]   ;;  %s4580_s4 = inlined_call_operand.vmem [shape: f32[1,128], index: 4, kind: input, shape index: {}]   ;;  %s4581_s6 = inlined_call_operand.vmem [shape: f32[1,128], index: 6, kind: input, shape index: {}]   ;;  %s4582_s7 = inlined_call_operand.vmem [shape: f32[128,128], index: 7, kind: output, shape index: {}]  }
   0x1   :  { %v3313_v0 = vld [vmem:[%s4575_s1 + $0x78] sm:$0xff]   ;;  %v3317_v4 = vld [vmem:[%s4575_s1 + $0x70] sm:$0xff]   ;;  %v3321_v8 = vld [vmem:[%s4575_s1 + $0x68] sm:$0xff]  }
   0x2   :  { %v3314_v1 = vld [vmem:[%s4575_s1 + $0x38] sm:$0xff]   ;;  %2787 = vmatprep.subr.bf16.mxu0 %v3313_v0  ;;  %v3318_v5 = vld [vmem:[%s4575_s1 + $0x30] sm:$0xff]   ;;  %v3322_v9 = vld [vmem:[%s4575_s1 + $0x28] sm:$0xff]  }
   0x3   :  { %v3315_v2 = vld [vmem:[%s4575_s1 + $0xf8] sm:$0xff]   ;;  %2788 = vmatpush3.bf16.msra.mxu0 %v3314_v1  ;;  %v3319_v6 = vld [vmem:[%s4575_s1 + $0xf0] sm:$0xff]   ;;  %v3323_v10 = vld [vmem:[%s4575_s1 + $0xe8] sm:$0xff]  }
   0x4   :  { %v3316_v3 = vld [vmem:[%s4575_s1 + $0xb8] sm:$0xff]   ;;  %2851 = vmatprep.subr.bf16.mxu1 %v3315_v2  ;;  %2789 = vmatprep.subr.bf16.mxu0 %v3317_v4  ;;  %v3320_v7 = vld [vmem:[%s4575_s1 + $0xb0] sm:$0xff]   ;;  %v3324_v11 = vld [vmem:[%s4575_s1 + $0xa8] sm:$0xff]  }
   0x5   :  { %2852 = vmatpush3.bf16.msra.mxu1 %v3316_v3  ;;  %v3325_v12 = vld [vmem:[%s4575_s1 + $0x60] sm:$0xff]   ;;  %v3329_v16 = vld [vmem:[%s4575_s1 + $0x58] sm:$0xff]   ;;  %v3333_v20 = vld [vmem:[%s4575_s1 + $0x50] sm:$0xff]  }
   0x6   :  { %2853 = vmatprep.subr.bf16.mxu1 %v3319_v6  ;;  %v3326_v13 = vld [vmem:[%s4575_s1 + $0x20] sm:$0xff]   ;;  %v3330_v17 = vld [vmem:[%s4575_s1 + $0x18] sm:$0xff]   ;;  %v3334_v21 = vld [vmem:[%s4575_s1 + $0x10] sm:$0xff]  }
   0x7   :  { %2790 = vmatpush3.bf16.msra.mxu0 %v3318_v5  ;;  %v3327_v14 = vld [vmem:[%s4575_s1 + $0xe0] sm:$0xff]   ;;  %v3331_v18 = vld [vmem:[%s4575_s1 + $0xd8] sm:$0xff]   ;;  %v3335_v22 = vld [vmem:[%s4575_s1 + $0xd0] sm:$0xff]  }
   0x8   :  { %2791 = vmatprep.subr.bf16.mxu0 %v3321_v8  ;;  %v3328_v15 = vld [vmem:[%s4575_s1 + $0xa0] sm:$0xff]   ;;  %v3332_v19 = vld [vmem:[%s4575_s1 + $0x98] sm:$0xff]   ;;  %v3336_v23 = vld [vmem:[%s4575_s1 + $0x90] sm:$0xff]  }
   0x9   :  { %2854 = vmatpush3.bf16.msra.mxu1 %v3320_v7  ;;  %v3337_v24 = vld [vmem:[%s4575_s1 + $0x48] sm:$0xff]   ;;  %v3341_v28 = vld [vmem:[%s4575_s1 + $0x40] sm:$0xff]   ;;  %v3348_v34 = vld [vmem:[%s4575_s1 + $0x178] sm:$0xff]  }
   0xa   :  { %2855 = vmatprep.subr.bf16.mxu1 %v3323_v10  ;;  %v3338_v25 = vld [vmem:[%s4575_s1 + $0x8] sm:$0xff]   ;;  %v3342_v29 = vld [vmem:[%s4575_s1] sm:$0xff]   ;;  %v3352_v37 = vld [vmem:[%s4575_s1 + $0x138] sm:$0xff]  }
   0xb   :  { %2792 = vmatpush3.bf16.msra.mxu0 %v3322_v9  ;;  %v3339_v26 = vld [vmem:[%s4575_s1 + $0xc8] sm:$0xff]   ;;  %v3343_v30 = vld [vmem:[%s4575_s1 + $0xc0] sm:$0xff]   ;;  %v3356_v40 = vld [vmem:[%s4575_s1 + $0x170] sm:$0xff]  }
   0xc   :  { %2793 = vmatprep.subr.bf16.mxu0 %v3325_v12  ;;  %v3340_v27 = vld [vmem:[%s4575_s1 + $0x88] sm:$0xff]   ;;  %v3344_v31 = vld [vmem:[%s4576_s0] ss:$52 sps:$4 sm:$0xff]   ;;  %v3346_v32 = vld [vmem:[%s4576_s0 + $0x4] ss:$52 sps:$4 sm:$0xff]  }
   0xd   :  { %2856 = vmatpush3.bf16.msra.mxu1 %v3324_v11  ;;  %v3347_v33 = vld [vmem:[%s4575_s1 + $0x80] sm:$0xff]   ;;  %1507 = vmatprep.mubr.bf16.mxu0 %v3346_v32  ;;  %v3349_v35 = vld [vmem:[%s4576_s0 + $0x8] ss:$52 sps:$4 sm:$0xff]   ;;  %v3359_v42 = vld [vmem:[%s4575_s1 + $0x130] sm:$0xff]  }
   0xe   :  { %2857 = vmatprep.subr.bf16.mxu1 %v3327_v14  ;;  %v3351_v36 = vld [vmem:[%s4576_s0 + $0xc] ss:$52 sps:$4 sm:$0xff]   ;;  %v3355_v39 = vld [vmem:[%s4576_s0 + $0x68] ss:$52 sps:$4 sm:$0xff]   ;;  %v3360_v43 = vld [vmem:[%s4576_s0 + $0x70] ss:$52 sps:$4 sm:$0xff]  }
   0xf   :  { %2794 = vmatpush3.bf16.msra.mxu0 %v3326_v13  ;;  %1604 = vmatprep.mubr.bf16.mxu1 %v3351_v36  ;;  %v3353_v38 = vld [vmem:[%s4576_s0 + $0x6c] ss:$52 sps:$4 sm:$0xff]   ;;  %v3357_v41 = vld [vmem:[%s4576_s0 + $0x74] ss:$52 sps:$4 sm:$0xff]   ;;  %v3365_v46 = vld [vmem:[%s4576_s0 + $0xdc] ss:$52 sps:$4 sm:$0xff]  }
  0x10   :  { %2795 = vmatprep.subr.bf16.mxu0 %v3329_v16  ;;  %v3361_v44 = vld [vmem:[%s4576_s0 + $0xd4] ss:$52 sps:$4 sm:$0xff]   ;;  %v3363_v48 = vld [vmem:[%s4576_s0 + $0xd0] ss:$52 sps:$4 sm:$0xff]   ;;  %v3368_v51 = vld [vmem:[%s4576_s0 + $0xd8] ss:$52 sps:$4 sm:$0xff]  }
  0x11   :  { %2858 = vmatpush3.bf16.msra.mxu1 %v3328_v15  ;;  %v3364_v45 = vld [vmem:[%s4575_s1 + $0x168] sm:$0xff]   ;;  %v3369_v49 = vld [vmem:[%s4576_s0 + $0x13c] ss:$52 sps:$4 sm:$0xff]   ;;  %v3372_v50 = vld [vmem:[%s4575_s1 + $0x160] sm:$0xff]  }
  0x12   :  { %2859 = vmatprep.subr.bf16.mxu1 %v3331_v18  ;;  %v3367_v47 = vld [vmem:[%s4575_s1 + $0x128] sm:$0xff]   ;;  %v3373_v52 = vld [vmem:[%s4576_s0 + $0x144] ss:$52 sps:$4 sm:$0xff]   ;;  %v3376_v59 = vld [vmem:[%s4576_s0 + $0x140] ss:$52 sps:$4 sm:$0xff]  }
  0x13   :  { %2796 = vmatpush3.bf16.msra.mxu0 %v3330_v17  ;;  %v3375_v53 = vld [vmem:[%s4575_s1 + $0x120] sm:$0xff]   ;;  %v3377_v54 = vld [vmem:[%s4575_s1 + $0x1f8] sm:$0xff]   ;;  %v3387_v62 = vld [vmem:[%s4575_s1 + $0x1f0] sm:$0xff]  }
  0x14   :  { %2797 = vmatprep.subr.bf16.mxu0 %v3333_v20  ;;  %v3378_v55 = vld [vmem:[%s4575_s1 + $0x1b8] sm:$0xff]   ;;  %v3383_v61 = vld [vmem:[%s4576_s0 + $0x1ac] ss:$52 sps:$4 sm:$0xff]   ;;  %v3388_v63 = vld [vmem:[%s4575_s1 + $0x1b0] sm:$0xff]  }
  0x15   :  { %2860 = vmatpush3.bf16.msra.mxu1 %v3332_v19  ;;  %v3371_v56 = vld [vmem:[%s4576_s0 + $0x138] ss:$52 sps:$4 sm:$0xff]   ;;  %v3392_v0 = vld [vmem:[%s4575_s1 + $0x150] sm:$0xff]   ;;  %v3386_v4 = vld [vmem:[%s4576_s0 + $0x1a8] ss:$52 sps:$4 sm:$0xff]  }
  0x16   :  { %2861 = vmatprep.subr.bf16.mxu1 %v3335_v22  ;;  %v3382_v57 = vld [vmem:[%s4575_s1 + $0x158] sm:$0xff]   ;;  %v3381_v1 = vld [vmem:[%s4576_s0 + $0x1a0] ss:$52 sps:$4 sm:$0xff]   ;;  %v3397_v5 = vld [vmem:[%s4575_s1 + $0x1e8] sm:$0xff]  }
  0x17   :  { %2798 = vmatpush3.bf16.msra.mxu0 %v3334_v21  ;;  %v3379_v58 = vld [vmem:[%s4576_s0 + $0x1a4] ss:$52 sps:$4 sm:$0xff]   ;;  %v3389_v2 = vld [vmem:[%s4576_s0 + $0x20c] ss:$52 sps:$4 sm:$0xff]   ;;  %v3395_v3 = vld [vmem:[%s4575_s1 + $0x110] sm:$0xff]  }
  0x18   :  { %2799 = vmatprep.subr.bf16.mxu0 %v3337_v24  ;;  %v3385_v60 = vld [vmem:[%s4575_s1 + $0x118] sm:$0xff]   ;;  %v3398_v6 = vld [vmem:[%s4575_s1 + $0x1a8] sm:$0xff]   ;;  %v3399_v7 = vld [vmem:[%s4575_s1 + $0x1e0] sm:$0xff]  }
  0x19   :  { %2862 = vmatpush3.bf16.msra.mxu1 %v3336_v23  ;;  %v3393_v8 = vld [vmem:[%s4576_s0 + $0x214] ss:$52 sps:$4 sm:$0xff]   ;;  %v3402_v9 = vld [vmem:[%s4575_s1 + $0x1a0] sm:$0xff]   ;;  %v3405_v15 = vld [vmem:[%s4576_s0 + $0x27c] ss:$52 sps:$4 sm:$0xff]  }
  0x1a   :  { %2863 = vmatprep.subr.bf16.mxu1 %v3339_v26  ;;  %v3404_v10 = vld [vmem:[%s4575_s1 + $0x148] sm:$0xff]   ;;  %v3396_v12 = vld [vmem:[%s4576_s0 + $0x210] ss:$52 sps:$4 sm:$0xff]   ;;  %v3409_v16 = vld [vmem:[%s4575_s1 + $0x1d8] sm:$0xff]  }
  0x1b   :  { %2800 = vmatpush3.bf16.msra.mxu0 %v3338_v25  ;;  %v3391_v11 = vld [vmem:[%s4576_s0 + $0x208] ss:$52 sps:$4 sm:$0xff]   ;;  %v3411_v18 = vld [vmem:[%s4575_s1 + $0x1d0] sm:$0xff]   ;;  %v3416_v21 = vld [vmem:[%s4575_s1 + $0x140] sm:$0xff]  }
  0x1c   :  { %2801 = vmatprep.subr.bf16.mxu0 %v3341_v28  ;;  %v3400_v13 = vld [vmem:[%s4576_s0 + $0x274] ss:$52 sps:$4 sm:$0xff]   ;;  %v3410_v17 = vld [vmem:[%s4575_s1 + $0x198] sm:$0xff]   ;;  %v3403_v19 = vld [vmem:[%s4576_s0 + $0x270] ss:$52 sps:$4 sm:$0xff]  }
  0x1d   :  { %2864 = vmatpush3.bf16.msra.mxu1 %v3340_v27  ;;  %v3407_v14 = vld [vmem:[%s4575_s1 + $0x108] sm:$0xff]   ;;  %v3414_v20 = vld [vmem:[%s4575_s1 + $0x190] sm:$0xff]   ;;  %v3419_v24 = vld [vmem:[%s4575_s1 + $0x100] sm:$0xff]  }
  0x1e   :  { %2865 = vmatprep.subr.bf16.mxu1 %v3343_v30  ;;  %v3412_v22 = vld [vmem:[%s4576_s0 + $0x2dc] ss:$52 sps:$4 sm:$0xff]   ;;  %v3408_v23 = vld [vmem:[%s4576_s0 + $0x278] ss:$52 sps:$4 sm:$0xff]   ;;  %v3423_v28 = vld [vmem:[%s4575_s1 + $0x1c0] sm:$0xff]  }
  0x1f   :  { %2802 = vmatpush3.bf16.msra.mxu0 %v3342_v29  ;;  %v3417_v25 = vld [vmem:[%s4576_s0 + $0x2e4] ss:$52 sps:$4 sm:$0xff]   ;;  %v3421_v26 = vld [vmem:[%s4575_s1 + $0x1c8] sm:$0xff]  }
  0x20   :  { %2915 = vmatprep.subr.bf16.mxu0 %v3348_v34  ;;  %v3422_v27 = vld [vmem:[%s4575_s1 + $0x188] sm:$0xff]   ;;  %v3427_v30 = vld [vmem:[%s4575_s1 + $0x180] sm:$0xff]   ;;  %v3431_v34 = vld [vmem:[%s4576_s0 + $0x1c] ss:$52 sps:$4 sm:$0xff]  }
  0x21   :  { %2866 = vmatpush3.bf16.msra.mxu1 %v3347_v33  ;;  %v3415_v29 = vld [vmem:[%s4576_s0 + $0x2d8] ss:$52 sps:$4 sm:$0xff]   ;;  %v3426_v32 = vld [vmem:[%s4576_s0 + $0x14] ss:$52 sps:$4 sm:$0xff]  }
  0x22   :  { %1508 = vmatmul.mubr.bf16.vlgmr.msra.gmra.mxu0 %v3344_v31  ;;  %2979 = vmatprep.subr.bf16.mxu1 %v3377_v54  ;;  %v3428_v31 = vld [vmem:[%s4575_s1 + $0x278] sm:$0xff]   ;;  %v3420_v33 = vld [vmem:[%s4576_s0 + $0x2e0] ss:$52 sps:$4 sm:$0xff]  }
  0x23   :  { %2916 = vmatpush3.bf16.msra.mxu0 %v3352_v37  ;;  %1515 = vmatprep.mubr.bf16.mxu0 %v3353_v38  ;;  %v3432_v36 = vld [vmem:[%s4575_s1 + $0x238] sm:$0xff]   ;;  %v3436_v38 = vld [vmem:[%s4575_s1 + $0x270] sm:$0xff]   ;;  %v3449_v54 = vld [vmem:[%s4576_s0 + $0x14c] ss:$52 sps:$4 sm:$0xff]  }
  0x24   :  { %1605 = vmatmul.mubr.bf16.vlgmr.msra.gmra.mxu1 %v3349_v35  ;;  %2917 = vmatprep.subr.bf16.mxu0 %v3356_v40  ;;  %v3424_v35 = vld [vmem:[%s4576_s0 + $0x10] ss:$52 sps:$4 sm:$0xff]  }
  0x25   :  { %1612 = vmatprep.mubr.bf16.mxu1 %v3357_v41  ;;  %2980 = vmatpush3.bf16.msra.mxu1 %v3378_v55  ;;  %v3433_v37 = vld [vmem:[%s4576_s0 + $0x7c] ss:$52 sps:$4 sm:$0xff]   ;;  %v3437_v40 = vld [vmem:[%s4576_s0 + $0x84] ss:$52 sps:$4 sm:$0xff]  }
  0x26   :  { %2981 = vmatprep.subr.bf16.mxu1 %v3387_v62  ;;  %v3439_v41 = vld [vmem:[%s4575_s1 + $0x230] sm:$0xff]   ;;  %v3465_v55 = vld [vmem:[%s4575_s1 + $0x218] sm:$0xff]  }
  0x27   :  { %2918 = vmatpush3.bf16.msra.mxu0 %v3359_v42  ;;  %v3435_v42 = vld [vmem:[%s4576_s0 + $0x78] ss:$52 sps:$4 sm:$0xff]   ;;  %v3451_v62 = vld [vmem:[%s4576_s0 + $0x148] ss:$52 sps:$4 sm:$0xff]  }
  0x28   :  { %2919 = vmatprep.subr.bf16.mxu0 %v3364_v45  ;;  %v3447_v45 = vld [vmem:[%s4575_s1 + $0x228] sm:$0xff]  }
  0x29   :  { %2982 = vmatpush3.bf16.msra.mxu1 %v3388_v63  ;;  %v3459_v63 = vld [vmem:[%s4576_s0 + $0x1b4] ss:$52 sps:$4 sm:$0xff]  }
  0x2a   :  { %1516 = vmatmul.mubr.bf16.gmra.mxu0 %v3355_v39  ;;  %2983 = vmatprep.subr.bf16.mxu1 %v3397_v5  ;;  %v3429_v39 = vld [vmem:[%s4576_s0 + $0x18] ss:$52 sps:$4 sm:$0xff]   ;;  %v3482_v5 = vld [vmem:[%s4575_s1 + $0x2a0] sm:$0xff]  }
  0x2b   :  { %1523 = vmatprep.mubr.bf16.mxu0 %v3361_v44  ;;  %2920 = vmatpush3.bf16.msra.mxu0 %v3367_v47  ;;  %v3441_v44 = vld [vmem:[%s4576_s0 + $0xe4] ss:$52 sps:$4 sm:$0xff]  }
  0x2c   :  { %1613 = vmatmul.mubr.bf16.gmra.mxu1 %v3360_v43  ;;  %2921 = vmatprep.subr.bf16.mxu0 %v3372_v50  ;;  %v3444_v43 = vld [vmem:[%s4575_s1 + $0x268] sm:$0xff]   ;;  %v3457_v47 = vld [vmem:[%s4575_s1 + $0x2f8] sm:$0xff]  }
  0x2d   :  { %1620 = vmatprep.mubr.bf16.mxu1 %v3365_v46  ;;  %2984 = vmatpush3.bf16.msra.mxu1 %v3398_v6  ;;  %v3452_v46 = vld [vmem:[%s4575_s1 + $0x260] sm:$0xff]   ;;  %v3484_v6 = vld [vmem:[%s4575_s1 + $0x248] sm:$0xff]  }
  0x2e   :  { %2985 = vmatprep.subr.bf16.mxu1 %v3399_v7  ;;  %v3445_v50 = vld [vmem:[%s4576_s0 + $0xec] ss:$52 sps:$4 sm:$0xff]   ;;  %v3461_v7 = vld [vmem:[%s4576_s0 + $0x1b0] ss:$52 sps:$4 sm:$0xff]  }
  0x2f   :  { %2922 = vmatpush3.bf16.msra.mxu0 %v3375_v53  ;;  %v3462_v53 = vld [vmem:[%s4575_s1 + $0x258] sm:$0xff]  }
  0x30   :  { %2923 = vmatprep.subr.bf16.mxu0 %v3382_v57  ;;  %v3468_v57 = vld [vmem:[%s4575_s1 + $0x2b0] sm:$0xff]  }
  0x31   :  { %2986 = vmatpush3.bf16.msra.mxu1 %v3402_v9  ;;  %v3469_v9 = vld [vmem:[%s4576_s0 + $0x21c] ss:$52 sps:$4 sm:$0xff]  }
  0x32   :  { %1524 = vmatmul.mubr.bf16.gmra.mxu0 %v3363_v48  ;;  %2987 = vmatprep.subr.bf16.mxu1 %v3409_v16  ;;  %v3458_v48 = vld [vmem:[%s4575_s1 + $0x2b8] sm:$0xff]   ;;  %v3496_v16 = vld [vmem:[%s4575_s1 + $0x240] sm:$0xff]  }
  0x33   :  { %1531 = vmatprep.mubr.bf16.mxu0 %v3369_v49  ;;  %2924 = vmatpush3.bf16.msra.mxu0 %v3385_v60  ;;  %v3440_v49 = vld [vmem:[%s4576_s0 + $0x80] ss:$52 sps:$4 sm:$0xff]  }
  0x34   :  { %1621 = vmatmul.mubr.bf16.gmra.mxu1 %v3368_v51  ;;  %2925 = vmatprep.subr.bf16.mxu0 %v3392_v0  ;;  %v3455_v51 = vld [vmem:[%s4575_s1 + $0x220] sm:$0xff]   ;;  %v3453_v60 = vld [vmem:[%s4576_s0 + $0x154] ss:$52 sps:$4 sm:$0xff]  }
  0x35   :  { %1628 = vmatprep.mubr.bf16.mxu1 %v3373_v52  ;;  %2988 = vmatpush3.bf16.msra.mxu1 %v3410_v17  ;;  %v3443_v52 = vld [vmem:[%s4576_s0 + $0xe0] ss:$52 sps:$4 sm:$0xff]   ;;  %v3477_v0 = vld [vmem:[%s4575_s1 + $0x2e8] sm:$0xff]  }
  0x36   :  { %2989 = vmatprep.subr.bf16.mxu1 %v3411_v18  ;;  %v3471_v17 = vld [vmem:[%s4576_s0 + $0x218] ss:$52 sps:$4 sm:$0xff]  }
  0x37   :  { %2926 = vmatpush3.bf16.msra.mxu0 %v3395_v3  ;;  %v3456_v3 = vld [vmem:[%s4576_s0 + $0x150] ss:$52 sps:$4 sm:$0xff]  }
  0x38   :  { %2927 = vmatprep.subr.bf16.mxu0 %v3404_v10  ;;  %v3489_v10 = vld [vmem:[%s4575_s1 + $0x2d8] sm:$0xff]  }
  0x39   :  { %2990 = vmatpush3.bf16.msra.mxu1 %v3414_v20  ;;  %v3480_v18 = vld [vmem:[%s4576_s0 + $0x284] ss:$52 sps:$4 sm:$0xff]   ;;  %v3501_v20 = vld [vmem:[%s4575_s1 + $0x2c8] sm:$0xff]  }
  0x3a   :  { %1532 = vmatmul.mubr.bf16.gmra.mxu0 %v3371_v56  ;;  %2991 = vmatprep.subr.bf16.mxu1 %v3421_v26  ;;  %v3467_v56 = vld [vmem:[%s4575_s1 + $0x2f0] sm:$0xff]   ;;  %v3508_v26 = vld [vmem:[%s4575_s1 + $0x308] sm:$0xff]  }
  0x3b   :  { %1539 = vmatprep.mubr.bf16.mxu0 %v3379_v58  ;;  %2928 = vmatpush3.bf16.msra.mxu0 %v3407_v14  ;;  %v3448_v58 = vld [vmem:[%s4576_s0 + $0xe8] ss:$52 sps:$4 sm:$0xff]   ;;  %v3494_v14 = vld [vmem:[%s4575_s1 + $0x290] sm:$0xff]  }
  0x3c   :  { %1629 = vmatmul.mubr.bf16.gmra.mxu1 %v3376_v59  ;;  %2929 = vmatprep.subr.bf16.mxu0 %v3416_v21  ;;  %v3472_v59 = vld [vmem:[%s4575_s1 + $0x250] sm:$0xff]   ;;  %v3502_v21 = vld [vmem:[%s4575_s1 + $0x288] sm:$0xff]  }
  0x3d   :  { %1636 = vmatprep.mubr.bf16.mxu1 %v3383_v61  ;;  %2992 = vmatpush3.bf16.msra.mxu1 %v3422_v27  ;;  %v3475_v61 = vld [vmem:[%s4575_s1 + $0x210] sm:$0xff]  }
  0x3e   :  { %2993 = vmatprep.subr.bf16.mxu1 %v3423_v28  ;;  %v3483_v27 = vld [vmem:[%s4576_s0 + $0x280] ss:$52 sps:$4 sm:$0xff]  }
  0x3f   :  { %2930 = vmatpush3.bf16.msra.mxu0 %v3419_v24  ;;  %v3485_v24 = vld [vmem:[%s4576_s0 + $0x28c] ss:$52 sps:$4 sm:$0xff]  }
  0x40   :  { %3043 = vmatprep.subr.bf16.mxu0 %v3428_v31  ;;  %v3492_v28 = vld [vmem:[%s4576_s0 + $0x2ec] ss:$52 sps:$4 sm:$0xff]   ;;  %v3495_v31 = vld [vmem:[%s4576_s0 + $0x2e8] ss:$52 sps:$4 sm:$0xff]  }
  0x41   :  { %2994 = vmatpush3.bf16.msra.mxu1 %v3427_v30  ;;  %v3497_v30 = vld [vmem:[%s4576_s0 + $0x2f4] ss:$52 sps:$4 sm:$0xff]  }
  0x42   :  { %1540 = vmatmul.mubr.bf16.gmra.mxu0 %v3381_v1  ;;  %3107 = vmatprep.subr.bf16.mxu1 %v3457_v47  ;;  %v3478_v1 = vld [vmem:[%s4575_s1 + $0x2a8] sm:$0xff]   ;;  %v3527_v47 = vld [vmem:[%s4576_s0 + $0x164] ss:$52 sps:$4 sm:$0xff]  }
  0x43   :  { %1547 = vmatprep.mubr.bf16.mxu0 %v3389_v2  ;;  %v3479_v2 = vld [vmem:[%s4575_s1 + $0x2e0] sm:$0xff]  }
  0x44   :  { %1637 = vmatmul.mubr.bf16.gmra.mxu1 %v3386_v4  ;;  %v3463_v4 = vld [vmem:[%s4576_s0 + $0x1bc] ss:$52 sps:$4 sm:$0xff]  }
  0x45   :  { %1644 = vmatprep.mubr.bf16.mxu1 %v3393_v8  ;;  %v3487_v8 = vld [vmem:[%s4575_s1 + $0x208] sm:$0xff]  }
  0x4a   :  { %1548 = vmatmul.mubr.bf16.gmra.mxu0 %v3391_v11  ;;  %v3490_v11 = vld [vmem:[%s4575_s1 + $0x298] sm:$0xff]  }
  0x4b   :  { %1555 = vmatprep.mubr.bf16.mxu0 %v3400_v13  ;;  %v3466_v13 = vld [vmem:[%s4576_s0 + $0x1b8] ss:$52 sps:$4 sm:$0xff]  }
  0x4c   :  { %1645 = vmatmul.mubr.bf16.gmra.mxu1 %v3396_v12  ;;  %v3491_v12 = vld [vmem:[%s4575_s1 + $0x2d0] sm:$0xff]  }
  0x4d   :  { %1652 = vmatprep.mubr.bf16.mxu1 %v3405_v15  ;;  %v3473_v15 = vld [vmem:[%s4576_s0 + $0x224] ss:$52 sps:$4 sm:$0xff]  }
  0x52   :  { %1556 = vmatmul.mubr.bf16.gmra.mxu0 %v3403_v19  ;;  %v3499_v19 = vld [vmem:[%s4575_s1 + $0x200] sm:$0xff]  }
  0x53   :  { %1563 = vmatprep.mubr.bf16.mxu0 %v3412_v22  ;;  %v3503_v22 = vld [vmem:[%s4575_s1 + $0x2c0] sm:$0xff]  }
  0x54   :  { %1653 = vmatmul.mubr.bf16.gmra.mxu1 %v3408_v23  ;;  %v3476_v23 = vld [vmem:[%s4576_s0 + $0x220] ss:$52 sps:$4 sm:$0xff]  }
  0x55   :  { %1660 = vmatprep.mubr.bf16.mxu1 %v3417_v25  ;;  %v3507_v25 = vld [vmem:[%s4575_s1 + $0x280] sm:$0xff]  }
  0x5a   :  { %1564 = vmatmul.mubr.bf16.gmra.mxu0 %v3415_v29  ;;  %v3488_v29 = vld [vmem:[%s4576_s0 + $0x288] ss:$52 sps:$4 sm:$0xff]  }
  0x5b   :  { %1701 = vmatprep.mubr.bf16.mxu0 %v3426_v32  ;;  %v3506_v32 = vld [vmem:[%s4576_s0 + $0x24] ss:$52 sps:$4 sm:$0xff]  }
  0x5c   :  { %1661 = vmatmul.mubr.bf16.gmra.mxu1 %v3420_v33  ;;  %v3500_v33 = vld [vmem:[%s4576_s0 + $0x2f0] ss:$52 sps:$4 sm:$0xff]  }
  0x5d   :  { %1798 = vmatprep.mubr.bf16.mxu1 %v3431_v34  ;;  %v3511_v34 = vld [vmem:[%s4576_s0 + $0x2c] ss:$52 sps:$4 sm:$0xff]  }
  0x62   :  { %1702 = vmatmul.mubr.bf16.vlgmr.msra.gmra.mxu0 %v3424_v35  ;;  %v3504_v35 = vld [vmem:[%s4576_s0 + $0x20] ss:$52 sps:$4 sm:$0xff]  }
  0x63   :  { %3044 = vmatpush3.bf16.msra.mxu0 %v3432_v36  ;;  %1709 = vmatprep.mubr.bf16.mxu0 %v3433_v37  ;;  %v3512_v36 = vld [vmem:[%s4576_s0 + $0x8c] ss:$52 sps:$4 sm:$0xff]  }
  0x64   :  { %3045 = vmatprep.subr.bf16.mxu0 %v3436_v38  ;;  %1799 = vmatmul.mubr.bf16.vlgmr.msra.gmra.mxu1 %v3429_v39  ;;  %v3533_v37 = vld [vmem:[%s4575_s1 + $0x300] sm:$0xff]   ;;  %v3509_v38 = vld [vmem:[%s4576_s0 + $0x28] ss:$52 sps:$4 sm:$0xff]  }
  0x65   :  { %1806 = vmatprep.mubr.bf16.mxu1 %v3437_v40  ;;  %3108 = vmatpush3.bf16.msra.mxu1 %v3458_v48  ;;  %v3515_v39 = vld [vmem:[%s4576_s0 + $0x94] ss:$52 sps:$4 sm:$0xff]   ;;  %v3526_v48 = vld [vmem:[%s4576_s0 + $0x158] ss:$52 sps:$4 sm:$0xff]  }
  0x66   :  { %3109 = vmatprep.subr.bf16.mxu1 %v3467_v56  ;;  %v3514_v40 = vld [vmem:[%s4576_s0 + $0x88] ss:$52 sps:$4 sm:$0xff]  }
  0x67   :  { %3046 = vmatpush3.bf16.msra.mxu0 %v3439_v41  ;;  %v3518_v41 = vld [vmem:[%s4576_s0 + $0xf4] ss:$52 sps:$4 sm:$0xff]  }
  0x68   :  { %3047 = vmatprep.subr.bf16.mxu0 %v3444_v43  ;;  %v3521_v43 = vld [vmem:[%s4576_s0 + $0xfc] ss:$52 sps:$4 sm:$0xff]  }
  0x69   :  { %3110 = vmatpush3.bf16.msra.mxu1 %v3468_v57  ;;  %v3539_v56 = vld [vmem:[%s4576_s0 + $0x228] ss:$52 sps:$4 sm:$0xff]  }
  0x6a   :  { %1710 = vmatmul.mubr.bf16.gmra.mxu0 %v3435_v42  ;;  %3111 = vmatprep.subr.bf16.mxu1 %v3477_v0  ;;  %v3517_v42 = vld [vmem:[%s4576_s0 + $0x90] ss:$52 sps:$4 sm:$0xff]   ;;  %v3543_v57 = vld [vmem:[%s4576_s0 + $0x294] ss:$52 sps:$4 sm:$0xff]   ;;  %v3551_v0 = vld [vmem:[%s4576_s0 + $0x2f8] ss:$52 sps:$4 sm:$0xff]  }
  0x6b   :  { %1717 = vmatprep.mubr.bf16.mxu0 %v3441_v44  ;;  %3048 = vmatpush3.bf16.msra.mxu0 %v3447_v45  ;;  %v3520_v44 = vld [vmem:[%s4576_s0 + $0xf0] ss:$52 sps:$4 sm:$0xff]  }
  0x6c   :  { %3049 = vmatprep.subr.bf16.mxu0 %v3452_v46  ;;  %1807 = vmatmul.mubr.bf16.gmra.mxu1 %v3440_v49  ;;  %v3524_v45 = vld [vmem:[%s4576_s0 + $0x15c] ss:$52 sps:$4 sm:$0xff]   ;;  %v3523_v46 = vld [vmem:[%s4576_s0 + $0xf8] ss:$52 sps:$4 sm:$0xff]  }
  0x6d   :  { %1814 = vmatprep.mubr.bf16.mxu1 %v3445_v50  ;;  %3112 = vmatpush3.bf16.msra.mxu1 %v3478_v1  ;;  %v3530_v49 = vld [vmem:[%s4576_s0 + $0x1c4] ss:$52 sps:$4 sm:$0xff]   ;;  %v3529_v50 = vld [vmem:[%s4576_s0 + $0x160] ss:$52 sps:$4 sm:$0xff]  }
  0x6e   :  { %3113 = vmatprep.subr.bf16.mxu1 %v3479_v2  ;;  %v3555_v1 = vld [vmem:[%s4576_s0 + $0x30] ss:$52 sps:$4 sm:$0xff]   ;;  %v3554_v2 = vld [vmem:[%s4576_s0 + $0x300] ss:$52 sps:$4 sm:$0xff]  }
  0x6f   :  { %3050 = vmatpush3.bf16.msra.mxu0 %v3455_v51  ;;  %v3534_v51 = vld [vmem:[%s4576_s0 + $0x1cc] ss:$52 sps:$4 sm:$0xff]  }
  0x70   :  { %3051 = vmatprep.subr.bf16.mxu0 %v3462_v53  ;;  %v3537_v53 = vld [vmem:[%s4576_s0 + $0x22c] ss:$52 sps:$4 sm:$0xff]  }
  0x71   :  { %3114 = vmatpush3.bf16.msra.mxu1 %v3482_v5 }
  0x72   :  { %1718 = vmatmul.mubr.bf16.gmra.mxu0 %v3443_v52  ;;  %3115 = vmatprep.subr.bf16.mxu1 %v3489_v10  ;;  %v3532_v52 = vld [vmem:[%s4576_s0 + $0x1c0] ss:$52 sps:$4 sm:$0xff]  }
  0x73   :  { %1725 = vmatprep.mubr.bf16.mxu0 %v3449_v54  ;;  %3052 = vmatpush3.bf16.msra.mxu0 %v3465_v55  ;;  %v3536_v54 = vld [vmem:[%s4576_s0 + $0x1c8] ss:$52 sps:$4 sm:$0xff]  }
  0x74   :  { %3053 = vmatprep.subr.bf16.mxu0 %v3472_v59  ;;  %1815 = vmatmul.mubr.bf16.gmra.mxu1 %v3448_v58  ;;  %v3540_v55 = vld [vmem:[%s4576_s0 + $0x234] ss:$52 sps:$4 sm:$0xff]   ;;  %v3542_v58 = vld [vmem:[%s4576_s0 + $0x230] ss:$52 sps:$4 sm:$0xff]  }
  0x75   :  { %1822 = vmatprep.mubr.bf16.mxu1 %v3453_v60  ;;  %3116 = vmatpush3.bf16.msra.mxu1 %v3490_v11  ;;  %v3546_v59 = vld [vmem:[%s4576_s0 + $0x29c] ss:$52 sps:$4 sm:$0xff]  }
  0x76   :  { %3117 = vmatprep.subr.bf16.mxu1 %v3491_v12  ;;  %v3545_v60 = vld [vmem:[%s4576_s0 + $0x290] ss:$52 sps:$4 sm:$0xff]   ;;  %v3558_v11 = vld [vmem:[%s4576_s0 + $0x168] ss:$52 sps:$4 sm:$0xff]  }
  0x77   :  { %3054 = vmatpush3.bf16.msra.mxu0 %v3475_v61  ;;  %v3549_v61 = vld [vmem:[%s4576_s0 + $0x2fc] ss:$52 sps:$4 sm:$0xff]  }
  0x78   :  { %3055 = vmatprep.subr.bf16.mxu0 %v3484_v6  ;;  %v4216_v6 = vld [vmem:[%s4577_s2] ss:$0 sm:$0xff] }
  0x79   :  { %3118 = vmatpush3.bf16.msra.mxu1 %v3494_v14  ;;  %v3559_v14 = vld [vmem:[%s4576_s0 + $0x1d0] ss:$52 sps:$4 sm:$0xff]  }
  0x7a   :  { %1726 = vmatmul.mubr.bf16.gmra.mxu0 %v3451_v62  ;;  %3119 = vmatprep.subr.bf16.mxu1 %v3501_v20  ;;  %v3548_v62 = vld [vmem:[%s4576_s0 + $0x298] ss:$52 sps:$4 sm:$0xff]  }
  0x7b   :  { %1733 = vmatprep.mubr.bf16.mxu0 %v3459_v63  ;;  %3056 = vmatpush3.bf16.msra.mxu0 %v3487_v8  ;;  %v3552_v63 = vld [vmem:[%s4576_s0 + $0x304] ss:$52 sps:$4 sm:$0xff]  }
  0x7c   :  { %1823 = vmatmul.mubr.bf16.gmra.mxu1 %v3456_v3  ;;  %3057 = vmatprep.subr.bf16.mxu0 %v3496_v16  ;;  %v3556_v3 = vld [vmem:[%s4576_s0 + $0x98] ss:$52 sps:$4 sm:$0xff]  }
  0x7d   :  { %1830 = vmatprep.mubr.bf16.mxu1 %v3463_v4  ;;  %3120 = vmatpush3.bf16.msra.mxu1 %v3502_v21  ;;  %v3557_v4 = vld [vmem:[%s4576_s0 + $0x100] ss:$52 sps:$4 sm:$0xff]  }
  0x7e   :  { %3121 = vmatprep.subr.bf16.mxu1 %v3503_v22 }
  0x7f   :  { %3058 = vmatpush3.bf16.msra.mxu0 %v3499_v19 }
  0x80   :  { %3213 = vmatprep.subr.bf16.mxu0 %v3508_v26 }
  0x81   :  { %3122 = vmatpush3.bf16.msra.mxu1 %v3507_v25 }
  0x82   :  { %1734 = vmatmul.mubr.bf16.gmra.mxu0 %v3461_v7 }
  0x83   :  { %1741 = vmatprep.mubr.bf16.mxu0 %v3469_v9 }
  0x84   :  { %1831 = vmatmul.mubr.bf16.gmra.mxu1 %v3466_v13 }
  0x85   :  { %1838 = vmatprep.mubr.bf16.mxu1 %v3473_v15 }
  0x8a   :  { %1742 = vmatmul.mubr.bf16.gmra.mxu0 %v3471_v17 }
  0x8b   :  { %1749 = vmatprep.mubr.bf16.mxu0 %v3480_v18 }
  0x8c   :  { %1839 = vmatmul.mubr.bf16.gmra.mxu1 %v3476_v23 }
  0x8d   :  { %1846 = vmatprep.mubr.bf16.mxu1 %v3485_v24 }
  0x92   :  { %1750 = vmatmul.mubr.bf16.gmra.mxu0 %v3483_v27 }
  0x93   :  { %1757 = vmatprep.mubr.bf16.mxu0 %v3492_v28 }
  0x94   :  { %1847 = vmatmul.mubr.bf16.gmra.mxu1 %v3488_v29  ;;  %v3560_v29 = vld [vmem:[%s4576_s0 + $0x238] ss:$52 sps:$4 sm:$0xff]  }
  0x95   :  { %1854 = vmatprep.mubr.bf16.mxu1 %v3497_v30 }
  0x9a   :  { %1758 = vmatmul.mubr.bf16.gmra.mxu0 %v3495_v31 }
  0x9b   :  { %1895 = vmatprep.mubr.bf16.mxu0 %v3506_v32  ;;  %v3561_v32 = vld [vmem:[%s4576_s0 + $0x2a0] ss:$52 sps:$4 sm:$0xff]  }
  0x9c   :  { %1855 = vmatmul.mubr.bf16.gmra.mxu1 %v3500_v33 }
  0x9d   :  { %1992 = vmatprep.mubr.bf16.mxu1 %v3511_v34 }
  0xa2   :  { %1896 = vmatmul.mubr.bf16.vlgmr.msra.gmra.mxu0 %v3504_v35 }
  0xa3   :  { %3214 = vmatpush3.bf16.msra.mxu0 %v3508_v26  ;;  %1903 = vmatprep.mubr.bf16.mxu0 %v3512_v36 }
  0xa4   :  { %3215 = vmatprep.subr.bf16.mxu0 %v3533_v37  ;;  %1993 = vmatmul.mubr.bf16.vlgmr.msra.gmra.mxu1 %v3509_v38 }
  0xa5   :  { %2000 = vmatprep.mubr.bf16.mxu1 %v3515_v39 }
  0xa7   :  { %3216 = vmatpush3.bf16.msra.mxu0 %v3533_v37 }
  0xaa   :  { %1904 = vmatmul.mubr.bf16.gmra.mxu0 %v3514_v40 }
  0xab   :  { %1911 = vmatprep.mubr.bf16.mxu0 %v3518_v41 }
  0xac   :  { %2001 = vmatmul.mubr.bf16.gmra.mxu1 %v3517_v42 }
  0xad   :  { %2008 = vmatprep.mubr.bf16.mxu1 %v3521_v43  ;;  %v3562_v43 = vld [vmem:[%s4576_s0 + $0x308] ss:$52 sps:$4 sm:$0xff]  }
  0xb2   :  { %1912 = vmatmul.mubr.bf16.gmra.mxu0 %v3520_v44  ;;  %v3563_v44 = vld [vmem:[%s4578_s3 + $0x38] sm:$0xff]  }
  0xb3   :  { %1919 = vmatprep.mubr.bf16.mxu0 %v3524_v45  ;;  %3233 = vmatprep.subr.bf16.mxu1 %v3563_v44 }
  0xb4   :  { %2009 = vmatmul.mubr.bf16.gmra.mxu1 %v3523_v46 }
  0xb5   :  { %2016 = vmatprep.mubr.bf16.mxu1 %v3527_v47  ;;  %3234 = vmatpush3.bf16.msra.mxu1 %v3563_v44 }
  0xba   :  { %1920 = vmatmul.mubr.bf16.gmra.mxu0 %v3526_v48 }
  0xbb   :  { %1927 = vmatprep.mubr.bf16.mxu0 %v3530_v49 }
  0xbc   :  { %2017 = vmatmul.mubr.bf16.gmra.mxu1 %v3529_v50 }
  0xbd   :  { %2024 = vmatprep.mubr.bf16.mxu1 %v3534_v51 }
  0xc2   :  { %1928 = vmatmul.mubr.bf16.gmra.mxu0 %v3532_v52 }
  0xc3   :  { %1935 = vmatprep.mubr.bf16.mxu0 %v3537_v53 }
  0xc4   :  { %2025 = vmatmul.mubr.bf16.gmra.mxu1 %v3536_v54 }
  0xc5   :  { %2032 = vmatprep.mubr.bf16.mxu1 %v3540_v55 }
  0xca   :  { %1936 = vmatmul.mubr.bf16.gmra.mxu0 %v3539_v56 }
  0xcb   :  { %1943 = vmatprep.mubr.bf16.mxu0 %v3543_v57 }
  0xcc   :  { %2033 = vmatmul.mubr.bf16.gmra.mxu1 %v3542_v58 }
  0xcd   :  { %2040 = vmatprep.mubr.bf16.mxu1 %v3546_v59  ;;  %v3564_v59 = vld [vmem:[%s4578_s3 + $0x30] sm:$0xff]  }
  0xce   :  { %3235 = vmatprep.subr.bf16.mxu1 %v3564_v59 }
  0xcf   :  { %3236 = vmatpush3.bf16.msra.mxu1 %v3564_v59 }
  0xd2   :  { %1944 = vmatmul.mubr.bf16.gmra.mxu0 %v3545_v60 }
  0xd3   :  { %1951 = vmatprep.mubr.bf16.mxu0 %v3549_v61 }
  0xd4   :  { %2041 = vmatmul.mubr.bf16.gmra.mxu1 %v3548_v62 }
  0xd5   :  { %2048 = vmatprep.mubr.bf16.mxu1 %v3552_v63 }
  0xda   :  { %1952 = vmatmul.mubr.bf16.gmra.mxu0 %v3551_v0 }
  0xdb   :  { %3217 = vmatprep.mubr.msk.bf16.mxu0 %vm1450_vm0, %v3555_v1 }
  0xdc   :  { %2049 = vmatmul.mubr.bf16.gmra.mxu1 %v3554_v2 }
  0xe2   :  { %v2803_v5 = vpop.f32.mrf.mxu0  ;;  %3218 = vmatmul.mubr.msk.bf16.vlgmr.msra.gmra.mxu0 %vm1450_vm0, %v3556_v3 }
  0xe3   :  { %3221 = vmatprep.mubr.msk.bf16.mxu0 %vm1450_vm0, %v3557_v4 }
  0xe4   :  { %v2804_v7 = vpop.f32.mrf.mxu0  ;;  %v2867_v9 = vpop.f32.mrf.mxu1 }
  0xe5   :  { %v2805_v8 = vadd.f32 %v2804_v7, %v2803_v5 }
  0xe6   :  { %v2806_v10 = vpop.f32.mrf.mxu0  ;;  %v2868_v13 = vpop.f32.mrf.mxu1 }
  0xe7   :  { %v1510_v12 = vadd.f32 %v2805_v8, %v4216_v6  ;;  %v2869_v15 = vadd.f32 %v2868_v13, %v2867_v9  ;;  %v3565_v13 = vld [vmem:[%s4578_s3 + $0x28] sm:$0xff]  }
  0xe8   :  { %v2807_v16 = vpop.f32.mrf.mxu0  ;;  %v2870_v18 = vpop.f32.mrf.mxu1  ;;  %3237 = vmatprep.subr.bf16.mxu1 %v3565_v13 }
  0xe9   :  { %v2808_v17 = vadd.f32 %v2807_v16, %v2806_v10  ;;  %v4225_v19 = vadd.f32 %v2869_v15, %v1510_v12  ;;  %3238 = vmatpush3.bf16.msra.mxu1 %v3565_v13 }
  0xea   :  { %v2809_v20 = vpop.f32.mrf.mxu0  ;;  %3222 = vmatmul.mubr.msk.bf16.gmra.mxu0 %vm1450_vm0, %v3558_v11  ;;  %v2871_v22 = vpop.f32.mrf.mxu1 }
  0xeb   :  { %v1513_v21 = vadd.f32 %v2808_v17, %v4216_v6  ;;  %3225 = vmatprep.mubr.msk.bf16.mxu0 %vm1450_vm0, %v3559_v14  ;;  %v2872_v23 = vadd.f32 %v2871_v22, %v2870_v18 }
  0xec   :  { %v2810_v24 = vpop.f32.mrf.mxu0  ;;  %v2873_v26 = vpop.f32.mrf.mxu1 }
  0xed   :  { %v2811_v25 = vadd.f32 %v2810_v24, %v2809_v20  ;;  %v4230_v27 = vadd.f32 %v2872_v23, %v1513_v21 }
  0xee   :  { %v2812_v28 = vpop.f32.mrf.mxu0  ;;  %v2874_v31 = vpop.f32.mrf.mxu1 }
  0xef   :  { %v1518_v30 = vadd.f32 %v2811_v25, %v4216_v6  ;;  %v2875_v33 = vadd.f32 %v2874_v31, %v2873_v26 }
  0xf0   :  { %v2813_v34 = vpop.f32.mrf.mxu0  ;;  %v2876_v36 = vpop.f32.mrf.mxu1 }
  0xf1   :  { %v2814_v35 = vadd.f32 %v2813_v34, %v2812_v28  ;;  %v4239_v37 = vadd.f32 %v2875_v33, %v1518_v30 }
  0xf2   :  { %v2815_v38 = vpop.f32.mrf.mxu0  ;;  %3226 = vmatmul.mubr.msk.bf16.gmra.mxu0 %vm1450_vm0, %v3560_v29  ;;  %v2877_v40 = vpop.f32.mrf.mxu1 }
  0xf3   :  { %v1521_v39 = vadd.f32 %v2814_v35, %v4216_v6  ;;  %3229 = vmatprep.mubr.msk.bf16.mxu0 %vm1450_vm0, %v3561_v32  ;;  %v2878_v41 = vadd.f32 %v2877_v40, %v2876_v36  ;;  %v3566_v32 = vld [vmem:[%s4578_s3 + $0x20] sm:$0xff]  }
  0xf4   :  { %v2816_v42 = vpop.f32.mrf.mxu0  ;;  %v2879_v46 = vpop.f32.mrf.mxu1  ;;  %3239 = vmatprep.subr.bf16.mxu1 %v3566_v32 }
  0xf5   :  { %v2817_v45 = vadd.f32 %v2816_v42, %v2815_v38  ;;  %v4250_v47 = vadd.f32 %v2878_v41, %v1521_v39  ;;  %3240 = vmatpush3.bf16.msra.mxu1 %v3566_v32 }
  0xf6   :  { %v2818_v48 = vpop.f32.mrf.mxu0  ;;  %v2880_v50 = vpop.f32.mrf.mxu1 }
  0xf7   :  { %v1526_v49 = vadd.f32 %v2817_v45, %v4216_v6  ;;  %v2881_v51 = vadd.f32 %v2880_v50, %v2879_v46 }
  0xf8   :  { %v2819_v52 = vpop.f32.mrf.mxu0  ;;  %v2882_v54 = vpop.f32.mrf.mxu1 }
  0xf9   :  { %v2820_v53 = vadd.f32 %v2819_v52, %v2818_v48  ;;  %v4253_v55 = vadd.f32 %v2881_v51, %v1526_v49  ;;  %v3567_v51 = vld [vmem:[%s4578_s3 + $0x18] sm:$0xff]  }
  0xfa   :  { %v2821_v56 = vpop.f32.mrf.mxu0  ;;  %3230 = vmatmul.mubr.msk.bf16.gmra.mxu0 %vm1450_vm0, %v3562_v43  ;;  %v2883_v58 = vpop.f32.mrf.mxu1  ;;  %3241 = vmatprep.subr.bf16.mxu1 %v3567_v51 }
  0xfb   :  { %v1529_v57 = vadd.f32 %v2820_v53, %v4216_v6  ;;  %v2884_v60 = vadd.f32 %v2883_v58, %v2882_v54  ;;  %3242 = vmatpush3.bf16.msra.mxu1 %v3567_v51 }
  0xfc   :  { %v2822_v61 = vpop.f32.mrf.mxu0  ;;  %v2885_v63 = vpop.f32.mrf.mxu1 }
  0xfd   :  { %v2823_v62 = vadd.f32 %v2822_v61, %v2821_v56  ;;  %v4260_v0 = vadd.f32 %v2884_v60, %v1529_v57 }
  0xfe   :  { %v2824_v1 = vpop.f32.mrf.mxu0  ;;  %v2886_v3 = vpop.f32.mrf.mxu1 }
  0xff   :  { %v1534_v2 = vadd.f32 %v2823_v62, %v4216_v6  ;;  %v2887_v4 = vadd.f32 %v2886_v3, %v2885_v63 }
 0x100   :  { %v2825_v5 = vpop.f32.mrf.mxu0  ;;  %v2888_v8 = vpop.f32.mrf.mxu1 }
 0x101   :  { %v2826_v7 = vadd.f32 %v2825_v5, %v2824_v1  ;;  %v4263_v9 = vadd.f32 %v2887_v4, %v1534_v2 }
 0x102   :  { %v2827_v10 = vpop.f32.mrf.mxu0  ;;  %v2889_v12 = vpop.f32.mrf.mxu1 }
 0x103   :  { %v1537_v11 = vadd.f32 %v2826_v7, %v4216_v6  ;;  %v2890_v14 = vadd.f32 %v2889_v12, %v2888_v8  ;;  %v3568_v7 = vld [vmem:[%s4578_s3 + $0x10] sm:$0xff]  }
 0x104   :  { %v2828_v15 = vpop.f32.mrf.mxu0  ;;  %v2891_v17 = vpop.f32.mrf.mxu1  ;;  %3243 = vmatprep.subr.bf16.mxu1 %v3568_v7 }
 0x105   :  { %v2829_v16 = vadd.f32 %v2828_v15, %v2827_v10  ;;  %v4269_v18 = vadd.f32 %v2890_v14, %v1537_v11  ;;  %3244 = vmatpush3.bf16.msra.mxu1 %v3568_v7 }
 0x106   :  { %v2830_v20 = vpop.f32.mrf.mxu0  ;;  %v2892_v22 = vpop.f32.mrf.mxu1 }
 0x107   :  { %v1542_v21 = vadd.f32 %v2829_v16, %v4216_v6  ;;  %v2893_v23 = vadd.f32 %v2892_v22, %v2891_v17 }
 0x108   :  { %v2831_v24 = vpop.f32.mrf.mxu0  ;;  %v2894_v26 = vpop.f32.mrf.mxu1 }
 0x109   :  { %v2832_v25 = vadd.f32 %v2831_v24, %v2830_v20  ;;  %v4272_v28 = vadd.f32 %v2893_v23, %v1542_v21 }
 0x10a   :  { %v2833_v29 = vpop.f32.mrf.mxu0  ;;  %v2895_v31 = vpop.f32.mrf.mxu1 }
 0x10b   :  { %v1545_v30 = vadd.f32 %v2832_v25, %v4216_v6  ;;  %v2896_v33 = vadd.f32 %v2895_v31, %v2894_v26 }
 0x10c   :  { %v2834_v34 = vpop.f32.mrf.mxu0  ;;  %v2897_v36 = vpop.f32.mrf.mxu1 }
 0x10d   :  { %v2835_v35 = vadd.f32 %v2834_v34, %v2833_v29  ;;  %v4278_v38 = vadd.f32 %v2896_v33, %v1545_v30  ;;  %v3569_v29 = vld [vmem:[%s4578_s3 + $0x8] sm:$0xff]  }
 0x10e   :  { %v2836_v39 = vpop.f32.mrf.mxu0  ;;  %v2898_v41 = vpop.f32.mrf.mxu1  ;;  %3245 = vmatprep.subr.bf16.mxu1 %v3569_v29 }
 0x10f   :  { %v1550_v40 = vadd.f32 %v2835_v35, %v4216_v6  ;;  %v2899_v42 = vadd.f32 %v2898_v41, %v2897_v36  ;;  %3246 = vmatpush3.bf16.msra.mxu1 %v3569_v29 }
 0x110   :  { %v2837_v43 = vpop.f32.mrf.mxu0  ;;  %v2900_v45 = vpop.f32.mrf.mxu1 }
 0x111   :  { %v2838_v44 = vadd.f32 %v2837_v43, %v2836_v39  ;;  %v4281_v46 = vadd.f32 %v2899_v42, %v1550_v40 }
 0x112   :  { %v2839_v48 = vpop.f32.mrf.mxu0  ;;  %v2901_v50 = vpop.f32.mrf.mxu1 }
 0x113   :  { %v1553_v49 = vadd.f32 %v2838_v44, %v4216_v6  ;;  %v2902_v52 = vadd.f32 %v2901_v50, %v2900_v45 }
 0x114   :  { %v2840_v53 = vpop.f32.mrf.mxu0  ;;  %v2903_v56 = vpop.f32.mrf.mxu1 }
 0x115   :  { %v2841_v54 = vadd.f32 %v2840_v53, %v2839_v48  ;;  %v4287_v57 = vadd.f32 %v2902_v52, %v1553_v49  ;;  %v3570_v49 = vld [vmem:[%s4578_s3] sm:$0xff]  }
 0x116   :  { %v2842_v58 = vpop.f32.mrf.mxu0  ;;  %v2904_v60 = vpop.f32.mrf.mxu1  ;;  %3247 = vmatprep.subr.bf16.mxu1 %v3570_v49 }
 0x117   :  { %v1558_v59 = vadd.f32 %v2841_v54, %v4216_v6  ;;  %v2905_v61 = vadd.f32 %v2904_v60, %v2903_v56  ;;  %3248 = vmatpush3.bf16.msra.mxu1 %v3570_v49 }
 0x118   :  { %v2843_v62 = vpop.f32.mrf.mxu0  ;;  %v2906_v1 = vpop.f32.mrf.mxu1 }
 0x119   :  { %v2844_v63 = vadd.f32 %v2843_v62, %v2842_v58  ;;  %v4290_v2 = vadd.f32 %v2905_v61, %v1558_v59 }
 0x11a   :  { %v2845_v3 = vpop.f32.mrf.mxu0  ;;  %v2907_v5 = vpop.f32.mrf.mxu1 }
 0x11b   :  { %v1561_v4 = vadd.f32 %v2844_v63, %v4216_v6  ;;  %v2908_v8 = vadd.f32 %v2907_v5, %v2906_v1 }
 0x11c   :  { %v2846_v10 = vpop.f32.mrf.mxu0  ;;  %v2909_v12 = vpop.f32.mrf.mxu1 }
 0x11d   :  { %v2847_v11 = vadd.f32 %v2846_v10, %v2845_v3  ;;  %v4296_v13 = vadd.f32 %v2908_v8, %v1561_v4 }
 0x11e   :  { %v2848_v14 = vpop.f32.mrf.mxu0  ;;  %v2910_v16 = vpop.f32.mrf.mxu1 }
 0x11f   :  { %v1566_v15 = vadd.f32 %v2847_v11, %v4216_v6  ;;  %v2911_v17 = vadd.f32 %v2910_v16, %v2909_v12 }
 0x120   :  { %v2849_v20 = vpop.f32.mrf.mxu0  ;;  %v2912_v22 = vpop.f32.mrf.mxu1 }
 0x121   :  { %v2850_v21 = vadd.f32 %v2849_v20, %v2848_v14  ;;  %v4299_v23 = vadd.f32 %v2911_v17, %v1566_v15 }
 0x122   :  { %v2931_v24 = vpop.f32.mrf.mxu0  ;;  %v2913_v26 = vpop.f32.mrf.mxu1 }
 0x123   :  { %v1569_v25 = vadd.f32 %v2850_v21, %v4216_v6  ;;  %v2914_v30 = vadd.f32 %v2913_v26, %v2912_v22 }
 0x124   :  { %v2932_v31 = vpop.f32.mrf.mxu0  ;;  %v2995_v33 = vpop.f32.mrf.mxu1 }
 0x125   :  { %v2933_v32 = vadd.f32 %v2932_v31, %v2931_v24  ;;  %v4305_v34 = vadd.f32 %v2914_v30, %v1569_v25 }
 0x126   :  { %v2934_v35 = vpop.f32.mrf.mxu0  ;;  %v2996_v39 = vpop.f32.mrf.mxu1 }
 0x127   :  { %v1704_v36 = vadd.f32 %v2933_v32, %v4225_v19  ;;  %v2997_v40 = vadd.f32 %v2996_v39, %v2995_v33 }
 0x128   :  { %v2935_v41 = vpop.f32.mrf.mxu0  ;;  %v2998_v42 = vpop.f32.mrf.mxu1 }
 0x129   :  { %v2936_v6 = vadd.f32 %v2935_v41, %v2934_v35  ;;  %v4308_v43 = vadd.f32 %v2997_v40, %v1704_v36 }
 0x12a   :  { %v2937_v44 = vpop.f32.mrf.mxu0  ;;  %v2999_v48 = vpop.f32.mrf.mxu1 }
 0x12b   :  { %v1707_v45 = vadd.f32 %v2936_v6, %v4230_v27  ;;  %v3000_v50 = vadd.f32 %v2999_v48, %v2998_v42 }
 0x12c   :  { %v2938_v51 = vpop.f32.mrf.mxu0  ;;  %v3001_v53 = vpop.f32.mrf.mxu1 }
 0x12d   :  { %v2939_v52 = vadd.f32 %v2938_v51, %v2937_v44  ;;  %v4314_v19 = vadd.f32 %v3000_v50, %v1707_v45 }
 0x12e   :  { %v2940_v54 = vpop.f32.mrf.mxu0  ;;  %v3002_v58 = vpop.f32.mrf.mxu1 }
 0x12f   :  { %v1712_v56 = vadd.f32 %v2939_v52, %v4239_v37  ;;  %v3003_v59 = vadd.f32 %v3002_v58, %v3001_v53  ;;  %v4338_v58 = vld [vmem:[%s4579_s5 + $0x38] sm:$0xff]  }
 0x130   :  { %v2941_v60 = vpop.f32.mrf.mxu0  ;;  %v3004_v61 = vpop.f32.mrf.mxu1  ;;  %4592 = vst [vmem:[#allocation2_spill] sm:$0xff] %v4338_v58  ;;  %3265 = vmatprep.subr.bf16.mxu0 %v4338_v58  ;;  %3297 = vmatprep.subr.bf16.mxu1 %v4338_v58 }
 0x131   :  { %v2942_v27 = vadd.f32 %v2941_v60, %v2940_v54  ;;  %v4317_v62 = vadd.f32 %v3003_v59, %v1712_v56  ;;  %v4345_v60 = vld [vmem:[%s4579_s5 + $0x30] sm:$0xff]   ;;  %3266 = vmatpush3.bf16.msra.mxu0 %v4338_v58 }
 0x132   :  { %v2943_v63 = vpop.f32.mrf.mxu0  ;;  %v3005_v3 = vpop.f32.mrf.mxu1  ;;  %4593 = vst [vmem:[#allocation3_spill] sm:$0xff] %v4345_v60  ;;  %3267 = vmatprep.subr.bf16.mxu0 %v4345_v60 }
 0x133   :  { %v1715_v1 = vadd.f32 %v2942_v27, %v4250_v47  ;;  %v3006_v4 = vadd.f32 %v3005_v3, %v3004_v61 }
 0x134   :  { %v2944_v5 = vpop.f32.mrf.mxu0  ;;  %v3007_v8 = vpop.f32.mrf.mxu1 }
 0x135   :  { %v2945_v7 = vadd.f32 %v2944_v5, %v2943_v63  ;;  %v4320_v10 = vadd.f32 %v3006_v4, %v1715_v1  ;;  %v4355_v4 = vld [vmem:[%s4579_s5 + $0x28] sm:$0xff]   ;;  %3268 = vmatpush3.bf16.msra.mxu0 %v4345_v60 }
 0x136   :  { %v2946_v11 = vpop.f32.mrf.mxu0  ;;  %v3008_v12 = vpop.f32.mrf.mxu1  ;;  %4594 = vst [vmem:[#allocation4_spill] sm:$0xff] %v4355_v4  ;;  %3269 = vmatprep.subr.bf16.mxu0 %v4355_v4 }
 0x137   :  { %v1720_v37 = vadd.f32 %v2945_v7, %v4253_v55  ;;  %v3009_v14 = vadd.f32 %v3008_v12, %v3007_v8 }
 0x138   :  { %v2947_v15 = vpop.f32.mrf.mxu0  ;;  %v3010_v17 = vpop.f32.mrf.mxu1 }
 0x139   :  { %v2948_v16 = vadd.f32 %v2947_v15, %v2946_v11  ;;  %v4323_v20 = vadd.f32 %v3009_v14, %v1720_v37  ;;  %v4365_v15 = vld [vmem:[%s4579_s5 + $0x20] sm:$0xff]   ;;  %3270 = vmatpush3.bf16.msra.mxu0 %v4355_v4 }
 0x13a   :  { %v2949_v21 = vpop.f32.mrf.mxu0  ;;  %v3011_v22 = vpop.f32.mrf.mxu1  ;;  %4596 = vst [vmem:[#allocation6_spill] sm:$0xff] %v4365_v15  ;;  %3271 = vmatprep.subr.bf16.mxu0 %v4365_v15 }
 0x13b   :  { %v1723_v47 = vadd.f32 %v2948_v16, %v4260_v0  ;;  %v3012_v24 = vadd.f32 %v3011_v22, %v3010_v17 }
 0x13c   :  { %v2950_v25 = vpop.f32.mrf.mxu0  ;;  %v3013_v29 = vpop.f32.mrf.mxu1 }
 0x13d   :  { %v2951_v26 = vadd.f32 %v2950_v25, %v2949_v21  ;;  %v4326_v30 = vadd.f32 %v3012_v24, %v1723_v47  ;;  %3272 = vmatpush3.bf16.msra.mxu0 %v4365_v15 }
 0x13e   :  { %v2952_v31 = vpop.f32.mrf.mxu0  ;;  %v3014_v32 = vpop.f32.mrf.mxu1 }
 0x13f   :  { %v1728_v55 = vadd.f32 %v2951_v26, %v4263_v9  ;;  %v3015_v33 = vadd.f32 %v3014_v32, %v3013_v29  ;;  %v4375_v26 = vld [vmem:[%s4579_s5 + $0x18] sm:$0xff]  }
 0x140   :  { %v2953_v35 = vpop.f32.mrf.mxu0  ;;  %v3016_v39 = vpop.f32.mrf.mxu1  ;;  %4597 = vst [vmem:[#allocation7_spill] sm:$0xff] %v4375_v26  ;;  %3273 = vmatprep.subr.bf16.mxu0 %v4375_v26 }
 0x141   :  { %v2954_v36 = vadd.f32 %v2953_v35, %v2952_v31  ;;  %v4329_v40 = vadd.f32 %v3015_v33, %v1728_v55  ;;  %3274 = vmatpush3.bf16.msra.mxu0 %v4375_v26 }
 0x142   :  { %v2955_v41 = vpop.f32.mrf.mxu0  ;;  %v3017_v6 = vpop.f32.mrf.mxu1 }
 0x143   :  { %v1731_v0 = vadd.f32 %v2954_v36, %v4269_v18  ;;  %v3018_v42 = vadd.f32 %v3017_v6, %v3016_v39 }
 0x144   :  { %v2956_v44 = vpop.f32.mrf.mxu0  ;;  %v3019_v48 = vpop.f32.mrf.mxu1 }
 0x145   :  { %v2957_v45 = vadd.f32 %v2956_v44, %v2955_v41  ;;  %v4332_v49 = vadd.f32 %v3018_v42, %v1731_v0 }
 0x146   :  { %v2958_v50 = vpop.f32.mrf.mxu0  ;;  %v3020_v51 = vpop.f32.mrf.mxu1 }
 0x147   :  { %v1736_v9 = vadd.f32 %v2957_v45, %v4272_v28  ;;  %v3021_v52 = vadd.f32 %v3020_v51, %v3019_v48 }
 0x148   :  { %v2959_v53 = vpop.f32.mrf.mxu0  ;;  %v3022_v56 = vpop.f32.mrf.mxu1 }
 0x149   :  { %v2960_v54 = vadd.f32 %v2959_v53, %v2958_v50  ;;  %v4340_v18 = vadd.f32 %v3021_v52, %v1736_v9 }
 0x14a   :  { %v2961_v59 = vpop.f32.mrf.mxu0  ;;  %v3023_v27 = vpop.f32.mrf.mxu1 }
 0x14b   :  { %v1739_v28 = vadd.f32 %v2960_v54, %v4278_v38  ;;  %v3024_v61 = vadd.f32 %v3023_v27, %v3022_v56 }
 0x14c   :  { %v2962_v63 = vpop.f32.mrf.mxu0  ;;  %v3025_v3 = vpop.f32.mrf.mxu1 }
 0x14d   :  { %v2963_v1 = vadd.f32 %v2962_v63, %v2961_v59  ;;  %v4357_v5 = vadd.f32 %v3024_v61, %v1739_v28 }
 0x14e   :  { %v2964_v38 = vpop.f32.mrf.mxu0  ;;  %v3026_v8 = vpop.f32.mrf.mxu1 }
 0x14f   :  { %4595 = vst [vmem:[#allocation5_spill] sm:$0xff] %v4357_v5  ;;  %v1744_v7 = vadd.f32 %v2963_v1, %v4281_v46  ;;  %v3027_v11 = vadd.f32 %v3026_v8, %v3025_v3 }
 0x150   :  { %v2965_v37 = vpop.f32.mrf.mxu0  ;;  %v3028_v14 = vpop.f32.mrf.mxu1 }
 0x151   :  { %v2966_v12 = vadd.f32 %v2965_v37, %v2964_v38  ;;  %v4367_v16 = vadd.f32 %v3027_v11, %v1744_v7 }
 0x152   :  { %v2967_v17 = vpop.f32.mrf.mxu0  ;;  %v3029_v46 = vpop.f32.mrf.mxu1 }
 0x153   :  { %v1747_v21 = vadd.f32 %v2966_v12, %v4287_v57  ;;  %v3030_v47 = vadd.f32 %v3029_v46, %v3028_v14 }
 0x154   :  { %v2968_v22 = vpop.f32.mrf.mxu0  ;;  %v3031_v25 = vpop.f32.mrf.mxu1 }
 0x155   :  { %v2969_v24 = vadd.f32 %v2968_v22, %v2967_v17  ;;  %v4377_v29 = vadd.f32 %v3030_v47, %v1747_v21 }
 0x156   :  { %v2970_v31 = vpop.f32.mrf.mxu0  ;;  %v3032_v57 = vpop.f32.mrf.mxu1 }
 0x157   :  { %4598 = vst [vmem:[#allocation8_spill] sm:$0xff] %v4377_v29  ;;  %v1752_v55 = vadd.f32 %v2969_v24, %v4290_v2  ;;  %v3033_v32 = vadd.f32 %v3032_v57, %v3031_v25 }
 0x158   :  { %v2971_v33 = vpop.f32.mrf.mxu0  ;;  %v3034_v36 = vpop.f32.mrf.mxu1 }
 0x159   :  { %v2972_v35 = vadd.f32 %v2971_v33, %v2970_v31  ;;  %v4382_v39 = vadd.f32 %v3033_v32, %v1752_v55 }
 0x15a   :  { %v2973_v41 = vpop.f32.mrf.mxu0  ;;  %v3035_v6 = vpop.f32.mrf.mxu1 }
 0x15b   :  { %4599 = vst [vmem:[#allocation9_spill] sm:$0xff] %v4382_v39  ;;  %v1755_v0 = vadd.f32 %v2972_v35, %v4296_v13  ;;  %v3036_v42 = vadd.f32 %v3035_v6, %v3034_v36 }
 0x15c   :  { %v2974_v44 = vpop.f32.mrf.mxu0  ;;  %v3037_v45 = vpop.f32.mrf.mxu1 }
 0x15d   :  { %v2975_v2 = vadd.f32 %v2974_v44, %v2973_v41  ;;  %v4386_v48 = vadd.f32 %v3036_v42, %v1755_v0 }
 0x15e   :  { %v2976_v50 = vpop.f32.mrf.mxu0  ;;  %v3038_v51 = vpop.f32.mrf.mxu1 }
 0x15f   :  { %4600 = vst [vmem:[#allocation10_spill] sm:$0xff] %v4386_v48  ;;  %v1760_v9 = vadd.f32 %v2975_v2, %v4299_v23  ;;  %v3039_v52 = vadd.f32 %v3038_v51, %v3037_v45 }
 0x160   :  { %v2977_v53 = vpop.f32.mrf.mxu0  ;;  %v4389_v56 = vpop.f32.mrf.mxu1 }
 0x161   :  { %v2978_v54 = vadd.f32 %v2977_v53, %v2976_v50  ;;  %4601 = vst [vmem:[#allocation11_spill] sm:$0xff] %v4389_v56  ;;  %v4391_v59 = vadd.f32 %v3039_v52, %v1760_v9 }
 0x162   :  { %v3059_v13 = vpop.f32.mrf.mxu0  ;;  %v4396_v27 = vpop.f32.mrf.mxu1 }
 0x163   :  { %4602 = vst [vmem:[#allocation12_spill] sm:$0xff] %v4391_v59  ;;  %v4394_v28 = vadd.f32 %v2978_v54, %v4305_v34  ;;  %4604 = vst [vmem:[#allocation14_spill] sm:$0xff] %v4396_v27 }
 0x164   :  { %v3060_v61 = vpop.f32.mrf.mxu0  ;;  %v3123_v1 = vpop.f32.mrf.mxu1 }
 0x165   :  { %4603 = vst [vmem:[#allocation13_spill] sm:$0xff] %v4394_v28  ;;  %v3061_v63 = vadd.f32 %v3060_v61, %v3059_v13 }
 0x166   :  { %v3062_v3 = vpop.f32.mrf.mxu0  ;;  %v3124_v38 = vpop.f32.mrf.mxu1 }
 0x167   :  { %v4399_v23 = vadd.f32 %v3061_v63, %v4308_v43 }
 0x168   :  { %v3063_v7 = vpop.f32.mrf.mxu0  ;;  %v3126_v8 = vpop.f32.mrf.mxu1 }
 0x169   :  { %v3064_v29 = vadd.f32 %v3063_v7, %v3062_v3 }
 0x16a   :  { %v3065_v11 = vpop.f32.mrf.mxu0  ;;  %v3127_v37 = vpop.f32.mrf.mxu1 }
 0x16c   :  { %v3066_v12 = vpop.f32.mrf.mxu0  ;;  %v3129_v14 = vpop.f32.mrf.mxu1 }
 0x16d   :  { %v3067_v27 = vadd.f32 %v3066_v12, %v3065_v11  ;;  %v3128_v11 = vadd.f32 %v3127_v37, %v3126_v8 }
 0x16e   :  { %v3068_v17 = vpop.f32.mrf.mxu0  ;;  %v3130_v21 = vpop.f32.mrf.mxu1 }
 0x170   :  { %v3069_v34 = vpop.f32.mrf.mxu0  ;;  %v3132_v46 = vpop.f32.mrf.mxu1 }
 0x171   :  { %v3070_v58 = vadd.f32 %v3069_v34, %v3068_v17 }
 0x172   :  { %v3071_v47 = vpop.f32.mrf.mxu0  ;;  %v3133_v22 = vpop.f32.mrf.mxu1 }
 0x174   :  { %v3072_v24 = vpop.f32.mrf.mxu0  ;;  %v4401_v25 = vpop.f32.mrf.mxu1 }
 0x175   :  { %v3073_v34 = vadd.f32 %v3072_v24, %v3071_v47 }
 0x176   :  { %v3074_v31 = vpop.f32.mrf.mxu0  ;;  %v4403_v55 = vpop.f32.mrf.mxu1 }
 0x177   :  { %v1914_v37 = vadd.f32 %v3073_v34, %v4323_v20 }
 0x178   :  { %v3075_v43 = vpop.f32.mrf.mxu0  ;;  %v4405_v57 = vpop.f32.mrf.mxu1 }
 0x17a   :  { %v3077_v32 = vpop.f32.mrf.mxu0  ;;  %v4407_v33 = vpop.f32.mrf.mxu1 }
 0x17c   :  { %v3078_v35 = vpop.f32.mrf.mxu0  ;;  %v3141_v36 = vpop.f32.mrf.mxu1 }
 0x17d   :  { %v3079_v3 = vadd.f32 %v3078_v35, %v3077_v32 }
 0x17e   :  { %v3080_v41 = vpop.f32.mrf.mxu0  ;;  %v3142_v0 = vpop.f32.mrf.mxu1 }
 0x180   :  { %v3081_v6 = vpop.f32.mrf.mxu0  ;;  %v3144_v42 = vpop.f32.mrf.mxu1 }
 0x182   :  { %v4409_v44 = vpop.f32.mrf.mxu0  ;;  %v3145_v2 = vpop.f32.mrf.mxu1 }
 0x184   :  { %v4411_v45 = vpop.f32.mrf.mxu0  ;;  %v4413_v50 = vpop.f32.mrf.mxu1 }
 0x186   :  { %v4415_v9 = vpop.f32.mrf.mxu0  ;;  %v4417_v51 = vpop.f32.mrf.mxu1 }
 0x187   :  { %4605 = vst [vmem:[#allocation15_spill] sm:$0xff] %v4417_v51 }
 0x188   :  { %v4419_v52 = vpop.f32.mrf.mxu0  ;;  %v4421_v53 = vpop.f32.mrf.mxu1 }
 0x189   :  { %4606 = vst [vmem:[#allocation16_spill] sm:$0xff] %v4421_v53 }
 0x18a   :  { %v3089_v54 = vpop.f32.mrf.mxu0  ;;  %v4423_v13 = vpop.f32.mrf.mxu1 }
 0x18b   :  { %4607 = vst [vmem:[#allocation17_spill] sm:$0xff] %v4423_v13 }
 0x18c   :  { %v3090_v61 = vpop.f32.mrf.mxu0  ;;  %v4425_v63 = vpop.f32.mrf.mxu1 }
 0x18e   :  { %v3092_v26 = vpop.f32.mrf.mxu0  ;;  %v4427_v15 = vpop.f32.mrf.mxu1 }
 0x190   :  { %v3093_v48 = vpop.f32.mrf.mxu0  ;;  %v4429_v39 = vpop.f32.mrf.mxu1  ;;  %v4627_v34 = vld [vmem:[#allocation16_spill] sm:$0xff] }
 0x191   :  { %4608 = vst [vmem:[#allocation18_spill] sm:$0xff] %v4429_v39 }
 0x192   :  { %v4431_v59 = vpop.f32.mrf.mxu0  ;;  %v4435_v28 = vpop.f32.mrf.mxu1 }
 0x193   :  { %4609 = vst [vmem:[#allocation19_spill] sm:$0xff] %v4431_v59  ;;  %4611 = vst [vmem:[#allocation21_spill] sm:$0xff] %v4435_v28  ;;  %v3131_v28 = vadd.f32 %v3130_v21, %v3129_v14  ;;  %v3076_v14 = vadd.f32 %v3075_v43, %v3074_v31 }
 0x194   :  { %v4433_v4 = vpop.f32.mrf.mxu0  ;;  %v4441_v13 = vpop.f32.mrf.mxu1 }
 0x195   :  { %4610 = vst [vmem:[#allocation20_spill] sm:$0xff] %v4433_v4  ;;  %4614 = vst [vmem:[#allocation24_spill] sm:$0xff] %v4441_v13  ;;  %v1906_v4 = vadd.f32 %v3067_v27, %v4317_v62  ;;  %v3134_v13 = vadd.f32 %v3133_v22, %v3132_v46  ;;  %v1917_v22 = vadd.f32 %v3076_v14, %v4326_v30 }
 0x196   :  { %v4437_v60 = vpop.f32.mrf.mxu0  ;;  %v4447_v39 = vpop.f32.mrf.mxu1  ;;  %v3088_v30 = vadd.f32 %v4419_v52, %v4415_v9 }
 0x197   :  { %4612 = vst [vmem:[#allocation22_spill] sm:$0xff] %v4437_v60  ;;  %4617 = vst [vmem:[#allocation27_spill] sm:$0xff] %v4447_v39  ;;  %v3125_v60 = vadd.f32 %v3124_v38, %v3123_v1  ;;  %v2003_v7 = vadd.f32 %v3131_v28, %v1906_v4  ;;  %v3082_v39 = vadd.f32 %v3081_v6, %v3080_v41 }
 0x198   :  { %v4439_v53 = vpop.f32.mrf.mxu0  ;;  %v4456_v12 = vpop.f32.mrf.mxu1  ;;  %v3137_v4 = vadd.f32 %v4403_v55, %v4401_v25  ;;  %v4621_v9 = vld [vmem:[#allocation18_spill] sm:$0xff] }
 0x199   :  { %4613 = vst [vmem:[#allocation23_spill] sm:$0xff] %v4439_v53  ;;  %v1909_v53 = vadd.f32 %v3070_v58, %v4320_v10  ;;  %v1995_v62 = vadd.f32 %v3125_v60, %v4399_v23  ;;  %v1925_v28 = vadd.f32 %v3082_v39, %v4332_v49  ;;  %v3146_v60 = vadd.f32 %v3145_v2, %v3144_v42 }
 0x19a   :  { %v4443_v5 = vpop.f32.mrf.mxu0  ;;  %v4459_v1 = vpop.f32.mrf.mxu1  ;;  %v3085_v49 = vadd.f32 %v4411_v45, %v4409_v44  ;;  %v3094_v39 = vadd.f32 %v3093_v48, %v3092_v26  ;;  %v2011_v35 = vadd.f32 %v3137_v4, %v1914_v37  ;;  %v4619_v48 = vld [vmem:[#allocation15_spill] sm:$0xff]  ;;  %v4620_v45 = vld [vmem:[#allocation8_spill] sm:$0xff] }
 0x19b   :  { %4615 = vst [vmem:[#allocation25_spill] sm:$0xff] %v4443_v5  ;;  %v1901_v5 = vadd.f32 %v3064_v29, %v4314_v19  ;;  %v2006_v27 = vadd.f32 %v3134_v13, %v1909_v53  ;;  %v1922_v19 = vadd.f32 %v3079_v3, %v4329_v40  ;;  %v3143_v29 = vadd.f32 %v3142_v0, %v3141_v36 }
 0x19c   :  { %v4445_v56 = vpop.f32.mrf.mxu0  ;;  %v3140_v40 = vadd.f32 %v4407_v33, %v4405_v57  ;;  %v2022_v36 = vadd.f32 %v3146_v60, %v1925_v28  ;;  %v3155_v33 = vadd.f32 %v4427_v15, %v4425_v63  ;;  %v1930_v26 = vadd.f32 %v3085_v49, %v4340_v18  ;;  %v4623_v63 = vld [vmem:[#allocation2_spill] sm:$0xff]  ;;  %v4632_v28 = vld [vmem:[#allocation19_spill] sm:$0xff] }
 0x19d   :  { %4616 = vst [vmem:[#allocation26_spill] sm:$0xff] %v4445_v56  ;;  %v1998_v58 = vadd.f32 %v3128_v11, %v1901_v5  ;;  %v3091_v5 = vadd.f32 %v3090_v61, %v3089_v54  ;;  %v2019_v32 = vadd.f32 %v3143_v29, %v1922_v19  ;;  %v3149_v2 = vadd.f32 %v4619_v48, %v4413_v50  ;;  %v4624_v11 = vld [vmem:[#allocation11_spill] sm:$0xff] }
 0x19e   :  { %v4449_v59 = vpop.f32.mrf.mxu0  ;;  %v2014_v44 = vadd.f32 %v3140_v40, %v1917_v22  ;;  %v1941_v53 = vadd.f32 %v3094_v39, %v4620_v45 }
 0x19f   :  { %4618 = vst [vmem:[#allocation28_spill] sm:$0xff] %v4449_v59  ;;  %v1938_v57 = vadd.f32 %v3091_v5, %v4367_v16  ;;  %v4622_v16 = vld [vmem:[#allocation21_spill] sm:$0xff]  ;;  %v2027_v5 = vadd.f32 %v3149_v2, %v1930_v26 }
 0x1a0   :  { %v4452_v51 = vpop.f32.mrf.mxu0  ;;  %v3158_v52 = vadd.f32 %v4622_v16, %v4621_v9  ;;  %v4643_v9 = vld [vmem:[#allocation10_spill] sm:$0xff] }
 0x1a1   :  { %v2035_v14 = vadd.f32 %v3155_v33, %v1938_v57  ;;  %v4640_v33 = vld [vmem:[#allocation9_spill] sm:$0xff] }
 0x1a2   :  { %v3219_v17 = vpop.f32.mrf.mxu0  ;;  %v4630_v19 = vld [vmem:[#allocation25_spill] sm:$0xff] }
 0x1a3   :  { %v2100_v56 = vadd.f32 %v3219_v17, %v2003_v7  ;;  %v4625_v17 = vld [vmem:[#allocation14_spill] sm:$0xff]  ;;  %v4626_v7 = vld [vmem:[#allocation5_spill] sm:$0xff] }
 0x1a4   :  { %v2091_v59 = vpop.f32.mrf.mxu0  ;;  %v3042_v3 = vadd.f32 %v4625_v17, %v4624_v11  ;;  %v1933_v18 = vadd.f32 %v3088_v30, %v4626_v7  ;;  %v4631_v29 = vld [vmem:[#allocation26_spill] sm:$0xff] }
 0x1a5   :  { %v2092_v38 = vadd.f32 %v2091_v59, %v1995_v62  ;;  %v2156_v23 = vmax.f32 %v2100_v56, 0.0  ;;  %v3165_v59 = vpop.f32.mrf.mxu1  ;;  %v4628_v62 = vld [vmem:[#allocation17_spill] sm:$0xff] }
 0x1a6   :  { %v3220_v10 = vpop.f32.mrf.mxu0  ;;  %v3152_v50 = vadd.f32 %v4628_v62, %v4627_v34  ;;  %v4645_v62 = vld [vmem:[#allocation7_spill] sm:$0xff] }
 0x1a7   :  { %v2103_v8 = vadd.f32 %v3220_v10, %v2006_v27  ;;  %v2154_v31 = vmax.f32 %v2092_v38, 0.0  ;;  %v3166_v41 = vpop.f32.mrf.mxu1  ;;  %v3103_v38 = vadd.f32 %v4631_v29, %v4630_v19 }
 0x1a8   :  { %v2094_v21 = vpop.f32.mrf.mxu0 }
 0x1a9   :  { %v2157_v46 = vmax.f32 %v2103_v8, 0.0  ;;  %v2095_v47 = vadd.f32 %v2094_v21, %v1998_v58  ;;  %v3168_v27 = vpop.f32.mrf.mxu1  ;;  %v4629_v58 = vld [vmem:[#allocation3_spill] sm:$0xff]  ;;  %v4633_v21 = vld [vmem:[#allocation20_spill] sm:$0xff] }
 0x1aa   :  { %v3223_v24 = vpop.f32.mrf.mxu0  ;;  %v3097_v60 = vadd.f32 %v4633_v21, %v4632_v28  ;;  %v3578_v28 = vld [vmem:[%s4579_s5] sm:$0xff]  }
 0x1ab   :  { %v2171_v20 = vpack.c.bf16 %v2157_v46, %v2156_v23  ;;  %v2155_v43 = vmax.f32 %v2095_v47, 0.0  ;;  %v2116_v55 = vadd.f32 %v3223_v24, %v2019_v32  ;;  %v4634_v23 = vld [vmem:[#allocation28_spill] sm:$0xff]  ;;  %v2038_v24 = vadd.f32 %v3158_v52, %v1941_v53  ;;  %v4637_v32 = vld [vmem:[#allocation23_spill] sm:$0xff]  ;;  %v3169_v39 = vpop.f32.mrf.mxu1  ;;  %v4644_v52 = vld [vmem:[#allocation6_spill] sm:$0xff] }
 0x1ac   :  { %v2107_v25 = vpop.f32.mrf.mxu0  ;;  %v3106_v46 = vadd.f32 %v4452_v51, %v4634_v23  ;;  %v3167_v51 = vadd.f32 %v3166_v41, %v3165_v59  ;;  %v3170_v2 = vadd.f32 %v3169_v39, %v3168_v27  ;;  %v3164_v59 = vadd.f32 %v4459_v1, %v4456_v12  ;;  %v2769_v23 = vld [vmem:[%s4580_s4] ss:$0 sm:$0xff] }
 0x1ad   :  { %v2170_v56 = vpack.c.bf16 %v2155_v43, %v2154_v31  ;;  %v2108_v6 = vadd.f32 %v2107_v25, %v2011_v35  ;;  %v2160_v13 = vmax.f32 %v2116_v55, 0.0  ;;  %v4635_v31 = vld [vmem:[#allocation13_spill] sm:$0xff]  ;;  %v4636_v43 = vld [vmem:[#allocation22_spill] sm:$0xff]  ;;  %v4638_v55 = vld [vmem:[#allocation4_spill] sm:$0xff] }
 0x1ae   :  { %v3224_v0 = vpop.f32.mrf.mxu0  ;;  %v3100_v49 = vadd.f32 %v4637_v32, %v4636_v43  ;;  %v4639_v35 = vld [vmem:[#allocation12_spill] sm:$0xff] }
 0x1af   :  { %v2119_v42 = vadd.f32 %v3224_v0, %v2022_v36  ;;  %3249 = vmatprep.mubr.bf16.mxu1 %v2170_v56  ;;  %v2158_v8 = vmax.f32 %v2108_v6, 0.0  ;;  %v2030_v56 = vadd.f32 %v3152_v50, %v1933_v18  ;;  %v1954_v36 = vadd.f32 %v3103_v38, %v4639_v35  ;;  %v4641_v6 = vld [vmem:[#allocation24_spill] sm:$0xff] }
 0x1b0   :  { %v2110_v54 = vpop.f32.mrf.mxu0  ;;  %3250 = vmatmul.mubr.bf16.vlgmr.msra.gmra.mxu1 %v2171_v20  ;;  %v1860_v20 = vadd.f32 %v3042_v3, %v4635_v31  ;;  %v1946_v0 = vadd.f32 %v3097_v60, %v4640_v33  ;;  %v1949_v16 = vadd.f32 %v3100_v49, %v4643_v9 }
 0x1b1   :  { %v2161_v15 = vmax.f32 %v2119_v42, 0.0  ;;  %v2111_v61 = vadd.f32 %v2110_v54, %v2014_v44  ;;  %3305 = vmatpush3.bf16.msra.mxu1 %v4623_v63  ;;  %v4642_v42 = vld [vmem:[#allocation27_spill] sm:$0xff]  ;;  %v2051_v63 = vadd.f32 %v3167_v51, %v1954_v36 }
 0x1b2   :  { %v3227_v10 = vpop.f32.mrf.mxu0  ;;  %3298 = vmatprep.subr.bf16.mxu1 %v4629_v58  ;;  %v3161_v44 = vadd.f32 %v4642_v42, %v4641_v6  ;;  %v1957_v26 = vadd.f32 %v3106_v46, %v1860_v20  ;;  %v2046_v12 = vadd.f32 %v3164_v59, %v1949_v16 }
 0x1b3   :  { %v2173_v37 = vpack.c.bf16 %v2161_v15, %v2160_v13  ;;  %v2159_v4 = vmax.f32 %v2111_v61, 0.0  ;;  %v2132_v40 = vadd.f32 %v3227_v10, %v2035_v14 }
 0x1b4   :  { %v2123_v47 = vpop.f32.mrf.mxu0  ;;  %v2043_v7 = vadd.f32 %v3161_v44, %v1946_v0  ;;  %v2054_v18 = vadd.f32 %v3170_v2, %v1957_v26 }
 0x1b5   :  { %v2172_v22 = vpack.c.bf16 %v2159_v4, %v2158_v8  ;;  %3306 = vmatpush3.bf16.msra.mxu1 %v4629_v58  ;;  %v2124_v30 = vadd.f32 %v2123_v47, %v2027_v5  ;;  %v2164_v45 = vmax.f32 %v2132_v40, 0.0  ;;  %v3577_v4 = vld [vmem:[%s4579_s5 + $0x8] sm:$0xff]  }
 0x1b6   :  { %v3228_v25 = vpop.f32.mrf.mxu0  ;;  %3299 = vmatprep.subr.bf16.mxu1 %v4638_v55 }
 0x1b7   :  { %v2135_v57 = vadd.f32 %v3228_v25, %v2038_v24  ;;  %3253 = vmatprep.mubr.bf16.mxu1 %v2172_v22  ;;  %v2162_v13 = vmax.f32 %v2124_v30, 0.0 }
 0x1b8   :  { %v2126_v48 = vpop.f32.mrf.mxu0  ;;  %3254 = vmatmul.mubr.bf16.gmra.mxu1 %v2173_v37  ;;  %v3576_v37 = vld [vmem:[%s4579_s5 + $0x10] sm:$0xff]  }
 0x1b9   :  { %v2165_v53 = vmax.f32 %v2135_v57, 0.0  ;;  %v2127_v54 = vadd.f32 %v2126_v48, %v2030_v56  ;;  %3307 = vmatpush3.bf16.msra.mxu1 %v4638_v55  ;;  %3275 = vmatprep.subr.bf16.mxu0 %v3576_v37 }
 0x1ba   :  { %v3231_v41 = vpop.f32.mrf.mxu0  ;;  %3300 = vmatprep.subr.bf16.mxu1 %v4644_v52  ;;  %3276 = vmatpush3.bf16.msra.mxu0 %v3576_v37 }
 0x1bb   :  { %v2175_v15 = vpack.c.bf16 %v2165_v53, %v2164_v45  ;;  %v2163_v61 = vmax.f32 %v2127_v54, 0.0  ;;  %v2148_v3 = vadd.f32 %v3231_v41, %v2051_v63  ;;  %3277 = vmatprep.subr.bf16.mxu0 %v3577_v4 }
 0x1bc   :  { %v2139_v11 = vpop.f32.mrf.mxu0 }
 0x1bd   :  { %v2174_v17 = vpack.c.bf16 %v2163_v61, %v2162_v13  ;;  %3308 = vmatpush3.bf16.msra.mxu1 %v4644_v52  ;;  %v2140_v50 = vadd.f32 %v2139_v11, %v2043_v7  ;;  %v2168_v14 = vmax.f32 %v2148_v3, 0.0 }
 0x1be   :  { %v3232_v34 = vpop.f32.mrf.mxu0  ;;  %3301 = vmatprep.subr.bf16.mxu1 %v4645_v62  ;;  %3278 = vmatpush3.bf16.msra.mxu0 %v3577_v4 }
 0x1bf   :  { %v2151_v27 = vadd.f32 %v3232_v34, %v2054_v18  ;;  %3257 = vmatprep.mubr.bf16.mxu1 %v2174_v17  ;;  %v2166_v19 = vmax.f32 %v2140_v50, 0.0  ;;  %3279 = vmatprep.subr.bf16.mxu0 %v3578_v28 }
 0x1c0   :  { %v2142_v1 = vpop.f32.mrf.mxu0  ;;  %3258 = vmatmul.mubr.bf16.gmra.mxu1 %v2175_v15 }
 0x1c1   :  { %v2169_v10 = vmax.f32 %v2151_v27, 0.0  ;;  %v2143_v58 = vadd.f32 %v2142_v1, %v2046_v12  ;;  %3309 = vmatpush3.bf16.msra.mxu1 %v4645_v62 }
 0x1c2   :  { %3302 = vmatprep.subr.bf16.mxu1 %v3576_v37  ;;  %3280 = vmatpush3.bf16.msra.mxu0 %v3578_v28 }
 0x1c3   :  { %v2177_v29 = vpack.c.bf16 %v2169_v10, %v2168_v14  ;;  %v2167_v38 = vmax.f32 %v2143_v58, 0.0 }
 0x1c5   :  { %v2176_v8 = vpack.c.bf16 %v2167_v38, %v2166_v19  ;;  %3310 = vmatpush3.bf16.msra.mxu1 %v3576_v37  ;;  %v2778_v19 = vld [vmem:[%s4581_s6] ss:$0 sm:$0xff] }
 0x1c6   :  { %3303 = vmatprep.subr.bf16.mxu1 %v3577_v4 }
 0x1c7   :  { %3261 = vmatprep.mubr.bf16.mxu1 %v2176_v8 }
 0x1c8   :  { %3262 = vmatmul.mubr.bf16.gmra.mxu1 %v2177_v29 }
 0x1c9   :  { %3311 = vmatpush3.bf16.msra.mxu1 %v3577_v4 }
 0x1ca   :  { %3304 = vmatprep.subr.bf16.mxu1 %v3578_v28 }
 0x1cd   :  { %3312 = vmatpush3.bf16.msra.mxu1 %v3578_v28 }
 0x270   :  { %v3251_v21 = vpop.f32.mrf.mxu1 }
 0x271   :  { %v2292_v40 = vadd.f32 %v3251_v21, %v2769_v23 }
 0x272   :  { %v2283_v60 = vpop.f32.mrf.mxu1 }
 0x273   :  { %v2284_v47 = vadd.f32 %v2769_v23, %v2283_v60  ;;  %v2348_v49 = vmax.f32 %v2292_v40, 0.0 }
 0x274   :  { %v3252_v46 = vpop.f32.mrf.mxu1 }
 0x275   :  { %v2295_v22 = vadd.f32 %v3252_v46, %v2769_v23  ;;  %v2346_v43 = vmax.f32 %v2284_v47, 0.0 }
 0x276   :  { %v2286_v5 = vpop.f32.mrf.mxu1 }
 0x277   :  { %v2287_v24 = vadd.f32 %v2769_v23, %v2286_v5  ;;  %v2349_v31 = vmax.f32 %v2295_v22, 0.0 }
 0x278   :  { %v3255_v20 = vpop.f32.mrf.mxu1 }
 0x279   :  { %v2347_v32 = vmax.f32 %v2287_v24, 0.0  ;;  %v2363_v56 = vpack.c.bf16 %v2349_v31, %v2348_v49  ;;  %v2308_v51 = vadd.f32 %v3255_v20, %v2769_v23 }
 0x27a   :  { %v2299_v39 = vpop.f32.mrf.mxu1 }
 0x27b   :  { %v2362_v25 = vpack.c.bf16 %v2347_v32, %v2346_v43  ;;  %v2300_v35 = vadd.f32 %v2769_v23, %v2299_v39  ;;  %v2352_v44 = vmax.f32 %v2308_v51, 0.0 }
 0x27c   :  { %v3256_v55 = vpop.f32.mrf.mxu1 }
 0x27d   :  { %v2311_v36 = vadd.f32 %v3256_v55, %v2769_v23  ;;  %3281 = vmatprep.mubr.bf16.mxu0 %v2362_v25  ;;  %v2350_v6 = vmax.f32 %v2300_v35, 0.0 }
 0x27e   :  { %v2302_v30 = vpop.f32.mrf.mxu1  ;;  %3282 = vmatmul.mubr.bf16.vlgmr.msra.gmra.mxu0 %v2363_v56 }
 0x27f   :  { %v2303_v57 = vadd.f32 %v2769_v23, %v2302_v30  ;;  %v2353_v33 = vmax.f32 %v2311_v36, 0.0 }
 0x280   :  { %v3259_v0 = vpop.f32.mrf.mxu1 }
 0x281   :  { %v2351_v42 = vmax.f32 %v2303_v57, 0.0  ;;  %v2365_v2 = vpack.c.bf16 %v2353_v33, %v2352_v44  ;;  %v2324_v9 = vadd.f32 %v3259_v0, %v2769_v23 }
 0x282   :  { %v2315_v26 = vpop.f32.mrf.mxu1 }
 0x283   :  { %v2364_v48 = vpack.c.bf16 %v2351_v42, %v2350_v6  ;;  %v2316_v53 = vadd.f32 %v2769_v23, %v2315_v26  ;;  %v2356_v61 = vmax.f32 %v2324_v9, 0.0 }
 0x284   :  { %v3260_v45 = vpop.f32.mrf.mxu1 }
 0x285   :  { %v2327_v54 = vadd.f32 %v3260_v45, %v2769_v23  ;;  %3285 = vmatprep.mubr.bf16.mxu0 %v2364_v48  ;;  %v2354_v13 = vmax.f32 %v2316_v53, 0.0 }
 0x286   :  { %v2318_v16 = vpop.f32.mrf.mxu1  ;;  %3286 = vmatmul.mubr.bf16.gmra.mxu0 %v2365_v2 }
 0x287   :  { %v2319_v59 = vadd.f32 %v2769_v23, %v2318_v16  ;;  %v2357_v41 = vmax.f32 %v2327_v54, 0.0 }
 0x288   :  { %v3263_v52 = vpop.f32.mrf.mxu1 }
 0x289   :  { %v2355_v15 = vmax.f32 %v2319_v59, 0.0  ;;  %v2367_v17 = vpack.c.bf16 %v2357_v41, %v2356_v61  ;;  %v2340_v34 = vadd.f32 %v3263_v52, %v2769_v23 }
 0x28a   :  { %v2331_v63 = vpop.f32.mrf.mxu1 }
 0x28b   :  { %v2366_v11 = vpack.c.bf16 %v2355_v15, %v2354_v13  ;;  %v2332_v7 = vadd.f32 %v2769_v23, %v2331_v63  ;;  %v2360_v14 = vmax.f32 %v2340_v34, 0.0 }
 0x28c   :  { %v3264_v3 = vpop.f32.mrf.mxu1 }
 0x28d   :  { %v2343_v18 = vadd.f32 %v3264_v3, %v2769_v23  ;;  %3289 = vmatprep.mubr.bf16.mxu1 %v2366_v11  ;;  %v2358_v12 = vmax.f32 %v2332_v7, 0.0 }
 0x28e   :  { %v2334_v62 = vpop.f32.mrf.mxu1  ;;  %3290 = vmatmul.mubr.bf16.vlgmr.msra.gmra.mxu1 %v2367_v17 }
 0x28f   :  { %v2335_v50 = vadd.f32 %v2769_v23, %v2334_v62  ;;  %v2361_v27 = vmax.f32 %v2343_v18, 0.0 }
 0x291   :  { %v2359_v1 = vmax.f32 %v2335_v50, 0.0  ;;  %v2369_v58 = vpack.c.bf16 %v2361_v27, %v2360_v14 }
 0x293   :  { %v2368_v10 = vpack.c.bf16 %v2359_v1, %v2358_v12 }
 0x295   :  { %3293 = vmatprep.mubr.bf16.mxu1 %v2368_v10 }
 0x296   :  { %3294 = vmatmul.mubr.bf16.gmra.mxu1 %v2369_v58 }
 0x33e   :  { %v3283_v29 = vpop.f32.mrf.mxu0 }
 0x33f   :  { %v2484_v38 = vadd.f32 %v3283_v29, %v2778_v19 }
 0x340   :  { %v2475_v8 = vpop.f32.mrf.mxu0 }
 0x341   :  { %2540 = vst [vmem:[%s4582_s7 + $0x10] sm:$0xff] %v2484_v38  ;;  %v2476_v37 = vadd.f32 %v2778_v19, %v2475_v8 }
 0x342   :  { %v3284_v4 = vpop.f32.mrf.mxu0 }
 0x343   :  { %2538 = vst [vmem:[%s4582_s7] sm:$0xff] %v2476_v37  ;;  %v2487_v28 = vadd.f32 %v3284_v4, %v2778_v19 }
 0x344   :  { %v2478_v21 = vpop.f32.mrf.mxu0 }
 0x345   :  { %2541 = vst [vmem:[%s4582_s7 + $0x18] sm:$0xff] %v2487_v28  ;;  %v2479_v60 = vadd.f32 %v2778_v19, %v2478_v21 }
 0x346   :  { %v3287_v23 = vpop.f32.mrf.mxu0 }
 0x347   :  { %2539 = vst [vmem:[%s4582_s7 + $0x8] sm:$0xff] %v2479_v60  ;;  %v2500_v46 = vadd.f32 %v3287_v23, %v2778_v19 }
 0x348   :  { %v2491_v47 = vpop.f32.mrf.mxu0 }
 0x349   :  { %2544 = vst [vmem:[%s4582_s7 + $0x30] sm:$0xff] %v2500_v46  ;;  %v2492_v22 = vadd.f32 %v2778_v19, %v2491_v47 }
 0x34a   :  { %v3288_v40 = vpop.f32.mrf.mxu0 }
 0x34b   :  { %2542 = vst [vmem:[%s4582_s7 + $0x20] sm:$0xff] %v2492_v22  ;;  %v2503_v5 = vadd.f32 %v3288_v40, %v2778_v19 }
 0x34c   :  { %v2494_v24 = vpop.f32.mrf.mxu0 }
 0x34d   :  { %2545 = vst [vmem:[%s4582_s7 + $0x38] sm:$0xff] %v2503_v5  ;;  %v2495_v31 = vadd.f32 %v2778_v19, %v2494_v24 }
 0x34e   :  { %v3291_v20 = vpop.f32.mrf.mxu1 }
 0x34f   :  { %2543 = vst [vmem:[%s4582_s7 + $0x28] sm:$0xff] %v2495_v31  ;;  %v2516_v43 = vadd.f32 %v3291_v20, %v2778_v19 }
 0x350   :  { %v2507_v32 = vpop.f32.mrf.mxu1 }
 0x351   :  { %2548 = vst [vmem:[%s4582_s7 + $0x50] sm:$0xff] %v2516_v43  ;;  %v2508_v49 = vadd.f32 %v2778_v19, %v2507_v32 }
 0x352   :  { %v3292_v39 = vpop.f32.mrf.mxu1 }
 0x353   :  { %2546 = vst [vmem:[%s4582_s7 + $0x40] sm:$0xff] %v2508_v49  ;;  %v2519_v25 = vadd.f32 %v3292_v39, %v2778_v19 }
 0x354   :  { %v2510_v56 = vpop.f32.mrf.mxu1 }
 0x355   :  { %2549 = vst [vmem:[%s4582_s7 + $0x58] sm:$0xff] %v2519_v25  ;;  %v2511_v55 = vadd.f32 %v2778_v19, %v2510_v56 }
 0x356   :  { %v3295_v35 = vpop.f32.mrf.mxu1 }
 0x357   :  { %2547 = vst [vmem:[%s4582_s7 + $0x48] sm:$0xff] %v2511_v55  ;;  %v2532_v36 = vadd.f32 %v3295_v35, %v2778_v19 }
 0x358   :  { %v2523_v51 = vpop.f32.mrf.mxu1 }
 0x359   :  { %2552 = vst [vmem:[%s4582_s7 + $0x70] sm:$0xff] %v2532_v36  ;;  %v2524_v30 = vadd.f32 %v2778_v19, %v2523_v51 }
 0x35a   :  { %v3296_v57 = vpop.f32.mrf.mxu1 }
 0x35b   :  { %2550 = vst [vmem:[%s4582_s7 + $0x60] sm:$0xff] %v2524_v30  ;;  %v2535_v33 = vadd.f32 %v3296_v57, %v2778_v19 }
 0x35c   :  { %v2526_v0 = vpop.f32.mrf.mxu1 }
 0x35d   :  { %2553 = vst [vmem:[%s4582_s7 + $0x78] sm:$0xff] %v2535_v33  ;;  %v2527_v6 = vadd.f32 %v2778_v19, %v2526_v0 }
 0x35f   :  { %2551 = vst [vmem:[%s4582_s7 + $0x68] sm:$0xff] %v2527_v6 }

</bundles_post_ra>
